<compile_context>
chip_gen: v7x
topology: tpu7x:2x2x1
jax: 0.10.0
libtpu: 0.0.40
codegen_flags: <defaults>
</compile_context>

<pallas_src>
import functools

import jax
import jax.numpy as jnp
from jax.experimental import pallas as pl
from jax.experimental.pallas import tpu as pltpu


LEAKY_SLOPE = 0.01  # torch.nn.LeakyReLU default negative_slope


def _round_up(n, m):
    return ((n + m - 1) // m) * m


def _nonlinear_kernel(x_ref, w_ref, o_ref, *, in_nc, out_nc):
    """One batch tile: x (tb, in_nc); packed weights (in_nc+1+out_nc+1, nc)."""
    x = x_ref[...].astype(jnp.float32)        # (tb, in_nc)
    w = w_ref[...].astype(jnp.float32)        # (P, nc) resident weight slab

    # ---- layer 1: hidden = x @ W1 + b1, as a VPU broadcast-FMA chain -------
    # K = in_nc (3) would be ~97% wasted zero-padding on the MXU contraction;
    # a few broadcast multiply-adds are cheaper on every TPU generation, and
    # the b1 row folds into the accumulator.
    h = w[in_nc:in_nc + 1, :]                 # b1 row (1, nc), broadcasts over tb
    for k in range(in_nc):                    # static unroll, in_nc is tiny
        h = h + x[:, k:k + 1] * w[k:k + 1, :]     # (tb,1)*(1,nc) -> (tb,nc)

    # ---- LeakyReLU (f32 on purpose: v5e has no bf16 VALU/EUP) ---------------
    h = jnp.where(h >= 0, h, LEAKY_SLOPE * h)

    # ---- layer 2: out = h @ W2 + b2, as VPU multiply + XLU lane reduce ------
    # N = out_nc (1) would leave 127/255 MXU result lanes empty.
    b2_row = in_nc + 1 + out_nc
    cols = []
    for j in range(out_nc):                   # static unroll, out_nc is tiny
        w2_j = w[in_nc + 1 + j:in_nc + 2 + j, :]              # (1, nc)
        acc = jnp.sum(h * w2_j, axis=-1, keepdims=True)       # (tb, 1)
        cols.append(acc + w[b2_row:b2_row + 1, j:j + 1])      # + b2[j] (1,1)
    out = cols[0] if out_nc == 1 else jnp.concatenate(cols, axis=-1)

    o_ref[...] = out.astype(o_ref.dtype)


def pack_params(w1, b1, w2, b2):
    """One-time param prep (hoisted out of the forward path).

    Layout of the packed slab, shape (in_nc + 1 + out_nc + 1, nc):
      rows [0, in_nc)                      : w1            (in_nc, nc)
      row  in_nc                           : b1            (1, nc)
      rows [in_nc+1, in_nc+1+out_nc)       : w2^T          (out_nc, nc)
      row  in_nc+1+out_nc                  : b2 zero-padded to nc
    """
    in_nc, nc = w1.shape
    out_nc = w2.shape[1]
    dtype = w1.dtype
    b1_row = jnp.reshape(b1, (1, nc)).astype(dtype)
    w2t = jnp.transpose(w2).astype(dtype)                     # (out_nc, nc)
    b2_flat = jnp.reshape(b2, (out_nc,)).astype(dtype)
    b2_row = jnp.zeros((1, nc), dtype).at[0, :out_nc].set(b2_flat)
    return jnp.concatenate([w1, b1_row, w2t, b2_row], axis=0)


def nonlinear_forward(x, packed_w, *, block_b=128):
    """x: (B, in_nc); packed_w from pack_params(). Returns (B, out_nc)."""
    B, in_nc = x.shape
    P, nc = packed_w.shape
    out_nc = P - in_nc - 2

    # Batch tiling: largest tile <= block_b, 8-row aligned; pad B if ragged.
    tb = min(block_b, _round_up(B, 8))
    Bp = _round_up(B, tb)
    xp = x if Bp == B else jnp.pad(x, ((0, Bp - B), (0, 0)))
    grid = (Bp // tb,)

    out = pl.pallas_call(
        functools.partial(_nonlinear_kernel, in_nc=in_nc, out_nc=out_nc),
        out_shape=jax.ShapeDtypeStruct((Bp, out_nc), x.dtype),
        grid=grid,
        in_specs=[
            # x: one (tb, in_nc) tile per grid step (streams through VMEM).
            pl.BlockSpec((tb, in_nc), lambda i: (i, 0)),
            # packed weights: constant block index -> fetched once, stays
            # VMEM-resident for every grid step.
            pl.BlockSpec((P, nc), lambda i: (0, 0)),
        ],
        out_specs=pl.BlockSpec((tb, out_nc), lambda i: (i, 0)),
        compiler_params=pltpu.CompilerParams(
            dimension_semantics=("parallel",)),
    )(xp, packed_w)

    return out if Bp == B else out[:B]


def init_params(key, in_nc=3, nc=1600, out_nc=1, dtype=jnp.float32):
    """Deterministic init mimicking torch.nn.Linear default U(-1/sqrt(fan_in), +)."""
    k1, k2, k3, k4 = jax.random.split(key, 4)
    bound1 = 1.0 / jnp.sqrt(in_nc)
    bound2 = 1.0 / jnp.sqrt(nc)
    # stored pre-transposed relative to torch: (in_features, out_features)
    w1 = jax.random.uniform(k1, (in_nc, nc), dtype, -bound1, bound1)
    b1 = jax.random.uniform(k2, (1, nc), dtype, -bound1, bound1)
    w2 = jax.random.uniform(k3, (nc, out_nc), dtype, -bound2, bound2)
    b2 = jax.random.uniform(k4, (1, out_nc), dtype, -bound2, bound2)
    return w1, b1, w2, b2


def reference_forward(x, w1, b1, w2, b2):
    h = x @ w1 + b1
    h = jnp.where(h >= 0, h, LEAKY_SLOPE * h)
    return h @ w2 + b2


if __name__ == "__main__":
    key = jax.random.PRNGKey(0)
    kx, kp = jax.random.split(key)

    # Module defaults (in_nc=3, nc=1600, out_nc=1); batched B to exercise the
    # parallel grid axis (2 steps of 128 rows) while staying small.
    B, in_nc, nc, out_nc = 256, 3, 1600, 1
    x = jax.random.normal(kx, (B, in_nc), jnp.float32)
    w1, b1, w2, b2 = init_params(kp, in_nc=in_nc, nc=nc, out_nc=out_nc)

    packed = pack_params(w1, b1, w2, b2)     # one-time prep, not per call

    out = jax.block_until_ready(nonlinear_forward(x, packed))

    ref = reference_forward(x, w1, b1, w2, b2)
    assert out.shape == (B, out_nc), out.shape
    assert jnp.allclose(out, ref, atol=1e-4, rtol=1e-4), "mismatch vs reference"

    print("KERNEL_OK")
</pallas_src>

<mosaic_0001>
module attributes {stable_mosaic.version = 11 : i64} {
  func.func @_nonlinear_kernel(%arg0: i32, %arg1: memref<128x3xf32, #tpu.memory_space<vmem>>, %arg2: memref<6x1600xf32, #tpu.memory_space<vmem>>, %arg3: memref<128x1xf32, #tpu.memory_space<vmem>>) attributes {dimension_semantics = [#tpu.dimension_semantics<parallel>], iteration_bounds = array<i64: 2>, scalar_prefetch = 0 : i64, scratch_operands = 0 : i64, tpu.core_type = #tpu.core_type<tc>, window_params = [{transform_indices = @transform_0, window_bounds = array<i64: 128, 3>}, {pipeline_mode = #tpu.pipeline_mode<synchronous>, transform_indices = @transform_1, window_bounds = array<i64: 6, 1600>}, {transform_indices = @transform_2, window_bounds = array<i64: 128, 1>}]} {
    %c0 = arith.constant 0 : index
    %c0_0 = arith.constant 0 : index
    %0 = vector.load %arg1[%c0, %c0_0] : memref<128x3xf32, #tpu.memory_space<vmem>>, vector<128x3xf32>
    %c0_1 = arith.constant 0 : index
    %c0_2 = arith.constant 0 : index
    %1 = vector.load %arg2[%c0_1, %c0_2] : memref<6x1600xf32, #tpu.memory_space<vmem>>, vector<6x1600xf32>
    %2 = vector.extract_strided_slice %1 {offsets = [3, 0], sizes = [1, 1600], strides = [1, 1]} : vector<6x1600xf32> to vector<1x1600xf32>
    %3 = vector.extract_strided_slice %0 {offsets = [0, 0], sizes = [128, 1], strides = [1, 1]} : vector<128x3xf32> to vector<128x1xf32>
    %4 = vector.extract_strided_slice %1 {offsets = [0, 0], sizes = [1, 1600], strides = [1, 1]} : vector<6x1600xf32> to vector<1x1600xf32>
    %5 = vector.broadcast %3 : vector<128x1xf32> to vector<128x1600xf32>
    %6 = vector.broadcast %4 : vector<1x1600xf32> to vector<128x1600xf32>
    %7 = arith.mulf %5, %6 : vector<128x1600xf32>
    %8 = vector.broadcast %2 : vector<1x1600xf32> to vector<128x1600xf32>
    %9 = arith.addf %8, %7 : vector<128x1600xf32>
    %10 = vector.extract_strided_slice %0 {offsets = [0, 1], sizes = [128, 1], strides = [1, 1]} : vector<128x3xf32> to vector<128x1xf32>
    %11 = vector.extract_strided_slice %1 {offsets = [1, 0], sizes = [1, 1600], strides = [1, 1]} : vector<6x1600xf32> to vector<1x1600xf32>
    %12 = vector.broadcast %10 : vector<128x1xf32> to vector<128x1600xf32>
    %13 = vector.broadcast %11 : vector<1x1600xf32> to vector<128x1600xf32>
    %14 = arith.mulf %12, %13 : vector<128x1600xf32>
    %15 = arith.addf %9, %14 : vector<128x1600xf32>
    %16 = vector.extract_strided_slice %0 {offsets = [0, 2], sizes = [128, 1], strides = [1, 1]} : vector<128x3xf32> to vector<128x1xf32>
    %17 = vector.extract_strided_slice %1 {offsets = [2, 0], sizes = [1, 1600], strides = [1, 1]} : vector<6x1600xf32> to vector<1x1600xf32>
    %18 = vector.broadcast %16 : vector<128x1xf32> to vector<128x1600xf32>
    %19 = vector.broadcast %17 : vector<1x1600xf32> to vector<128x1600xf32>
    %20 = arith.mulf %18, %19 : vector<128x1600xf32>
    %21 = arith.addf %15, %20 : vector<128x1600xf32>
    %cst = arith.constant 0.000000e+00 : f32
    %22 = vector.broadcast %cst : f32 to vector<128x1600xf32>
    %23 = arith.cmpf oge, %21, %22 : vector<128x1600xf32>
    %cst_3 = arith.constant 0.00999999977 : f32
    %24 = vector.broadcast %cst_3 : f32 to vector<128x1600xf32>
    %25 = arith.mulf %24, %21 : vector<128x1600xf32>
    %26 = arith.select %23, %21, %25 : vector<128x1600xi1>, vector<128x1600xf32>
    %27 = vector.extract_strided_slice %1 {offsets = [4, 0], sizes = [1, 1600], strides = [1, 1]} : vector<6x1600xf32> to vector<1x1600xf32>
    %28 = vector.broadcast %27 : vector<1x1600xf32> to vector<128x1600xf32>
    %29 = arith.mulf %26, %28 : vector<128x1600xf32>
    %cst_4 = arith.constant dense<0.000000e+00> : vector<128xf32>
    %30 = vector.multi_reduction <add>, %29, %cst_4 [1] : vector<128x1600xf32> to vector<128xf32>
    %31 = vector.shape_cast %30 : vector<128xf32> to vector<128x1xf32>
    %32 = vector.extract_strided_slice %1 {offsets = [5, 0], sizes = [1, 1], strides = [1, 1]} : vector<6x1600xf32> to vector<1x1xf32>
    %33 = vector.broadcast %32 : vector<1x1xf32> to vector<128x1xf32>
    %34 = arith.addf %31, %33 : vector<128x1xf32>
    %c0_5 = arith.constant 0 : index
    %c0_6 = arith.constant 0 : index
    %35 = vector.load %arg3[%c0_5, %c0_6] : memref<128x1xf32, #tpu.memory_space<vmem>>, vector<128x1xf32>
    tpu.vector_store %arg3[%c0_5, %c0_6], %34 {strides = array<i32>} : memref<128x1xf32, #tpu.memory_space<vmem>>, vector<128x1xf32>,
    return
  }
  func.func @transform_0(%arg0: i32) -> (i32, i32) {
    %c0_i32 = arith.constant 0 : i32
    %c0_i32_0 = arith.constant 0 : i32
    return %arg0, %c0_i32 : i32, i32
  }
  func.func @transform_1(%arg0: i32) -> (i32, i32) {
    %c0_i32 = arith.constant 0 : i32
    %c0_i32_0 = arith.constant 0 : i32
    %c0_i32_1 = arith.constant 0 : i32
    return %c0_i32, %c0_i32_0 : i32, i32
  }
  func.func @transform_2(%arg0: i32) -> (i32, i32) {
    %c0_i32 = arith.constant 0 : i32
    %c0_i32_0 = arith.constant 0 : i32
    return %arg0, %c0_i32 : i32, i32
  }
}

</mosaic_0001>

<bundles_post_ra>
// kernel: tpu_custom_call.1
= control target key start
LH: loop header
LB: loop body
LE: loop exit
PB: predicated region body
PF: predicated region fallthrough
CT: control target
= control target key end

     0   :  { %s3113_s9 = smov 0   ;;  %s5600_s0 = inlined_call_operand.vmem [shape: f32[256,3], index: 0, kind: input, shape index: {}]   ;;  %s5601_s1 = inlined_call_operand.vmem [shape: f32[6,1600], index: 1, kind: input, shape index: {}]   ;;  %s5602_s2 = inlined_call_operand.vmem [shape: f32[256,1], index: 2, kind: output, shape index: {}]  }
   0x1 LB: > { %s3058_s10 = sadd.s32 4294967295, %s3093_s9   ;;  %p3062_p0 = scmp.ge.s32.totalorder %s3093_s9, 1  ;;  %s3093_s9 = sphi %s3113_s9, %s12_s9  }
   0x2   : > { %p113_p1 = scmp.lt.s32.totalorder %s3093_s9, 3 }
   0x4   : > { %p114_p2 = pnand %p3062_p0, %p113_p1 }
   0x6   : > { %117 = sbr.rel (%p114_p2) target bundleno = 893 (0x37d), region = 28 }
   0xd   : > { %s3063_s11 = sshll.u32 %s3058_s10, 4  ;;  %v3095_v0 = vmov 0   ;;  %v3096_v17 = vmov 1   ;;  %v3097_v18 = vmov 2   ;;  %v256_v19 = vlaneseq  ;;  %v3134_v21 = vld [vmem:[%s5601_s1] sm:$0x3f] }
   0xe   : > { %3081 = vset.pattern.permute.xlu1 %v3095_v0  ;;  %3080 = vset.pattern.permute.xlu0 %v3095_v0  ;;  %p136_p3 = scmp.lt.s32.totalorder %s3063_s11, 31  ;;  %v3139_v22 = vld [vmem:[%s5601_s1 + $0x8] sm:$0x3f]  ;;  %v3145_v24 = vld [vmem:[%s5601_s1 + $0x10] sm:$0x3f]  ;;  %vm2735_vm13 = vcmask 523264  }
   0xf   : > { %v3129_v20 = vshrl.u32 %v256_v19, 7  ;;  %v3150_v25 = vld [vmem:[%s5601_s1 + $0x18] sm:$0x3f]  ;;  %v3156_v27 = vld [vmem:[%s5601_s1 + $0x20] sm:$0x3f] }
  0x10   : > { %s6660_s11 = smov (!%p136_p3, %s3063_s11), 31  ;;  %v3161_v28 = vld [vmem:[%s5601_s1 + $0x28] sm:$0x3f]  ;;  %v3166_v29 = vld [vmem:[%s5601_s1 + $0x30] sm:$0x3f] }
  0x11   : > { %s3064_s12 = sshll.u32 %s6660_s11, 3  ;;  %5757 = vst [vmem:[#allocation2_spill] sm:$0xff] %v3129_v20  ;;  %v258_v23 = vsub.s32 0, %v3129_v20  ;;  %v518_v26 = vsub.s32 3, %v3129_v20  ;;  %v3171_v30 = vld [vmem:[%s5601_s1 + $0x38] sm:$0x3f] }
  0x12   : > { %s139_s15 = scalar_lea.vmem %s5600_s0, %s3064_s12  ;;  %v3188_v35 = vld [vmem:[%s5601_s1 + $0x40] sm:$0x3f]  ;;  %v3193_v36 = vld [vmem:[%s5601_s1 + $0x48] sm:$0x3f]  ;;  %v3198_v37 = vld [vmem:[%s5601_s1 + $0x50] sm:$0x3f]  ;;  %s5519_s21 = scalar_lea.vmem %s5602_s2, %s3064_s12 }
  0x13   : > { %v149_v1 = vld [vmem:[%s139_s15 + $0x10] sm:$0xff]  ;;  %v147_v2 = vld [vmem:[%s139_s15] sm:$0xff]  ;;  %v150_v3 = vld [vmem:[%s139_s15 + $0x18] sm:$0xff]  ;;  %v3174_v31 = vrot.slane %v3134_v21, %v258_v23  ;;  %v3177_v32 = vrot.slane %v3139_v22, %v258_v23  ;;  %v3180_v33 = vrot.slane %v3145_v24, %v258_v23  ;;  %v3183_v34 = vrot.slane %v3150_v25, %v258_v23 }
  0x14   : > { %188 = vperm.xlu1 %3081, %v149_v1   ;;  %178 = vperm.xlu0 %3080, %v147_v2   ;;  %v148_v4 = vld [vmem:[%s139_s15 + $0x8] sm:$0xff]  ;;  %v151_v6 = vld [vmem:[%s139_s15 + $0x20] sm:$0xff]  ;;  %v154_v7 = vld [vmem:[%s139_s15 + $0x38] sm:$0xff]  ;;  %v3201_v38 = vrot.slane %v3156_v27, %v258_v23  ;;  %v3204_v39 = vrot.slane %v3134_v21, %v518_v26  ;;  %v3207_v40 = vrot.slane %v3139_v22, %v518_v26  ;;  %v842_v51 = vsub.s32 1, %v3129_v20 }
  0x15   : > { %v152_v5 = vld [vmem:[%s139_s15 + $0x28] sm:$0xff]  ;;  %v153_v8 = vld [vmem:[%s139_s15 + $0x30] sm:$0xff]  ;;  %v155_v10 = vld [vmem:[%s139_s15 + $0x40] sm:$0xff]  ;;  %5758 = vst [vmem:[#allocation3_spill] sm:$0xff] %v3174_v31  ;;  %v3210_v41 = vrot.slane %v3145_v24, %v518_v26  ;;  %v3223_v44 = vrot.slane %v3161_v28, %v258_v23  ;;  %v3226_v45 = vrot.slane %v3166_v29, %v258_v23  ;;  %v3229_v46 = vrot.slane %v3150_v25, %v518_v26 }
  0x16   : > { %v156_v9 = vld [vmem:[%s139_s15 + $0x48] sm:$0xff]  ;;  %v158_v11 = vld [vmem:[%s139_s15 + $0x58] sm:$0xff]  ;;  %v157_v12 = vld [vmem:[%s139_s15 + $0x50] sm:$0xff]  ;;  %5759 = vst [vmem:[#allocation4_spill] sm:$0xff] %v3177_v32  ;;  %v3232_v47 = vrot.slane %v3156_v27, %v518_v26  ;;  %v3235_v48 = vrot.slane %v3171_v30, %v258_v23  ;;  %v3238_v49 = vrot.slane %v3161_v28, %v518_v26  ;;  %v3241_v50 = vrot.slane %v3166_v29, %v518_v26 }
  0x17   : > { %v160_v13 = vld [vmem:[%s139_s15 + $0x68] sm:$0xff]  ;;  %v159_v14 = vld [vmem:[%s139_s15 + $0x60] sm:$0xff]  ;;  %v162_v15 = vld [vmem:[%s139_s15 + $0x78] sm:$0xff]  ;;  %5760 = vst [vmem:[#allocation5_spill] sm:$0xff] %v3180_v33  ;;  %v3245_v52 = vrot.slane %v3188_v35, %v258_v23  ;;  %v3248_v53 = vrot.slane %v3193_v36, %v258_v23  ;;  %v3251_v54 = vrot.slane %v3198_v37, %v258_v23  ;;  %v3254_v55 = vrot.slane %v3171_v30, %v518_v26 }
  0x18   : > { %193 = vperm.xlu1 %3081, %v150_v3   ;;  %183 = vperm.xlu0 %3080, %v148_v4   ;;  %v161_v16 = vld [vmem:[%s139_s15 + $0x70] sm:$0xff]  ;;  %5761 = vst [vmem:[#allocation6_spill] sm:$0xff] %v3183_v34  ;;  %5762 = vst [vmem:[#allocation7_spill] sm:$0xff] %v3201_v38  ;;  %v3215_v42 = vld [vmem:[%s5601_s1 + $0x58] sm:$0x3f]  ;;  %v3263_v58 = vrot.slane %v3188_v35, %v518_v26  ;;  %v3266_v59 = vrot.slane %v3193_v36, %v518_v26  ;;  %v1374_v63 = vsub.s32 2, %v3129_v20 }
  0x19   : > { %5763 = vst [vmem:[#allocation8_spill] sm:$0xff] %v3204_v39  ;;  %5764 = vst [vmem:[#allocation9_spill] sm:$0xff] %v3207_v40  ;;  %v3220_v43 = vld [vmem:[%s5601_s1 + $0x60] sm:$0x3f]  ;;  %v3257_v56 = vrot.slane %v3215_v42, %v258_v23  ;;  %v3269_v60 = vrot.slane %v3198_v37, %v518_v26  ;;  %v3272_v61 = vrot.slane %v3215_v42, %v518_v26 }
  0x1a   : > { %5765 = vst [vmem:[#allocation10_spill] sm:$0xff] %v3210_v41  ;;  %5766 = vst [vmem:[#allocation11_spill] sm:$0xff] %v3223_v44  ;;  %v3260_v57 = vrot.slane %v3220_v43, %v258_v23  ;;  %v3275_v62 = vrot.slane %v3220_v43, %v518_v26  ;;  %v3279_v0 = vrot.slane %v3134_v21, %v842_v51 }
  0x1b   : > { %5767 = vst [vmem:[#allocation12_spill] sm:$0xff] %v3226_v45  ;;  %5768 = vst [vmem:[#allocation13_spill] sm:$0xff] %v3229_v46  ;;  %v3334_v19 = vrot.slane %v3161_v28, %v1374_v63  ;;  %v3337_v23 = vrot.slane %v3166_v29, %v1374_v63  ;;  %v3340_v26 = vrot.slane %v3171_v30, %v1374_v63 }
  0x1c   : > { %203 = vperm.xlu1 %3081, %v152_v5   ;;  %198 = vperm.xlu0 %3080, %v151_v6   ;;  %5769 = vst [vmem:[#allocation14_spill] sm:$0xff] %v3232_v47  ;;  %5770 = vst [vmem:[#allocation15_spill] sm:$0xff] %v3235_v48 }
  0x1d   : > { %5771 = vst [vmem:[#allocation16_spill] sm:$0xff] %v3238_v49  ;;  %5772 = vst [vmem:[#allocation17_spill] sm:$0xff] %v3241_v50 }
  0x1e   : > { %5773 = vst [vmem:[#allocation18_spill] sm:$0xff] %v3245_v52  ;;  %5774 = vst [vmem:[#allocation19_spill] sm:$0xff] %v3248_v53 }
  0x1f   : > { %5775 = vst [vmem:[#allocation20_spill] sm:$0xff] %v3251_v54  ;;  %5776 = vst [vmem:[#allocation21_spill] sm:$0xff] %v3254_v55 }
  0x20   : > { %213 = vperm.xlu1 %3081, %v154_v7   ;;  %208 = vperm.xlu0 %3080, %v153_v8   ;;  %5777 = vst [vmem:[#allocation22_spill] sm:$0xff] %v3257_v56  ;;  %5778 = vst [vmem:[#allocation23_spill] sm:$0xff] %v3260_v57 }
  0x21   : > { %5779 = vst [vmem:[#allocation24_spill] sm:$0xff] %v3263_v58  ;;  %5780 = vst [vmem:[#allocation25_spill] sm:$0xff] %v3266_v59 }
  0x22   : > { %5781 = vst [vmem:[#allocation26_spill] sm:$0xff] %v3269_v60  ;;  %5782 = vst [vmem:[#allocation27_spill] sm:$0xff] %v3272_v61 }
  0x23   : > { %5783 = vst [vmem:[#allocation28_spill] sm:$0xff] %v3275_v62  ;;  %5784 = vst [vmem:[#allocation29_spill] sm:$0xff] %v3279_v0 }
  0x24   : > { %223 = vperm.xlu1 %3081, %v156_v9   ;;  %218 = vperm.xlu0 %3080, %v155_v10   ;;  %5802 = vst [vmem:[#allocation47_spill] sm:$0xff] %v3334_v19  ;;  %5803 = vst [vmem:[#allocation48_spill] sm:$0xff] %v3337_v23  ;;  %v3355_v19 = vrot.slane %v3220_v43, %v1374_v63 }
  0x25   : > { %5804 = vst [vmem:[#allocation49_spill] sm:$0xff] %v3340_v26 }
  0x26   : > { %5809 = vst [vmem:[#allocation54_spill] sm:$0xff] %v3355_v19 }
  0x28   : > { %233 = vperm.xlu1 %3081, %v158_v11   ;;  %228 = vperm.xlu0 %3080, %v157_v12  }
  0x2c   : > { %243 = vperm.xlu1 %3081, %v160_v13   ;;  %238 = vperm.xlu0 %3080, %v159_v14  }
  0x30   : > { %253 = vperm.xlu1 %3081, %v162_v15   ;;  %248 = vperm.xlu0 %3080, %v161_v16  }
  0x34   : > { %3083 = vset.pattern.permute.xlu1 %v3096_v17  ;;  %3082 = vset.pattern.permute.xlu0 %v3096_v17  ;;  %v3328_v17 = vrot.slane %v3150_v25, %v1374_v63 }
  0x35   : > { %781 = vperm.xlu1 %3083, %v148_v4   ;;  %777 = vperm.xlu0 %3082, %v147_v2  }
  0x36   : > { %5800 = vst [vmem:[#allocation45_spill] sm:$0xff] %v3328_v17  ;;  %v3349_v17 = vrot.slane %v3198_v37, %v1374_v63 }
  0x38   : > { %5807 = vst [vmem:[#allocation52_spill] sm:$0xff] %v3349_v17 }
  0x39   : > { %785 = vperm.xlu1 %3083, %v149_v1   ;;  %789 = vperm.xlu0 %3082, %v150_v3  }
  0x3d   : > { %793 = vperm.xlu1 %3083, %v151_v6   ;;  %797 = vperm.xlu0 %3082, %v152_v5  }
  0x41   : > { %801 = vperm.xlu1 %3083, %v153_v8   ;;  %805 = vperm.xlu0 %3082, %v154_v7  }
  0x45   : > { %809 = vperm.xlu1 %3083, %v155_v10   ;;  %813 = vperm.xlu0 %3082, %v156_v9  }
  0x49   : > { %817 = vperm.xlu1 %3083, %v157_v12   ;;  %821 = vperm.xlu0 %3082, %v158_v11  }
  0x4d   : > { %825 = vperm.xlu1 %3083, %v159_v14   ;;  %829 = vperm.xlu0 %3082, %v160_v13  }
  0x51   : > { %833 = vperm.xlu1 %3083, %v161_v16   ;;  %837 = vperm.xlu0 %3082, %v162_v15  }
  0x55   : > { %3084 = vset.pattern.permute.xlu1 %v3097_v18  ;;  %3085 = vset.pattern.permute.xlu0 %v3097_v18  ;;  %v3331_v18 = vrot.slane %v3156_v27, %v1374_v63 }
  0x56   : > { %1309 = vperm.xlu1 %3084, %v147_v2   ;;  %1313 = vperm.xlu0 %3085, %v148_v4   ;;  %v3285_v2 = vrot.slane %v3145_v24, %v842_v51  ;;  %v3291_v4 = vrot.slane %v3156_v27, %v842_v51 }
  0x57   : > { %5801 = vst [vmem:[#allocation46_spill] sm:$0xff] %v3331_v18  ;;  %v3352_v18 = vrot.slane %v3215_v42, %v1374_v63 }
  0x58   : > { %5786 = vst [vmem:[#allocation31_spill] sm:$0xff] %v3285_v2  ;;  %5788 = vst [vmem:[#allocation33_spill] sm:$0xff] %v3291_v4 }
  0x59   : > { %5808 = vst [vmem:[#allocation53_spill] sm:$0xff] %v3352_v18 }
  0x5a   : > { %1317 = vperm.xlu1 %3084, %v149_v1   ;;  %1325 = vperm.xlu0 %3085, %v151_v6   ;;  %v3282_v1 = vrot.slane %v3139_v22, %v842_v51  ;;  %v3297_v6 = vrot.slane %v3166_v29, %v842_v51 }
  0x5c   : > { %5785 = vst [vmem:[#allocation30_spill] sm:$0xff] %v3282_v1  ;;  %5790 = vst [vmem:[#allocation35_spill] sm:$0xff] %v3297_v6 }
  0x5e   : > { %1321 = vperm.xlu1 %3084, %v150_v3   ;;  %1333 = vperm.xlu0 %3085, %v153_v8   ;;  %v3288_v3 = vrot.slane %v3150_v25, %v842_v51  ;;  %v3303_v8 = vrot.slane %v3188_v35, %v842_v51 }
  0x60   : > { %5787 = vst [vmem:[#allocation32_spill] sm:$0xff] %v3288_v3  ;;  %5792 = vst [vmem:[#allocation37_spill] sm:$0xff] %v3303_v8 }
  0x62   : > { %1329 = vperm.xlu1 %3084, %v152_v5   ;;  %1341 = vperm.xlu0 %3085, %v155_v10   ;;  %v3294_v5 = vrot.slane %v3161_v28, %v842_v51  ;;  %v3309_v10 = vrot.slane %v3198_v37, %v842_v51 }
  0x64   : > { %5789 = vst [vmem:[#allocation34_spill] sm:$0xff] %v3294_v5  ;;  %5794 = vst [vmem:[#allocation39_spill] sm:$0xff] %v3309_v10 }
  0x66   : > { %1337 = vperm.xlu1 %3084, %v154_v7   ;;  %1349 = vperm.xlu0 %3085, %v157_v12   ;;  %v3300_v7 = vrot.slane %v3171_v30, %v842_v51  ;;  %v3313_v12 = vrot.slane %v3215_v42, %v842_v51 }
  0x68   : > { %5791 = vst [vmem:[#allocation36_spill] sm:$0xff] %v3300_v7  ;;  %5795 = vst [vmem:[#allocation40_spill] sm:$0xff] %v3313_v12 }
  0x6a   : > { %1345 = vperm.xlu1 %3084, %v156_v9   ;;  %1357 = vperm.xlu0 %3085, %v159_v14   ;;  %v3306_v9 = vrot.slane %v3193_v36, %v842_v51  ;;  %v3319_v14 = vrot.slane %v3134_v21, %v1374_v63 }
  0x6c   : > { %5793 = vst [vmem:[#allocation38_spill] sm:$0xff] %v3306_v9  ;;  %5797 = vst [vmem:[#allocation42_spill] sm:$0xff] %v3319_v14 }
  0x6e   : > { %1353 = vperm.xlu1 %3084, %v158_v11   ;;  %1365 = vperm.xlu0 %3085, %v161_v16   ;;  %v2466_v11 = vsub.s32 4, %v3129_v20  ;;  %v3325_v16 = vrot.slane %v3145_v24, %v1374_v63  ;;  %v3346_v20 = vrot.slane %v3193_v36, %v1374_v63 }
  0x70   : > { %5799 = vst [vmem:[#allocation44_spill] sm:$0xff] %v3325_v16  ;;  %5806 = vst [vmem:[#allocation51_spill] sm:$0xff] %v3346_v20  ;;  %v3358_v23 = vrot.slane %v3134_v21, %v2466_v11  ;;  %v3366_v20 = vrot.slane %v3145_v24, %v2466_v11  ;;  %v3369_v17 = vrot.slane %v3150_v25, %v2466_v11 }
  0x71   : > { %v3372_v18 = vrot.slane %v3156_v27, %v2466_v11  ;;  %v3378_v21 = vrot.slane %v3166_v29, %v2466_v11  ;;  %v3390_v27 = vrot.slane %v3193_v36, %v2466_v11  ;;  %v3402_v36 = vrot.slane %v3198_v37, %v2466_v11 }
  0x72   : > { %1361 = vperm.xlu1 %3084, %v160_v13   ;;  %v3316_v13 = vrot.slane %v3220_v43, %v842_v51  ;;  %v3343_v51 = vrot.slane %v3188_v35, %v1374_v63  ;;  %5810 = vst [vmem:[#allocation55_spill] sm:$0xff] %v3358_v23  ;;  %5812 = vst [vmem:[#allocation57_spill] sm:$0xff] %v3366_v20  ;;  %v3381_v23 = vrot.slane %v3171_v30, %v2466_v11 }
  0x73   : > { %5813 = vst [vmem:[#allocation58_spill] sm:$0xff] %v3369_v17  ;;  %5814 = vst [vmem:[#allocation59_spill] sm:$0xff] %v3372_v18  ;;  %v3410_v19 = vrot.slane %v3220_v43, %v2466_v11 }
  0x74   : > { %5796 = vst [vmem:[#allocation41_spill] sm:$0xff] %v3316_v13  ;;  %5805 = vst [vmem:[#allocation50_spill] sm:$0xff] %v3343_v51  ;;  %v3363_v51 = vrot.slane %v3139_v22, %v2466_v11 }
  0x75   : > { %5816 = vst [vmem:[#allocation61_spill] sm:$0xff] %v3378_v21  ;;  %5817 = vst [vmem:[#allocation62_spill] sm:$0xff] %v3381_v23 }
  0x76   : > { %1369 = vperm.xlu1 %3084, %v162_v15   ;;  %v3322_v15 = vrot.slane %v3139_v22, %v1374_v63  ;;  %5811 = vst [vmem:[#allocation56_spill] sm:$0xff] %v3363_v51  ;;  %v3375_v63 = vrot.slane %v3161_v28, %v2466_v11  ;;  %v3384_v22 = vrot.slane %v3188_v35, %v2466_v11  ;;  %5819 = vst [vmem:[#allocation64_spill] sm:$0xff] %v3390_v27 }
  0x77   : > { %5820 = vst [vmem:[#allocation65_spill] sm:$0xff] %v3402_v36  ;;  %v3407_v51 = vrot.slane %v3215_v42, %v2466_v11  ;;  %5822 = vst [vmem:[#allocation67_spill] sm:$0xff] %v3410_v19 }
  0x78   : > { %5798 = vst [vmem:[#allocation43_spill] sm:$0xff] %v3322_v15  ;;  %5815 = vst [vmem:[#allocation60_spill] sm:$0xff] %v3375_v63 }
  0x79   : > { %5818 = vst [vmem:[#allocation63_spill] sm:$0xff] %v3384_v22  ;;  %5821 = vst [vmem:[#allocation66_spill] sm:$0xff] %v3407_v51 }
  0x93   : > { %v3360_v16 = vpop.permute.xlu1 %188  ;;  %v179_v26 = vpop.permute.xlu0 %178 }
  0x94   : > { %v308_v24 = vmul.f32 %v3174_v31, %v179_v26  ;;  %v309_v25 = vmul.f32 %v3177_v32, %v179_v26  ;;  %v310_v17 = vmul.f32 %v3180_v33, %v179_v26  ;;  %v311_v28 = vmul.f32 %v3183_v34, %v179_v26 }
  0x95   : > { %v312_v29 = vmul.f32 %v3201_v38, %v179_v26  ;;  %v313_v21 = vmul.f32 %v3223_v44, %v179_v26  ;;  %v314_v30 = vmul.f32 %v3226_v45, %v179_v26  ;;  %v315_v22 = vmul.f32 %v3235_v48, %v179_v26 }
  0x96   : > { %v316_v63 = vmul.f32 %v3245_v52, %v179_v26  ;;  %v317_v18 = vmul.f32 %v3248_v53, %v179_v26  ;;  %v318_v27 = vmul.f32 %v3251_v54, %v179_v26  ;;  %v319_v20 = vmul.f32 %v3257_v56, %v179_v26 }
  0x97   : > { %v3396_v23 = vpop.permute.xlu1 %193  ;;  %v184_v35 = vpop.permute.xlu0 %183  ;;  %v320_v15 = vmul.f32 %v3260_v57, %v179_v26  ;;  %v3414_v14 = vadd.f32 %v3204_v39, %v308_v24  ;;  %v3417_v13 = vadd.f32 %v3207_v40, %v309_v25  ;;  %v3420_v37 = vadd.f32 %v3210_v41, %v310_v17 }
  0x98   : > { %v3423_v36 = vadd.f32 %v3229_v46, %v311_v28  ;;  %v3426_v42 = vadd.f32 %v3232_v47, %v312_v29  ;;  %v3429_v43 = vadd.f32 %v3238_v49, %v313_v21  ;;  %v3432_v11 = vadd.f32 %v3241_v50, %v314_v30 }
  0x99   : > { %5823 = vst [vmem:[#allocation68_spill] sm:$0xff] %v3417_v13  ;;  %5824 = vst [vmem:[#allocation69_spill] sm:$0xff] %v3420_v37  ;;  %v3439_v25 = vadd.f32 %v3254_v55, %v315_v22  ;;  %v3442_v17 = vadd.f32 %v3263_v58, %v316_v63  ;;  %v3445_v28 = vadd.f32 %v3266_v59, %v317_v18 }
  0x9a   : > { %5825 = vst [vmem:[#allocation70_spill] sm:$0xff] %v3423_v36  ;;  %5826 = vst [vmem:[#allocation71_spill] sm:$0xff] %v3426_v42  ;;  %v321_v29 = vmul.f32 %v3174_v31, %v184_v35  ;;  %v322_v21 = vmul.f32 %v3177_v32, %v184_v35  ;;  %v323_v30 = vmul.f32 %v3180_v33, %v184_v35 }
  0x9b   : > { %5827 = vst [vmem:[#allocation72_spill] sm:$0xff] %v3429_v43  ;;  %5828 = vst [vmem:[#allocation73_spill] sm:$0xff] %v3432_v11  ;;  %v3434_v26 = vpop.permute.xlu1 %203  ;;  %v3436_v24 = vpop.permute.xlu0 %198  ;;  %v324_v51 = vmul.f32 %v3183_v34, %v184_v35  ;;  %v326_v19 = vmul.f32 %v3223_v44, %v184_v35  ;;  %v327_v22 = vmul.f32 %v3226_v45, %v184_v35 }
  0x9c   : > { %5829 = vst [vmem:[#allocation74_spill] sm:$0xff] %v3434_v26  ;;  %5830 = vst [vmem:[#allocation75_spill] sm:$0xff] %v3439_v25  ;;  %v325_v26 = vmul.f32 %v3201_v38, %v184_v35  ;;  %v328_v63 = vmul.f32 %v3235_v48, %v184_v35  ;;  %v3457_v18 = vadd.f32 %v3269_v60, %v318_v27 }
  0x9d   : > { %5831 = vst [vmem:[#allocation76_spill] sm:$0xff] %v3442_v17  ;;  %5832 = vst [vmem:[#allocation77_spill] sm:$0xff] %v3445_v28  ;;  %v329_v17 = vmul.f32 %v3245_v52, %v184_v35  ;;  %v3460_v28 = vadd.f32 %v3272_v61, %v319_v20  ;;  %v3463_v25 = vadd.f32 %v3275_v62, %v320_v15 }
  0x9e   : > { %v330_v11 = vmul.f32 %v3248_v53, %v184_v35  ;;  %v331_v36 = vmul.f32 %v3251_v54, %v184_v35  ;;  %v332_v37 = vmul.f32 %v3257_v56, %v184_v35  ;;  %v333_v13 = vmul.f32 %v3260_v57, %v184_v35 }
  0x9f   : > { %5833 = vst [vmem:[#allocation78_spill] sm:$0xff] %v3460_v28  ;;  %5834 = vst [vmem:[#allocation79_spill] sm:$0xff] %v3463_v25  ;;  %v3466_v43 = vpop.permute.xlu1 %213  ;;  %v3468_v42 = vpop.permute.xlu0 %208  ;;  %v3474_v27 = vadd.f32 %v3204_v39, %v321_v29  ;;  %v3477_v20 = vadd.f32 %v3207_v40, %v322_v21  ;;  %v3480_v15 = vadd.f32 %v3210_v41, %v323_v30 }
  0xa0   : > { %5835 = vst [vmem:[#allocation80_spill] sm:$0xff] %v3466_v43  ;;  %5836 = vst [vmem:[#allocation81_spill] sm:$0xff] %v3468_v42  ;;  %v3483_v25 = vadd.f32 %v3229_v46, %v324_v51  ;;  %v3486_v43 = vadd.f32 %v3232_v47, %v325_v26  ;;  %v3489_v28 = vadd.f32 %v3238_v49, %v326_v19 }
  0xa1   : > { %5837 = vst [vmem:[#allocation82_spill] sm:$0xff] %v3474_v27  ;;  %5838 = vst [vmem:[#allocation83_spill] sm:$0xff] %v3477_v20  ;;  %v3492_v35 = vadd.f32 %v3241_v50, %v327_v22  ;;  %v3495_v29 = vadd.f32 %v3254_v55, %v328_v63  ;;  %v3498_v21 = vadd.f32 %v3263_v58, %v329_v17 }
  0xa2   : > { %5839 = vst [vmem:[#allocation84_spill] sm:$0xff] %v3480_v15  ;;  %5840 = vst [vmem:[#allocation85_spill] sm:$0xff] %v3483_v25  ;;  %v3501_v30 = vadd.f32 %v3266_v59, %v330_v11  ;;  %v334_v51 = vmul.f32 %v3174_v31, %v3360_v16  ;;  %v335_v26 = vmul.f32 %v3177_v32, %v3360_v16 }
  0xa3   : > { %5841 = vst [vmem:[#allocation86_spill] sm:$0xff] %v3486_v43  ;;  %5842 = vst [vmem:[#allocation87_spill] sm:$0xff] %v3489_v28  ;;  %v336_v19 = vmul.f32 %v3180_v33, %v3360_v16  ;;  %v3509_v22 = vpop.permute.xlu1 %223  ;;  %v337_v17 = vmul.f32 %v3183_v34, %v3360_v16  ;;  %v338_v11 = vmul.f32 %v3201_v38, %v3360_v16 }
  0xa4   : > { %5843 = vst [vmem:[#allocation88_spill] sm:$0xff] %v3492_v35  ;;  %5844 = vst [vmem:[#allocation89_spill] sm:$0xff] %v3495_v29  ;;  %v3511_v35 = vpop.permute.xlu0 %218  ;;  %v339_v63 = vmul.f32 %v3223_v44, %v3360_v16  ;;  %v340_v28 = vmul.f32 %v3226_v45, %v3360_v16  ;;  %v3522_v43 = vadd.f32 %v3269_v60, %v331_v36 }
  0xa5   : > { %5845 = vst [vmem:[#allocation90_spill] sm:$0xff] %v3498_v21  ;;  %5846 = vst [vmem:[#allocation91_spill] sm:$0xff] %v3501_v30  ;;  %v343_v25 = vmul.f32 %v3248_v53, %v3360_v16  ;;  %v3531_v15 = vadd.f32 %v3272_v61, %v332_v37  ;;  %v3534_v20 = vadd.f32 %v3275_v62, %v333_v13 }
  0xa6   : > { %5847 = vst [vmem:[#allocation92_spill] sm:$0xff] %v3509_v22  ;;  %5848 = vst [vmem:[#allocation93_spill] sm:$0xff] %v3511_v35  ;;  %v341_v22 = vmul.f32 %v3235_v48, %v3360_v16  ;;  %v342_v35 = vmul.f32 %v3245_v52, %v3360_v16  ;;  %v344_v27 = vmul.f32 %v3251_v54, %v3360_v16 }
  0xa7   : > { %5849 = vst [vmem:[#allocation94_spill] sm:$0xff] %v3522_v43  ;;  %5850 = vst [vmem:[#allocation95_spill] sm:$0xff] %v3531_v15  ;;  %v345_v36 = vmul.f32 %v3257_v56, %v3360_v16  ;;  %v346_v43 = vmul.f32 %v3260_v57, %v3360_v16  ;;  %v3543_v30 = vadd.f32 %v3204_v39, %v334_v51  ;;  %v3551_v13 = vpop.permute.xlu1 %233 }
  0xa8   : > { %5851 = vst [vmem:[#allocation96_spill] sm:$0xff] %v3534_v20  ;;  %v3546_v21 = vadd.f32 %v3207_v40, %v335_v26  ;;  %v3549_v37 = vadd.f32 %v3210_v41, %v336_v19  ;;  %5853 = vst [vmem:[#allocation98_spill] sm:$0xff] %v3551_v13  ;;  %v3553_v20 = vpop.permute.xlu0 %228  ;;  %v3556_v15 = vadd.f32 %v3229_v46, %v337_v17 }
  0xa9   : > { %5854 = vst [vmem:[#allocation99_spill] sm:$0xff] %v3553_v20  ;;  %v3559_v29 = vadd.f32 %v3232_v47, %v338_v11  ;;  %v3562_v16 = vadd.f32 %v3238_v49, %v339_v63  ;;  %v3565_v51 = vadd.f32 %v3241_v50, %v340_v28  ;;  %v3568_v26 = vadd.f32 %v3254_v55, %v341_v22 }
  0xaa   : > { %5852 = vst [vmem:[#allocation97_spill] sm:$0xff] %v3549_v37  ;;  %5855 = vst [vmem:[#allocation100_spill] sm:$0xff] %v3556_v15  ;;  %v3571_v19 = vadd.f32 %v3263_v58, %v342_v35  ;;  %v3574_v13 = vadd.f32 %v3266_v59, %v343_v25  ;;  %v360_v17 = vmul.f32 %v3174_v31, %v3436_v24 }
  0xab   : > { %5856 = vst [vmem:[#allocation101_spill] sm:$0xff] %v3559_v29  ;;  %5857 = vst [vmem:[#allocation102_spill] sm:$0xff] %v3562_v16  ;;  %v361_v11 = vmul.f32 %v3177_v32, %v3436_v24  ;;  %v362_v63 = vmul.f32 %v3180_v33, %v3436_v24  ;;  %v363_v28 = vmul.f32 %v3183_v34, %v3436_v24 }
  0xac   : > { %5858 = vst [vmem:[#allocation103_spill] sm:$0xff] %v3565_v51  ;;  %5859 = vst [vmem:[#allocation104_spill] sm:$0xff] %v3568_v26  ;;  %v364_v22 = vmul.f32 %v3201_v38, %v3436_v24  ;;  %v365_v35 = vmul.f32 %v3223_v44, %v3436_v24  ;;  %v366_v25 = vmul.f32 %v3226_v45, %v3436_v24  ;;  %v3596_v26 = vpop.permute.xlu0 %238 }
  0xad   : > { %5860 = vst [vmem:[#allocation105_spill] sm:$0xff] %v3571_v19  ;;  %5861 = vst [vmem:[#allocation106_spill] sm:$0xff] %v3574_v13  ;;  %v367_v20 = vmul.f32 %v3235_v48, %v3436_v24  ;;  %v368_v13 = vmul.f32 %v3245_v52, %v3436_v24  ;;  %v3594_v19 = vpop.permute.xlu1 %243  ;;  %v3599_v51 = vadd.f32 %v3269_v60, %v344_v27 }
  0xae   : > { %5862 = vst [vmem:[#allocation107_spill] sm:$0xff] %v3594_v19  ;;  %5863 = vst [vmem:[#allocation108_spill] sm:$0xff] %v3596_v26  ;;  %v3602_v16 = vadd.f32 %v3272_v61, %v345_v36  ;;  %v3605_v29 = vadd.f32 %v3275_v62, %v346_v43  ;;  %v369_v15 = vmul.f32 %v3248_v53, %v3436_v24 }
  0xaf   : > { %5864 = vst [vmem:[#allocation109_spill] sm:$0xff] %v3599_v51  ;;  %v370_v37 = vmul.f32 %v3251_v54, %v3436_v24  ;;  %v371_v19 = vmul.f32 %v3257_v56, %v3436_v24  ;;  %v372_v26 = vmul.f32 %v3260_v57, %v3436_v24  ;;  %v3616_v27 = vadd.f32 %v3204_v39, %v360_v17 }
  0xb0   : > { %5865 = vst [vmem:[#allocation110_spill] sm:$0xff] %v3602_v16  ;;  %5866 = vst [vmem:[#allocation111_spill] sm:$0xff] %v3605_v29  ;;  %v3619_v36 = vadd.f32 %v3207_v40, %v361_v11  ;;  %v3622_v43 = vadd.f32 %v3210_v41, %v362_v63  ;;  %v3625_v29 = vadd.f32 %v3229_v46, %v363_v28 }
  0xb1   : > { %v3628_v16 = vadd.f32 %v3232_v47, %v364_v22  ;;  %v3631_v51 = vadd.f32 %v3238_v49, %v365_v35  ;;  %v3634_v24 = vadd.f32 %v3241_v50, %v366_v25  ;;  %v3637_v17 = vadd.f32 %v3254_v55, %v367_v20  ;;  %v3642_v63 = vpop.permute.xlu1 %253 }
  0xb2   : > { %5867 = vst [vmem:[#allocation112_spill] sm:$0xff] %v3622_v43  ;;  %v3640_v11 = vadd.f32 %v3263_v58, %v368_v13  ;;  %5868 = vst [vmem:[#allocation113_spill] sm:$0xff] %v3642_v63  ;;  %v3644_v43 = vpop.permute.xlu0 %248  ;;  %v3647_v28 = vadd.f32 %v3266_v59, %v369_v15  ;;  %v347_v22 = vmul.f32 %v3174_v31, %v3396_v23 }
  0xb3   : > { %5869 = vst [vmem:[#allocation114_spill] sm:$0xff] %v3644_v43  ;;  %v348_v35 = vmul.f32 %v3177_v32, %v3396_v23  ;;  %v349_v20 = vmul.f32 %v3180_v33, %v3396_v23  ;;  %v350_v13 = vmul.f32 %v3183_v34, %v3396_v23  ;;  %v351_v25 = vmul.f32 %v3201_v38, %v3396_v23 }
  0xb4   : > { %5870 = vst [vmem:[#allocation115_spill] sm:$0xff] %v3647_v28  ;;  %v352_v63 = vmul.f32 %v3223_v44, %v3396_v23  ;;  %v353_v15 = vmul.f32 %v3226_v45, %v3396_v23  ;;  %v354_v43 = vmul.f32 %v3235_v48, %v3396_v23  ;;  %v355_v28 = vmul.f32 %v3245_v52, %v3396_v23 }
  0xb5   : > { %v356_v33 = vmul.f32 %v3248_v53, %v3396_v23  ;;  %v357_v34 = vmul.f32 %v3251_v54, %v3396_v23  ;;  %v3672_v38 = vadd.f32 %v3269_v60, %v370_v37  ;;  %v3675_v44 = vadd.f32 %v3272_v61, %v371_v19  ;;  %v3693_v19 = vpop.permute.xlu1 %781 }
  0xb6   : > { %v3678_v45 = vadd.f32 %v3275_v62, %v372_v26  ;;  %v358_v48 = vmul.f32 %v3257_v56, %v3396_v23  ;;  %v359_v52 = vmul.f32 %v3260_v57, %v3396_v23  ;;  %v3685_v53 = vadd.f32 %v3204_v39, %v347_v22  ;;  %v5880_v39 = vld [vmem:[#allocation41_spill] sm:$0xff] }
  0xb7   : > { %5871 = vst [vmem:[#allocation116_spill] sm:$0xff] %v3675_v44  ;;  %v3688_v54 = vadd.f32 %v3207_v40, %v348_v35  ;;  %v3691_v37 = vadd.f32 %v3210_v41, %v349_v20  ;;  %v778_v44 = vpop.permute.xlu0 %777  ;;  %v3696_v26 = vadd.f32 %v3229_v46, %v350_v13  ;;  %v3699_v56 = vadd.f32 %v3232_v47, %v351_v25 }
  0xb8   : > { %v3702_v23 = vadd.f32 %v3238_v49, %v352_v63  ;;  %v3705_v22 = vadd.f32 %v3241_v50, %v353_v15  ;;  %v3708_v35 = vadd.f32 %v3254_v55, %v354_v43  ;;  %v3711_v20 = vadd.f32 %v3263_v58, %v355_v28 }
  0xb9   : > { %v3714_v41 = vadd.f32 %v3266_v59, %v356_v33  ;;  %v3717_v13 = vadd.f32 %v3269_v60, %v357_v34  ;;  %v892_v25 = vmul.f32 %v3279_v0, %v778_v44  ;;  %v893_v63 = vmul.f32 %v3282_v1, %v778_v44  ;;  %v786_v59 = vpop.permute.xlu1 %785 }
  0xba   : > { %5872 = vst [vmem:[#allocation117_spill] sm:$0xff] %v3708_v35  ;;  %5873 = vst [vmem:[#allocation118_spill] sm:$0xff] %v3711_v20  ;;  %v894_v49 = vmul.f32 %v3285_v2, %v778_v44  ;;  %v3723_v15 = vadd.f32 %v3272_v61, %v358_v48  ;;  %v895_v43 = vmul.f32 %v3288_v3, %v778_v44  ;;  %v5884_v20 = vld [vmem:[#allocation69_spill] sm:$0xff] }
  0xbb   : > { %5874 = vst [vmem:[#allocation119_spill] sm:$0xff] %v3714_v41  ;;  %5875 = vst [vmem:[#allocation120_spill] sm:$0xff] %v3717_v13  ;;  %v896_v28 = vmul.f32 %v3291_v4, %v778_v44  ;;  %v897_v58 = vmul.f32 %v3294_v5, %v778_v44  ;;  %v898_v33 = vmul.f32 %v3297_v6, %v778_v44  ;;  %v3729_v34 = vpop.permute.xlu0 %789  ;;  %v5882_v13 = vld [vmem:[#allocation68_spill] sm:$0xff] }
  0xbc   : > { %5876 = vst [vmem:[#allocation121_spill] sm:$0xff] %v3723_v15  ;;  %v899_v60 = vmul.f32 %v3300_v7, %v778_v44  ;;  %v900_v55 = vmul.f32 %v3303_v8, %v778_v44  ;;  %v901_v50 = vmul.f32 %v3306_v9, %v778_v44  ;;  %v902_v48 = vmul.f32 %v3309_v10, %v778_v44 }
  0xbd   : > { %v903_v61 = vmul.f32 %v3313_v12, %v778_v44  ;;  %v3737_v47 = vadd.f32 %v3275_v62, %v359_v52  ;;  %v3741_v46 = vmul.f32 %v3174_v31, %v3468_v42  ;;  %v3745_v40 = vmul.f32 %v3177_v32, %v3468_v42  ;;  %v5886_v52 = vld [vmem:[#allocation70_spill] sm:$0xff]  ;;  %v5888_v31 = vld [vmem:[#allocation71_spill] sm:$0xff] }
  0xbe   : > { %v904_v57 = vmul.f32 %v5880_v39, %v778_v44  ;;  %v3749_v15 = vadd.f32 %v892_v25, %v3414_v14  ;;  %v3752_v41 = vadd.f32 %v893_v63, %v5882_v13  ;;  %v3755_v35 = vadd.f32 %v894_v49, %v5884_v20  ;;  %v3769_v14 = vpop.permute.xlu1 %793  ;;  %v5894_v25 = vld [vmem:[#allocation75_spill] sm:$0xff]  ;;  %v5896_v63 = vld [vmem:[#allocation76_spill] sm:$0xff]  ;;  %v5898_v20 = vld [vmem:[#allocation77_spill] sm:$0xff] }
  0xbf   : > { %5877 = vst [vmem:[#allocation122_spill] sm:$0xff] %v3737_v47  ;;  %5878 = vst [vmem:[#allocation123_spill] sm:$0xff] %v3741_v46  ;;  %v3758_v62 = vadd.f32 %v895_v43, %v5886_v52  ;;  %v3761_v46 = vadd.f32 %v896_v28, %v5888_v31  ;;  %v5890_v47 = vld [vmem:[#allocation72_spill] sm:$0xff]  ;;  %v3772_v13 = vadd.f32 %v899_v60, %v5894_v25  ;;  %v5901_v28 = vld [vmem:[#allocation78_spill] sm:$0xff] }
  0xc0   : > { %5879 = vst [vmem:[#allocation124_spill] sm:$0xff] %v3745_v40  ;;  %5881 = vst [vmem:[#allocation125_spill] sm:$0xff] %v3749_v15  ;;  %v3764_v32 = vadd.f32 %v897_v58, %v5890_v47  ;;  %v5892_v40 = vld [vmem:[#allocation73_spill] sm:$0xff]  ;;  %v3775_v49 = vadd.f32 %v900_v55, %v5896_v63  ;;  %v3778_v43 = vadd.f32 %v901_v50, %v5898_v20  ;;  %v3792_v55 = vpop.permute.xlu0 %797  ;;  %v5911_v42 = vld [vmem:[#allocation90_spill] sm:$0xff] }
  0xc1   : > { %5883 = vst [vmem:[#allocation68_spill] sm:$0xff] %v3752_v41  ;;  %5885 = vst [vmem:[#allocation69_spill] sm:$0xff] %v3755_v35  ;;  %v3767_v44 = vadd.f32 %v898_v33, %v5892_v40  ;;  %v3781_v31 = vadd.f32 %v902_v48, %v3457_v18  ;;  %v3784_v47 = vadd.f32 %v903_v61, %v5901_v28  ;;  %v5904_v33 = vld [vmem:[#allocation79_spill] sm:$0xff]  ;;  %v5931_v41 = vld [vmem:[#allocation102_spill] sm:$0xff] }
  0xc2   : > { %5887 = vst [vmem:[#allocation70_spill] sm:$0xff] %v3758_v62  ;;  %5889 = vst [vmem:[#allocation71_spill] sm:$0xff] %v3761_v46  ;;  %v912_v40 = vmul.f32 %v3300_v7, %v3693_v19  ;;  %v913_v58 = vmul.f32 %v3303_v8, %v3693_v19  ;;  %v914_v60 = vmul.f32 %v3306_v9, %v3693_v19  ;;  %v3819_v20 = vpop.permute.xlu1 %801  ;;  %v5929_v62 = vld [vmem:[#allocation101_spill] sm:$0xff] }
  0xc3   : > { %5891 = vst [vmem:[#allocation72_spill] sm:$0xff] %v3764_v32  ;;  %5893 = vst [vmem:[#allocation73_spill] sm:$0xff] %v3767_v44  ;;  %v3795_v50 = vadd.f32 %v904_v57, %v5904_v33  ;;  %v915_v18 = vmul.f32 %v3309_v10, %v3693_v19  ;;  %v916_v61 = vmul.f32 %v3313_v12, %v3693_v19  ;;  %v5919_v32 = vld [vmem:[#allocation96_spill] sm:$0xff] }
  0xc4   : > { %5895 = vst [vmem:[#allocation75_spill] sm:$0xff] %v3772_v13  ;;  %5897 = vst [vmem:[#allocation76_spill] sm:$0xff] %v3775_v49  ;;  %v917_v48 = vmul.f32 %v5880_v39, %v3693_v19  ;;  %v3805_v52 = vmul.f32 %v3279_v0, %v3693_v19  ;;  %v3809_v25 = vmul.f32 %v3282_v1, %v3693_v19  ;;  %v5915_v49 = vld [vmem:[#allocation94_spill] sm:$0xff] }
  0xc5   : > { %5899 = vst [vmem:[#allocation77_spill] sm:$0xff] %v3778_v43  ;;  %5900 = vst [vmem:[#allocation126_spill] sm:$0xff] %v3781_v31  ;;  %v3813_v57 = vmul.f32 %v3285_v2, %v3693_v19  ;;  %v3817_v63 = vmul.f32 %v3288_v3, %v3693_v19  ;;  %v3823_v28 = vmul.f32 %v3291_v4, %v3693_v19  ;;  %v5913_v31 = vld [vmem:[#allocation91_spill] sm:$0xff] }
  0xc6   : > { %5902 = vst [vmem:[#allocation78_spill] sm:$0xff] %v3784_v47  ;;  %5903 = vst [vmem:[#allocation127_spill] sm:$0xff] %v3792_v55  ;;  %v3827_v33 = vmul.f32 %v3294_v5, %v3693_v19  ;;  %v5909_v55 = vld [vmem:[#allocation89_spill] sm:$0xff]  ;;  %v3833_v47 = vadd.f32 %v913_v58, %v5911_v42  ;;  %v3836_v43 = vadd.f32 %v914_v60, %v5913_v31 }
  0xc7   : > { %5905 = vst [vmem:[#allocation79_spill] sm:$0xff] %v3795_v50  ;;  %5906 = vst [vmem:[#allocation128_spill] sm:$0xff] %v3819_v20  ;;  %v3830_v50 = vadd.f32 %v912_v40, %v5909_v55  ;;  %v3839_v13 = vadd.f32 %v915_v18, %v5915_v49  ;;  %v5917_v20 = vld [vmem:[#allocation95_spill] sm:$0xff]  ;;  %v3845_v46 = vadd.f32 %v917_v48, %v5919_v32  ;;  %v3855_v18 = vpop.permute.xlu0 %805  ;;  %v3857_v32 = vpop.permute.xlu1 %809 }
  0xc8   : > { %5907 = vst [vmem:[#allocation129_spill] sm:$0xff] %v3823_v28  ;;  %5908 = vst [vmem:[#allocation130_spill] sm:$0xff] %v3827_v33  ;;  %v3842_v44 = vadd.f32 %v916_v61, %v5917_v20  ;;  %v918_v33 = vmul.f32 %v3279_v0, %v786_v59  ;;  %v919_v40 = vmul.f32 %v3282_v1, %v786_v59  ;;  %v5933_v28 = vld [vmem:[#allocation103_spill] sm:$0xff] }
  0xc9   : > { %5910 = vst [vmem:[#allocation89_spill] sm:$0xff] %v3830_v50  ;;  %5912 = vst [vmem:[#allocation90_spill] sm:$0xff] %v3833_v47  ;;  %v920_v55 = vmul.f32 %v3285_v2, %v786_v59  ;;  %v921_v42 = vmul.f32 %v3288_v3, %v786_v59  ;;  %v922_v31 = vmul.f32 %v3291_v4, %v786_v59  ;;  %v5925_v47 = vld [vmem:[#allocation97_spill] sm:$0xff] }
  0xca   : > { %5914 = vst [vmem:[#allocation91_spill] sm:$0xff] %v3836_v43  ;;  %5916 = vst [vmem:[#allocation94_spill] sm:$0xff] %v3839_v13  ;;  %v923_v58 = vmul.f32 %v3294_v5, %v786_v59  ;;  %v924_v49 = vmul.f32 %v3297_v6, %v786_v59  ;;  %v925_v60 = vmul.f32 %v3300_v7, %v786_v59 }
  0xcb   : > { %5918 = vst [vmem:[#allocation95_spill] sm:$0xff] %v3842_v44  ;;  %5920 = vst [vmem:[#allocation96_spill] sm:$0xff] %v3845_v46  ;;  %v926_v61 = vmul.f32 %v3303_v8, %v786_v59  ;;  %v927_v48 = vmul.f32 %v3306_v9, %v786_v59  ;;  %v928_v20 = vmul.f32 %v3309_v10, %v786_v59 }
  0xcc   : > { %5921 = vst [vmem:[#allocation131_spill] sm:$0xff] %v3855_v18  ;;  %5922 = vst [vmem:[#allocation132_spill] sm:$0xff] %v3857_v32  ;;  %v929_v46 = vmul.f32 %v3313_v12, %v786_v59  ;;  %v930_v44 = vmul.f32 %v5880_v39, %v786_v59  ;;  %v3865_v13 = vadd.f32 %v918_v33, %v3543_v30  ;;  %v5927_v32 = vld [vmem:[#allocation100_spill] sm:$0xff] }
  0xcd   : > { %v3868_v43 = vadd.f32 %v919_v40, %v3546_v21  ;;  %v3871_v18 = vadd.f32 %v920_v55, %v5925_v47  ;;  %v3874_v50 = vadd.f32 %v921_v42, %v5927_v32  ;;  %v3877_v35 = vadd.f32 %v922_v31, %v5929_v62  ;;  %v5935_v30 = vld [vmem:[#allocation104_spill] sm:$0xff]  ;;  %v5937_v21 = vld [vmem:[#allocation105_spill] sm:$0xff]  ;;  %v5939_v47 = vld [vmem:[#allocation106_spill] sm:$0xff]  ;;  %v3897_v62 = vpop.permute.xlu1 %817 }
  0xce   : > { %5923 = vst [vmem:[#allocation133_spill] sm:$0xff] %v3865_v13  ;;  %v3880_v15 = vadd.f32 %v923_v58, %v5931_v41  ;;  %v3883_v59 = vadd.f32 %v924_v49, %v5933_v28  ;;  %v3886_v33 = vadd.f32 %v925_v60, %v5935_v30  ;;  %v3889_v40 = vadd.f32 %v926_v61, %v5937_v21  ;;  %v5941_v42 = vld [vmem:[#allocation109_spill] sm:$0xff]  ;;  %v5944_v31 = vld [vmem:[#allocation110_spill] sm:$0xff]  ;;  %v5946_v58 = vld [vmem:[#allocation111_spill] sm:$0xff] }
  0xcf   : > { %5924 = vst [vmem:[#allocation134_spill] sm:$0xff] %v3868_v43  ;;  %5926 = vst [vmem:[#allocation97_spill] sm:$0xff] %v3871_v18  ;;  %v3892_v55 = vadd.f32 %v927_v48, %v5939_v47  ;;  %v3895_v32 = vadd.f32 %v928_v20, %v5941_v42  ;;  %v3900_v41 = vadd.f32 %v929_v46, %v5944_v31 }
  0xd0   : > { %5928 = vst [vmem:[#allocation100_spill] sm:$0xff] %v3874_v50  ;;  %5930 = vst [vmem:[#allocation101_spill] sm:$0xff] %v3877_v35  ;;  %v3903_v28 = vadd.f32 %v930_v44, %v5946_v58  ;;  %v944_v49 = vmul.f32 %v3279_v0, %v3769_v14  ;;  %v945_v60 = vmul.f32 %v3282_v1, %v3769_v14  ;;  %v3917_v44 = vpop.permute.xlu0 %813 }
  0xd1   : > { %5932 = vst [vmem:[#allocation102_spill] sm:$0xff] %v3880_v15  ;;  %5934 = vst [vmem:[#allocation103_spill] sm:$0xff] %v3883_v59  ;;  %v946_v61 = vmul.f32 %v3285_v2, %v3769_v14  ;;  %v947_v48 = vmul.f32 %v3288_v3, %v3769_v14  ;;  %v948_v20 = vmul.f32 %v3291_v4, %v3769_v14 }
  0xd2   : > { %5936 = vst [vmem:[#allocation104_spill] sm:$0xff] %v3886_v33  ;;  %5938 = vst [vmem:[#allocation105_spill] sm:$0xff] %v3889_v40  ;;  %v949_v46 = vmul.f32 %v3294_v5, %v3769_v14  ;;  %v950_v30 = vmul.f32 %v3297_v6, %v3769_v14  ;;  %v951_v21 = vmul.f32 %v3300_v7, %v3769_v14 }
  0xd3   : > { %5940 = vst [vmem:[#allocation106_spill] sm:$0xff] %v3892_v55  ;;  %5942 = vst [vmem:[#allocation109_spill] sm:$0xff] %v3895_v32  ;;  %v952_v47 = vmul.f32 %v3303_v8, %v3769_v14  ;;  %v953_v42 = vmul.f32 %v3306_v9, %v3769_v14  ;;  %v954_v31 = vmul.f32 %v3309_v10, %v3769_v14  ;;  %v5952_v32 = vld [vmem:[#allocation112_spill] sm:$0xff] }
  0xd4   : > { %5943 = vst [vmem:[#allocation135_spill] sm:$0xff] %v3897_v62  ;;  %5945 = vst [vmem:[#allocation110_spill] sm:$0xff] %v3900_v41  ;;  %v955_v58 = vmul.f32 %v3313_v12, %v3769_v14  ;;  %v3934_v62 = vadd.f32 %v944_v49, %v3616_v27  ;;  %v3939_v41 = vadd.f32 %v945_v60, %v3619_v36 }
  0xd5   : > { %5947 = vst [vmem:[#allocation111_spill] sm:$0xff] %v3903_v28  ;;  %5948 = vst [vmem:[#allocation136_spill] sm:$0xff] %v3917_v44  ;;  %v956_v44 = vmul.f32 %v5880_v39, %v3769_v14  ;;  %v3936_v28 = vpop.permute.xlu1 %825  ;;  %v3942_v55 = vadd.f32 %v946_v61, %v5952_v32  ;;  %v3945_v40 = vadd.f32 %v947_v48, %v3625_v29  ;;  %v5960_v32 = vld [vmem:[#allocation115_spill] sm:$0xff] }
  0xd6   : > { %5949 = vst [vmem:[#allocation137_spill] sm:$0xff] %v3934_v62  ;;  %5950 = vst [vmem:[#allocation138_spill] sm:$0xff] %v3936_v28  ;;  %v3948_v33 = vadd.f32 %v948_v20, %v3628_v16  ;;  %v3951_v59 = vadd.f32 %v949_v46, %v3631_v51  ;;  %v3954_v27 = vadd.f32 %v950_v30, %v3634_v24  ;;  %v5963_v16 = vld [vmem:[#allocation116_spill] sm:$0xff]  ;;  %v6033_v62 = vld [vmem:[#allocation59_spill] sm:$0xff] }
  0xd7   : > { %5951 = vst [vmem:[#allocation139_spill] sm:$0xff] %v3939_v41  ;;  %5953 = vst [vmem:[#allocation112_spill] sm:$0xff] %v3942_v55  ;;  %v3957_v14 = vadd.f32 %v951_v21, %v3637_v17  ;;  %v3960_v36 = vadd.f32 %v952_v47, %v3640_v11  ;;  %v3963_v49 = vadd.f32 %v953_v42, %v5960_v32 }
  0xd8   : > { %5954 = vst [vmem:[#allocation140_spill] sm:$0xff] %v3945_v40  ;;  %5955 = vst [vmem:[#allocation141_spill] sm:$0xff] %v3948_v33  ;;  %v3966_v29 = vadd.f32 %v954_v31, %v3672_v38  ;;  %v3969_v60 = vadd.f32 %v955_v58, %v5963_v16  ;;  %v3972_v51 = vadd.f32 %v956_v44, %v3678_v45  ;;  %v3982_v38 = vpop.permute.xlu0 %821  ;;  %v6029_v40 = vld [vmem:[#allocation55_spill] sm:$0xff] }
  0xd9   : > { %5956 = vst [vmem:[#allocation142_spill] sm:$0xff] %v3951_v59  ;;  %5957 = vst [vmem:[#allocation143_spill] sm:$0xff] %v3954_v27  ;;  %v931_v24 = vmul.f32 %v3279_v0, %v3729_v34  ;;  %v932_v17 = vmul.f32 %v3282_v1, %v3729_v34  ;;  %v933_v11 = vmul.f32 %v3285_v2, %v3729_v34  ;;  %v3984_v48 = vpop.permute.xlu1 %833  ;;  %v6002_v1 = vld [vmem:[#allocation52_spill] sm:$0xff] }
  0xda   : > { %5958 = vst [vmem:[#allocation144_spill] sm:$0xff] %v3957_v14  ;;  %5959 = vst [vmem:[#allocation145_spill] sm:$0xff] %v3960_v36  ;;  %v934_v61 = vmul.f32 %v3288_v3, %v3729_v34  ;;  %v935_v45 = vmul.f32 %v3291_v4, %v3729_v34  ;;  %v936_v20 = vmul.f32 %v3294_v5, %v3729_v34  ;;  %v5999_v5 = vld [vmem:[#allocation50_spill] sm:$0xff]  ;;  %v6000_v3 = vld [vmem:[#allocation85_spill] sm:$0xff] }
  0xdb   : > { %5961 = vst [vmem:[#allocation115_spill] sm:$0xff] %v3963_v49  ;;  %5962 = vst [vmem:[#allocation146_spill] sm:$0xff] %v3966_v29  ;;  %v937_v46 = vmul.f32 %v3297_v6, %v3729_v34  ;;  %v938_v44 = vmul.f32 %v3300_v7, %v3729_v34  ;;  %v939_v30 = vmul.f32 %v3303_v8, %v3729_v34  ;;  %v5998_v7 = vld [vmem:[#allocation49_spill] sm:$0xff]  ;;  %v6013_v29 = vld [vmem:[#allocation87_spill] sm:$0xff] }
  0xdc   : > { %5964 = vst [vmem:[#allocation116_spill] sm:$0xff] %v3969_v60  ;;  %5965 = vst [vmem:[#allocation147_spill] sm:$0xff] %v3972_v51  ;;  %v940_v21 = vmul.f32 %v3306_v9, %v3729_v34  ;;  %v941_v47 = vmul.f32 %v3309_v10, %v3729_v34  ;;  %v942_v42 = vmul.f32 %v3313_v12, %v3729_v34  ;;  %v5992_v12 = vld [vmem:[#allocation83_spill] sm:$0xff]  ;;  %v5994_v10 = vld [vmem:[#allocation46_spill] sm:$0xff] }
  0xdd   : > { %5966 = vst [vmem:[#allocation148_spill] sm:$0xff] %v3982_v38  ;;  %5967 = vst [vmem:[#allocation149_spill] sm:$0xff] %v3984_v48  ;;  %v943_v31 = vmul.f32 %v5880_v39, %v3729_v34  ;;  %v4005_v58 = vadd.f32 %v931_v24, %v3685_v53  ;;  %v4008_v32 = vadd.f32 %v932_v17, %v3688_v54  ;;  %v5975_v53 = vld [vmem:[#allocation117_spill] sm:$0xff]  ;;  %v5977_v54 = vld [vmem:[#allocation118_spill] sm:$0xff] }
  0xde   : > { %v4011_v16 = vadd.f32 %v933_v11, %v3691_v37  ;;  %v4014_v48 = vadd.f32 %v934_v61, %v3696_v26  ;;  %v4017_v38 = vadd.f32 %v935_v45, %v3699_v56  ;;  %v4020_v28 = vadd.f32 %v936_v20, %v3702_v23  ;;  %v5979_v37 = vld [vmem:[#allocation119_spill] sm:$0xff]  ;;  %v5981_v26 = vld [vmem:[#allocation120_spill] sm:$0xff]  ;;  %v1310_v56 = vpop.permute.xlu1 %1309  ;;  %v5983_v45 = vld [vmem:[#allocation82_spill] sm:$0xff] }
  0xdf   : > { %5968 = vst [vmem:[#allocation150_spill] sm:$0xff] %v4005_v58  ;;  %5969 = vst [vmem:[#allocation151_spill] sm:$0xff] %v4008_v32  ;;  %v4023_v34 = vadd.f32 %v937_v46, %v3705_v22  ;;  %v4026_v24 = vadd.f32 %v938_v44, %v5975_v53  ;;  %v4029_v17 = vadd.f32 %v939_v30, %v5977_v54  ;;  %v5984_v20 = vld [vmem:[#allocation121_spill] sm:$0xff]  ;;  %v5986_v44 = vld [vmem:[#allocation122_spill] sm:$0xff]  ;;  %v4049_v53 = vpop.permute.xlu0 %829 }
  0xe0   : > { %5970 = vst [vmem:[#allocation152_spill] sm:$0xff] %v4011_v16  ;;  %5971 = vst [vmem:[#allocation153_spill] sm:$0xff] %v4014_v48  ;;  %v4032_v11 = vadd.f32 %v940_v21, %v5979_v37  ;;  %v4035_v61 = vadd.f32 %v941_v47, %v5981_v26  ;;  %v911_v23 = vmul.f32 %v3297_v6, %v3693_v19  ;;  %v5989_v21 = vld [vmem:[#allocation42_spill] sm:$0xff]  ;;  %v5990_v47 = vld [vmem:[#allocation43_spill] sm:$0xff] }
  0xe1   : > { %5972 = vst [vmem:[#allocation154_spill] sm:$0xff] %v4017_v38  ;;  %5973 = vst [vmem:[#allocation155_spill] sm:$0xff] %v4020_v28  ;;  %v4041_v22 = vadd.f32 %v3805_v52, %v5983_v45  ;;  %v4044_v46 = vadd.f32 %v942_v42, %v5984_v20  ;;  %v4047_v30 = vadd.f32 %v943_v31, %v5986_v44  ;;  %v5991_v26 = vld [vmem:[#allocation44_spill] sm:$0xff]  ;;  %v5993_v52 = vld [vmem:[#allocation45_spill] sm:$0xff] }
  0xe2   : > { %5974 = vst [vmem:[#allocation156_spill] sm:$0xff] %v4023_v34  ;;  %5976 = vst [vmem:[#allocation117_spill] sm:$0xff] %v4026_v24  ;;  %v1424_v54 = vmul.f32 %v5989_v21, %v1310_v56  ;;  %v1425_v37 = vmul.f32 %v5990_v47, %v1310_v56  ;;  %v1426_v39 = vmul.f32 %v5991_v26, %v1310_v56  ;;  %v5995_v20 = vld [vmem:[#allocation47_spill] sm:$0xff]  ;;  %v5996_v31 = vld [vmem:[#allocation84_spill] sm:$0xff] }
  0xe3   : > { %5978 = vst [vmem:[#allocation118_spill] sm:$0xff] %v4029_v17  ;;  %5980 = vst [vmem:[#allocation119_spill] sm:$0xff] %v4032_v11  ;;  %v4056_v19 = vadd.f32 %v3809_v25, %v5992_v12  ;;  %v1427_v45 = vmul.f32 %v5993_v52, %v1310_v56  ;;  %v1428_v42 = vmul.f32 %v5994_v10, %v1310_v56  ;;  %v6001_v25 = vld [vmem:[#allocation51_spill] sm:$0xff]  ;;  %v6005_v11 = vld [vmem:[#allocation129_spill] sm:$0xff] }
  0xe4   : > { %5982 = vst [vmem:[#allocation120_spill] sm:$0xff] %v4035_v61  ;;  %5985 = vst [vmem:[#allocation82_spill] sm:$0xff] %v4044_v46  ;;  %v1429_v9 = vmul.f32 %v5995_v20, %v1310_v56  ;;  %v4063_v44 = vadd.f32 %v3813_v57, %v5996_v31  ;;  %v1431_v6 = vmul.f32 %v5998_v7, %v1310_v56  ;;  %v6004_v61 = vld [vmem:[#allocation86_spill] sm:$0xff]  ;;  %v6007_v24 = vld [vmem:[#allocation125_spill] sm:$0xff] }
  0xe5   : > { %5987 = vst [vmem:[#allocation121_spill] sm:$0xff] %v4047_v30  ;;  %5988 = vst [vmem:[#allocation122_spill] sm:$0xff] %v4049_v53  ;;  %v5997_v53 = vld [vmem:[#allocation48_spill] sm:$0xff]  ;;  %v1432_v4 = vmul.f32 %v5999_v5, %v1310_v56  ;;  %v4070_v12 = vadd.f32 %v3817_v63, %v6000_v3  ;;  %v1433_v2 = vmul.f32 %v6001_v25, %v1310_v56  ;;  %v6003_v30 = vld [vmem:[#allocation53_spill] sm:$0xff] }
  0xe6   : > { %v1430_v8 = vmul.f32 %v5997_v53, %v1310_v56  ;;  %v1434_v0 = vmul.f32 %v6002_v1, %v1310_v56  ;;  %v1435_v46 = vmul.f32 %v6003_v30, %v1310_v56  ;;  %v4077_v57 = vadd.f32 %v6005_v11, %v6004_v61  ;;  %v6006_v31 = vld [vmem:[#allocation54_spill] sm:$0xff]  ;;  %v6008_v28 = vld [vmem:[#allocation68_spill] sm:$0xff]  ;;  %v6009_v48 = vld [vmem:[#allocation69_spill] sm:$0xff]  ;;  %v4090_v11 = vpop.permute.xlu0 %837 }
  0xe7   : > { %v1436_v17 = vmul.f32 %v6006_v31, %v1310_v56  ;;  %v1632_v34 = vadd.f32 %v1424_v54, %v6007_v24  ;;  %v1633_v38 = vadd.f32 %v1425_v37, %v6008_v28  ;;  %v1634_v16 = vadd.f32 %v1426_v39, %v6009_v48  ;;  %v6010_v3 = vld [vmem:[#allocation70_spill] sm:$0xff]  ;;  %v6011_v32 = vld [vmem:[#allocation71_spill] sm:$0xff]  ;;  %v6012_v51 = vld [vmem:[#allocation72_spill] sm:$0xff]  ;;  %6015 = vst [vmem:[#allocation44_spill] sm:$0xff] %v4090_v11 }
  0xe8   : > { %v1635_v63 = vadd.f32 %v1427_v45, %v6010_v3  ;;  %v1636_v58 = vadd.f32 %v1428_v42, %v6011_v32  ;;  %v1637_v60 = vadd.f32 %v1429_v9, %v6012_v51  ;;  %v6014_v49 = vld [vmem:[#allocation130_spill] sm:$0xff]  ;;  %v6016_v61 = vld [vmem:[#allocation73_spill] sm:$0xff]  ;;  %v6017_v14 = vld [vmem:[#allocation75_spill] sm:$0xff] }
  0xe9   : > { %v4088_v36 = vadd.f32 %v6014_v49, %v6013_v29  ;;  %v1638_v56 = vadd.f32 %v1430_v8, %v6016_v61  ;;  %v1639_v24 = vadd.f32 %v1431_v6, %v6017_v14  ;;  %v6018_v54 = vld [vmem:[#allocation76_spill] sm:$0xff]  ;;  %v6020_v48 = vld [vmem:[#allocation77_spill] sm:$0xff]  ;;  %v6021_v32 = vld [vmem:[#allocation126_spill] sm:$0xff]  ;;  %vm1840_vm0 = vcmp.ge.f32.partialorder %v1632_v34, 0.0 }
  0xea   : > { %v1640_v28 = vadd.f32 %v1432_v4, %v6018_v54  ;;  %v6019_v37 = vld [vmem:[#allocation88_spill] sm:$0xff]  ;;  %v1641_v45 = vadd.f32 %v1433_v2, %v6020_v48  ;;  %v1642_v42 = vadd.f32 %v1434_v0, %v6021_v32  ;;  %v6022_v9 = vld [vmem:[#allocation78_spill] sm:$0xff]  ;;  %v6023_v3 = vld [vmem:[#allocation81_spill] sm:$0xff]  ;;  %vm1841_vm1 = vcmp.ge.f32.partialorder %v1633_v38, 0.0  ;;  %v1314_v8 = vpop.permute.xlu0 %1313 }
  0xeb   : > { %v4096_v39 = vadd.f32 %v911_v23, %v6019_v37  ;;  %v1643_v51 = vadd.f32 %v1435_v46, %v6022_v9  ;;  %v6024_v49 = vld [vmem:[#allocation5_spill] sm:$0xff]  ;;  %v6026_v11 = vld [vmem:[#allocation79_spill] sm:$0xff]  ;;  %vm1842_vm2 = vcmp.ge.f32.partialorder %v1634_v16, 0.0  ;;  %vm1843_vm3 = vcmp.ge.f32.partialorder %v1635_v63, 0.0 }
  0xec   : > { %v4103_v29 = vmul.f32 %v6024_v49, %v6023_v3  ;;  %v1644_v27 = vadd.f32 %v1436_v17, %v6026_v11  ;;  %vm1844_vm4 = vcmp.ge.f32.partialorder %v1636_v58, 0.0  ;;  %vm1845_vm5 = vcmp.ge.f32.partialorder %v1637_v60, 0.0  ;;  %v6027_v49 = vld [vmem:[#allocation6_spill] sm:$0xff] }
  0xed   : > { %v2048_v4 = vmul.f32 0.01, %v1632_v34  ;;  %vm1846_vm6 = vcmp.ge.f32.partialorder %v1638_v56, 0.0  ;;  %vm1847_vm7 = vcmp.ge.f32.partialorder %v1639_v24, 0.0  ;;  %vm1848_vm8 = vcmp.ge.f32.partialorder %v1640_v28, 0.0 }
  0xee   : > { %6025 = vst [vmem:[#allocation83_spill] sm:$0xff] %v4103_v29  ;;  %v2049_v2 = vmul.f32 0.01, %v1633_v38  ;;  %vm1849_vm9 = vcmp.ge.f32.partialorder %v1641_v45, 0.0  ;;  %vm1850_vm10 = vcmp.ge.f32.partialorder %v1642_v42, 0.0  ;;  %v4110_v29 = vmul.f32 %v6027_v49, %v6023_v3 }
  0xef   : > { %v2050_v0 = vmul.f32 0.01, %v1634_v16  ;;  %v2051_v6 = vmul.f32 0.01, %v1635_v63  ;;  %v2052_v14 = vmul.f32 0.01, %v1636_v58  ;;  %v2256_v17 = vsel %vm1840_vm0, %v1632_v34, %v2048_v4 }
  0xf0   : > { %v2053_v23 = vmul.f32 0.01, %v1637_v60  ;;  %v2054_v46 = vmul.f32 0.01, %v1638_v56  ;;  %v2055_v11 = vmul.f32 0.01, %v1639_v24  ;;  %v2257_v37 = vsel %vm1841_vm1, %v1633_v38, %v2049_v2 }
  0xf1   : > { %v2056_v61 = vmul.f32 0.01, %v1640_v28  ;;  %v2057_v54 = vmul.f32 0.01, %v1641_v45  ;;  %v2058_v48 = vmul.f32 0.01, %v1642_v42  ;;  %v2258_v59 = vsel %vm1842_vm2, %v1634_v16, %v2050_v0 }
  0xf2   : > { %v2059_v32 = vmul.f32 0.01, %v1643_v51  ;;  %v2060_v9 = vmul.f32 0.01, %v1644_v27  ;;  %6028 = vst [vmem:[#allocation45_spill] sm:$0xff] %v4110_v29  ;;  %vm1851_vm11 = vcmp.ge.f32.partialorder %v1643_v51, 0.0  ;;  %v1437_v33 = vmul.f32 %v5989_v21, %v1314_v8 }
  0xf3   : > { %vm1852_vm12 = vcmp.ge.f32.partialorder %v1644_v27, 0.0  ;;  %v2259_v34 = vsel %vm1843_vm3, %v1635_v63, %v2051_v6  ;;  %v2260_v4 = vsel %vm1844_vm4, %v1636_v58, %v2052_v14  ;;  %v2516_v55 = vmul.f32 %v6029_v40, %v2256_v17  ;;  %v6030_v38 = vld [vmem:[#allocation56_spill] sm:$0xff]  ;;  %v6031_v6 = vld [vmem:[#allocation57_spill] sm:$0xff]  ;;  %v6032_v17 = vld [vmem:[#allocation58_spill] sm:$0xff] }
  0xf4   : > { %v2517_v2 = vmul.f32 %v6030_v38, %v2257_v37  ;;  %v2261_v41 = vsel %vm1845_vm5, %v1637_v60, %v2053_v23  ;;  %v2262_v49 = vsel %vm1846_vm6, %v1638_v56, %v2054_v46  ;;  %v2263_v29 = vsel %vm1847_vm7, %v1639_v24, %v2055_v11  ;;  %v6034_v23 = vld [vmem:[#allocation60_spill] sm:$0xff]  ;;  %v6035_v46 = vld [vmem:[#allocation61_spill] sm:$0xff]  ;;  %v6036_v11 = vld [vmem:[#allocation62_spill] sm:$0xff] }
  0xf5   : > { %v2264_v3 = vsel %vm1848_vm8, %v1640_v28, %v2056_v61  ;;  %v2265_v16 = vsel %vm1849_vm9, %v1641_v45, %v2057_v54  ;;  %v2266_v0 = vsel %vm1850_vm10, %v1642_v42, %v2058_v48  ;;  %v4124_v63 = vsel %vm1851_vm11, %v1643_v51, %v2059_v32  ;;  %v6037_v61 = vld [vmem:[#allocation63_spill] sm:$0xff]  ;;  %v6038_v54 = vld [vmem:[#allocation64_spill] sm:$0xff]  ;;  %v6039_v51 = vld [vmem:[#allocation65_spill] sm:$0xff] }
  0xf6   : > { %v2268_v58 = vsel %vm1852_vm12, %v1644_v27, %v2060_v9  ;;  %v2518_v14 = vmul.f32 %v6031_v6, %v2258_v59  ;;  %v2519_v37 = vmul.f32 %v6032_v17, %v2259_v34  ;;  %v2520_v15 = vmul.f32 %v6033_v62, %v2260_v4  ;;  %v6040_v9 = vld [vmem:[#allocation67_spill] sm:$0xff] }
  0xf7   : > { %v2724_v60 = vadd.f32 %v2517_v2, %v2516_v55  ;;  %v2521_v56 = vmul.f32 %v6034_v23, %v2261_v41  ;;  %v2522_v24 = vmul.f32 %v6035_v46, %v2262_v49  ;;  %v2523_v28 = vmul.f32 %v6036_v11, %v2263_v29 }
  0xf8   : > { %v2524_v45 = vmul.f32 %v6037_v61, %v2264_v3  ;;  %v2525_v42 = vmul.f32 %v6038_v54, %v2265_v16  ;;  %v4135_v48 = vmul.f32 %v6039_v51, %v2266_v0  ;;  %v1438_v59 = vmul.f32 %v5990_v47, %v1314_v8 }
  0xf9   : > { %v2725_v27 = vadd.f32 %v2724_v60, %v2518_v14  ;;  %v1439_v32 = vmul.f32 %v5991_v26, %v1314_v8  ;;  %v1440_v55 = vmul.f32 %v5993_v52, %v1314_v8  ;;  %v1441_v41 = vmul.f32 %v5994_v10, %v1314_v8 }
  0xfa   : > { %v1442_v49 = vmul.f32 %v5995_v20, %v1314_v8  ;;  %v2528_v29 = vmul.f32 %v6040_v9, %v2268_v58  ;;  %v1443_v3 = vmul.f32 %v5997_v53, %v1314_v8  ;;  %v1444_v4 = vmul.f32 %v5998_v7, %v1314_v8 }
  0xfb   : > { %v2726_v34 = vadd.f32 %v2725_v27, %v2519_v37  ;;  %v1445_v2 = vmul.f32 %v5999_v5, %v1314_v8  ;;  %v1446_v16 = vmul.f32 %v6001_v25, %v1314_v8  ;;  %v1447_v0 = vmul.f32 %v6002_v1, %v1314_v8 }
  0xfc   : > { %v1448_v14 = vmul.f32 %v6003_v30, %v1314_v8  ;;  %v1449_v35 = vmul.f32 %v6006_v31, %v1314_v8  ;;  %v1645_v50 = vadd.f32 %v1437_v33, %v4041_v22  ;;  %v1646_v58 = vadd.f32 %v1438_v59, %v4056_v19  ;;  %v6042_v8 = vld [vmem:[#allocation90_spill] sm:$0xff]  ;;  %v6043_v33 = vld [vmem:[#allocation91_spill] sm:$0xff] }
  0xfd   : > { %v2727_v60 = vadd.f32 %v2726_v34, %v2520_v15  ;;  %v1647_v37 = vadd.f32 %v1439_v32, %v4063_v44  ;;  %v1648_v27 = vadd.f32 %v1440_v55, %v4070_v12  ;;  %v1649_v18 = vadd.f32 %v1441_v41, %v4077_v57  ;;  %v6041_v15 = vld [vmem:[#allocation89_spill] sm:$0xff]  ;;  %v6044_v19 = vld [vmem:[#allocation94_spill] sm:$0xff]  ;;  %v6045_v44 = vld [vmem:[#allocation95_spill] sm:$0xff] }
  0xfe   : > { %v1650_v43 = vadd.f32 %v1442_v49, %v4088_v36  ;;  %v2736_v1 = vsel %vm2735_vm13, %v2528_v29, 0.0  ;;  %v1651_v30 = vadd.f32 %v1443_v3, %v4096_v39  ;;  %v1652_v34 = vadd.f32 %v1444_v4, %v6041_v15  ;;  %v6046_v55 = vld [vmem:[#allocation96_spill] sm:$0xff] }
  0xff   : > { %v2728_v13 = vadd.f32 %v2727_v60, %v2521_v56  ;;  %v1653_v31 = vadd.f32 %v1445_v2, %v6042_v8  ;;  %v1654_v22 = vadd.f32 %v1446_v16, %v6043_v33  ;;  %v1655_v59 = vadd.f32 %v1447_v0, %v6044_v19 }
 0x100   : > { %v1656_v32 = vadd.f32 %v1448_v14, %v6045_v44  ;;  %v1657_v57 = vadd.f32 %v1449_v35, %v6046_v55  ;;  %vm1853_vm14 = vcmp.ge.f32.partialorder %v1645_v50, 0.0  ;;  %vm1854_vm15 = vcmp.ge.f32.partialorder %v1646_v58, 0.0  ;;  %v6047_v35 = vld [vmem:[#allocation66_spill] sm:$0xff] }
 0x101   : > { %v2729_v12 = vadd.f32 %v2728_v13, %v2522_v24  ;;  %vm1855_vm0 = vcmp.ge.f32.partialorder %v1647_v37, 0.0  ;;  %vm1856_vm1 = vcmp.ge.f32.partialorder %v1648_v27, 0.0  ;;  %vm1857_vm2 = vcmp.ge.f32.partialorder %v1649_v18, 0.0  ;;  %v1318_v24 = vpop.permute.xlu1 %1317 }
 0x102   : > { %vm1858_vm3 = vcmp.ge.f32.partialorder %v1650_v43, 0.0  ;;  %vm1859_vm4 = vcmp.ge.f32.partialorder %v1651_v30, 0.0  ;;  %vm1860_vm5 = vcmp.ge.f32.partialorder %v1652_v34, 0.0  ;;  %v2061_v39 = vmul.f32 0.01, %v1645_v50 }
 0x103   : > { %v2730_v36 = vadd.f32 %v2729_v12, %v2523_v28  ;;  %vm1861_vm6 = vcmp.ge.f32.partialorder %v1653_v31, 0.0  ;;  %vm1862_vm7 = vcmp.ge.f32.partialorder %v1654_v22, 0.0  ;;  %vm1863_vm8 = vcmp.ge.f32.partialorder %v1655_v59, 0.0 }
 0x104   : > { %v2062_v56 = vmul.f32 0.01, %v1646_v58  ;;  %vm1864_vm9 = vcmp.ge.f32.partialorder %v1656_v32, 0.0  ;;  %vm1865_vm10 = vcmp.ge.f32.partialorder %v1657_v57, 0.0  ;;  %v2063_v13 = vmul.f32 0.01, %v1647_v37 }
 0x105   : > { %v2731_v41 = vadd.f32 %v2730_v36, %v2524_v45  ;;  %v2527_v49 = vmul.f32 %v6047_v35, %v4124_v63  ;;  %v2064_v29 = vmul.f32 0.01, %v1648_v27  ;;  %v2065_v3 = vmul.f32 0.01, %v1649_v18 }
 0x106   : > { %v2066_v4 = vmul.f32 0.01, %v1650_v43  ;;  %v2067_v28 = vmul.f32 0.01, %v1651_v30  ;;  %v2068_v16 = vmul.f32 0.01, %v1652_v34  ;;  %v2269_v0 = vsel %vm1853_vm14, %v1645_v50, %v2061_v39 }
 0x107   : > { %v2732_v2 = vadd.f32 %v2731_v41, %v2525_v42  ;;  %v2069_v14 = vmul.f32 0.01, %v1653_v31  ;;  %v2070_v60 = vmul.f32 0.01, %v1654_v22  ;;  %v2071_v15 = vmul.f32 0.01, %v1655_v59 }
 0x108   : > { %v2270_v45 = vsel %vm1854_vm15, %v1646_v58, %v2062_v56  ;;  %v2072_v33 = vmul.f32 0.01, %v1656_v32  ;;  %v2073_v19 = vmul.f32 0.01, %v1657_v57  ;;  %v1450_v44 = vmul.f32 %v5989_v21, %v1318_v24 }
 0x109   : > { %v2733_v8 = vadd.f32 %v2732_v2, %v4135_v48  ;;  %v2271_v63 = vsel %vm1855_vm0, %v1647_v37, %v2063_v13  ;;  %v2272_v12 = vsel %vm1856_vm1, %v1648_v27, %v2064_v29  ;;  %v2273_v42 = vsel %vm1857_vm2, %v1649_v18, %v2065_v3 }
 0x10a   : > { %v2529_v55 = vmul.f32 %v6029_v40, %v2269_v0  ;;  %v2274_v36 = vsel %vm1858_vm3, %v1650_v43, %v2066_v4  ;;  %v2275_v39 = vsel %vm1859_vm4, %v1651_v30, %v2067_v28  ;;  %v2530_v58 = vmul.f32 %v6030_v38, %v2270_v45 }
 0x10b   : > { %v2734_v50 = vadd.f32 %v2733_v8, %v2527_v49  ;;  %v2276_v48 = vsel %vm1860_vm5, %v1652_v34, %v2068_v16  ;;  %v2277_v56 = vsel %vm1861_vm6, %v1653_v31, %v2069_v14  ;;  %v2278_v41 = vsel %vm1862_vm7, %v1654_v22, %v2070_v60 }
 0x10c   : > { %v2279_v37 = vsel %vm1863_vm8, %v1655_v59, %v2071_v15  ;;  %v4182_v18 = vsel %vm1864_vm9, %v1656_v32, %v2072_v33  ;;  %v2281_v13 = vsel %vm1865_vm10, %v1657_v57, %v2073_v19  ;;  %v2531_v43 = vmul.f32 %v6031_v6, %v2271_v63  ;;  %v6048_v33 = vld [vmem:[#allocation52_spill] sm:$0xff]  ;;  %v6049_v63 = vld [vmem:[#allocation53_spill] sm:$0xff] }
 0x10d   : > { %v2737_v27 = vadd.f32 %v2736_v1, %v2734_v50  ;;  %v2532_v30 = vmul.f32 %v6032_v17, %v2272_v12  ;;  %v2533_v49 = vmul.f32 %v6033_v62, %v2273_v42  ;;  %v2534_v34 = vmul.f32 %v6034_v23, %v2274_v36  ;;  %v6050_v42 = vld [vmem:[#allocation54_spill] sm:$0xff]  ;;  %v6051_v36 = vld [vmem:[#allocation133_spill] sm:$0xff] }
 0x10e   : > { %v2740_v29 = vadd.f32 %v2530_v58, %v2529_v55  ;;  %v2535_v31 = vmul.f32 %v6035_v46, %v2275_v39  ;;  %v2536_v22 = vmul.f32 %v6036_v11, %v2276_v48  ;;  %v2537_v1 = vmul.f32 %v6037_v61, %v2277_v56  ;;  %v6052_v58 = vld [vmem:[#allocation134_spill] sm:$0xff]  ;;  %v6053_v56 = vld [vmem:[#allocation97_spill] sm:$0xff] }
 0x10f   : > { %2738 = vadd.xlane.f32.xlu0 %v2737_v27  ;;  %v2538_v59 = vmul.f32 %v6038_v54, %v2278_v41  ;;  %v4194_v32 = vmul.f32 %v6039_v51, %v2279_v37  ;;  %v1451_v3 = vmul.f32 %v5990_v47, %v1318_v24  ;;  %v1452_v4 = vmul.f32 %v5991_v26, %v1318_v24  ;;  %v6054_v27 = vld [vmem:[#allocation100_spill] sm:$0xff] }
 0x110   : > { %v2741_v57 = vadd.f32 %v2740_v29, %v2531_v43  ;;  %v2541_v2 = vmul.f32 %v6040_v9, %v2281_v13  ;;  %v1453_v28 = vmul.f32 %v5993_v52, %v1318_v24  ;;  %v1454_v16 = vmul.f32 %v5994_v10, %v1318_v24  ;;  %v6055_v43 = vld [vmem:[#allocation101_spill] sm:$0xff]  ;;  %v6056_v29 = vld [vmem:[#allocation102_spill] sm:$0xff] }
 0x111   : > { %v1455_v0 = vmul.f32 %v5995_v20, %v1318_v24  ;;  %v1456_v60 = vmul.f32 %v5997_v53, %v1318_v24  ;;  %v1457_v15 = vmul.f32 %v5998_v7, %v1318_v24  ;;  %v1458_v45 = vmul.f32 %v5999_v5, %v1318_v24  ;;  %v6058_v5 = vld [vmem:[#allocation104_spill] sm:$0xff] }
 0x112   : > { %v2742_v14 = vadd.f32 %v2741_v57, %v2532_v30  ;;  %v1459_v8 = vmul.f32 %v6001_v25, %v1318_v24  ;;  %v1460_v19 = vmul.f32 %v6048_v33, %v1318_v24  ;;  %v1461_v12 = vmul.f32 %v6049_v63, %v1318_v24  ;;  %v6057_v25 = vld [vmem:[#allocation103_spill] sm:$0xff] }
 0x113   : > { %v1462_v55 = vmul.f32 %v6050_v42, %v1318_v24  ;;  %v1658_v39 = vadd.f32 %v1450_v44, %v6051_v36  ;;  %v1659_v48 = vadd.f32 %v1451_v3, %v6052_v58  ;;  %v1660_v41 = vadd.f32 %v1452_v4, %v6053_v56  ;;  %v6060_v44 = vld [vmem:[#allocation106_spill] sm:$0xff]  ;;  %v6061_v3 = vld [vmem:[#allocation109_spill] sm:$0xff] }
 0x114   : > { %v2743_v50 = vadd.f32 %v2742_v14, %v2533_v49  ;;  %v2751_v37 = vsel %vm2735_vm13, %v2541_v2, 0.0  ;;  %v1661_v13 = vadd.f32 %v1453_v28, %v6054_v27  ;;  %v1662_v30 = vadd.f32 %v1454_v16, %v6055_v43  ;;  %v6059_v49 = vld [vmem:[#allocation105_spill] sm:$0xff]  ;;  %v6062_v4 = vld [vmem:[#allocation110_spill] sm:$0xff]  ;;  %v6063_v2 = vld [vmem:[#allocation111_spill] sm:$0xff] }
 0x115   : > { %v1663_v57 = vadd.f32 %v1455_v0, %v6056_v29  ;;  %v1664_v63 = vadd.f32 %v1456_v60, %v6057_v25  ;;  %v1665_v24 = vadd.f32 %v1457_v15, %v6058_v5  ;;  %v1666_v14 = vadd.f32 %v1458_v45, %v6059_v49 }
 0x116   : > { %v2744_v33 = vadd.f32 %v2743_v50, %v2534_v34  ;;  %v1667_v36 = vadd.f32 %v1459_v8, %v6060_v44  ;;  %v1668_v58 = vadd.f32 %v1460_v19, %v6061_v3  ;;  %v1669_v56 = vadd.f32 %v1461_v12, %v6062_v4 }
 0x117   : > { %v1670_v42 = vadd.f32 %v1462_v55, %v6063_v2  ;;  %vm1866_vm11 = vcmp.ge.f32.partialorder %v1658_v39, 0.0  ;;  %vm1867_vm12 = vcmp.ge.f32.partialorder %v1659_v48, 0.0  ;;  %vm1868_vm14 = vcmp.ge.f32.partialorder %v1660_v41, 0.0 }
 0x118   : > { %v2745_v28 = vadd.f32 %v2744_v33, %v2535_v31  ;;  %vm1869_vm15 = vcmp.ge.f32.partialorder %v1661_v13, 0.0  ;;  %vm1870_vm0 = vcmp.ge.f32.partialorder %v1662_v30, 0.0  ;;  %vm1871_vm1 = vcmp.ge.f32.partialorder %v1663_v57, 0.0 }
 0x119   : > { %v2074_v25 = vmul.f32 0.01, %v1658_v39  ;;  %vm1872_vm2 = vcmp.ge.f32.partialorder %v1664_v63, 0.0  ;;  %vm1873_vm3 = vcmp.ge.f32.partialorder %v1665_v24, 0.0  ;;  %v2075_v5 = vmul.f32 0.01, %v1659_v48 }
 0x11a   : > { %v2746_v34 = vadd.f32 %v2745_v28, %v2536_v22  ;;  %vm1874_vm4 = vcmp.ge.f32.partialorder %v1666_v14, 0.0  ;;  %vm1875_vm5 = vcmp.ge.f32.partialorder %v1667_v36, 0.0  ;;  %vm1876_vm6 = vcmp.ge.f32.partialorder %v1668_v58, 0.0  ;;  %v1326_v28 = vpop.permute.xlu0 %1325 }
 0x11b   : > { %vm1877_vm7 = vcmp.ge.f32.partialorder %v1669_v56, 0.0  ;;  %v2076_v0 = vmul.f32 0.01, %v1660_v41  ;;  %v2077_v60 = vmul.f32 0.01, %v1661_v13  ;;  %v2282_v33 = vsel %vm1866_vm11, %v1658_v39, %v2074_v25 }
 0x11c   : > { %v2747_v16 = vadd.f32 %v2746_v34, %v2537_v1  ;;  %v2078_v15 = vmul.f32 0.01, %v1662_v30  ;;  %v2079_v31 = vmul.f32 0.01, %v1663_v57  ;;  %v2080_v45 = vmul.f32 0.01, %v1664_v63 }
 0x11d   : > { %v2081_v8 = vmul.f32 0.01, %v1665_v24  ;;  %v2082_v12 = vmul.f32 0.01, %v1666_v14  ;;  %v2083_v55 = vmul.f32 0.01, %v1667_v36  ;;  %v2283_v22 = vsel %vm1867_vm12, %v1659_v48, %v2075_v5 }
 0x11e   : > { %v2748_v19 = vadd.f32 %v2747_v16, %v2538_v59  ;;  %v2540_v50 = vmul.f32 %v6047_v35, %v4182_v18  ;;  %v2084_v27 = vmul.f32 0.01, %v1668_v58  ;;  %v2085_v43 = vmul.f32 0.01, %v1669_v56 }
 0x11f   : > { %v2086_v29 = vmul.f32 0.01, %v1670_v42  ;;  %vm1878_vm8 = vcmp.ge.f32.partialorder %v1670_v42, 0.0  ;;  %v2284_v49 = vsel %vm1868_vm14, %v1660_v41, %v2076_v0  ;;  %v2285_v44 = vsel %vm1869_vm15, %v1661_v13, %v2077_v60 }
 0x120   : > { %v2749_v1 = vadd.f32 %v2748_v19, %v4194_v32  ;;  %v2286_v39 = vsel %vm1870_vm0, %v1662_v30, %v2078_v15  ;;  %v2287_v59 = vsel %vm1871_vm1, %v1663_v57, %v2079_v31  ;;  %v2542_v3 = vmul.f32 %v6029_v40, %v2282_v33 }
 0x121   : > { %v2543_v48 = vmul.f32 %v6030_v38, %v2283_v22  ;;  %v2288_v18 = vsel %vm1872_vm2, %v1664_v63, %v2080_v45  ;;  %v2289_v2 = vsel %vm1873_vm3, %v1665_v24, %v2081_v8  ;;  %v2290_v32 = vsel %vm1874_vm4, %v1666_v14, %v2082_v12  ;;  %v6064_v22 = vld [vmem:[#allocation50_spill] sm:$0xff] }
 0x122   : > { %v2750_v4 = vadd.f32 %v2749_v1, %v2540_v50  ;;  %v2291_v41 = vsel %vm1875_vm5, %v1667_v36, %v2083_v55  ;;  %v2292_v13 = vsel %vm1876_vm6, %v1668_v58, %v2084_v27  ;;  %v4240_v30 = vsel %vm1877_vm7, %v1669_v56, %v2085_v43  ;;  %v6065_v27 = vld [vmem:[#allocation51_spill] sm:$0xff] }
 0x123   : > { %v2294_v57 = vsel %vm1878_vm8, %v1670_v42, %v2086_v29  ;;  %v2544_v34 = vmul.f32 %v6031_v6, %v2284_v49  ;;  %v2545_v5 = vmul.f32 %v6032_v17, %v2285_v44  ;;  %v2546_v63 = vmul.f32 %v6033_v62, %v2286_v39  ;;  %v6066_v29 = vld [vmem:[#allocation52_spill] sm:$0xff]  ;;  %v6067_v49 = vld [vmem:[#allocation53_spill] sm:$0xff]  ;;  %v6068_v39 = vld [vmem:[#allocation54_spill] sm:$0xff] }
 0x124   : > { %v2752_v25 = vadd.f32 %v2751_v37, %v2750_v4  ;;  %v2547_v24 = vmul.f32 %v6034_v23, %v2287_v59  ;;  %v2548_v14 = vmul.f32 %v6035_v46, %v2288_v18  ;;  %v2549_v16 = vmul.f32 %v6036_v11, %v2289_v2  ;;  %v6070_v18 = vld [vmem:[#allocation139_spill] sm:$0xff] }
 0x125   : > { %v2755_v36 = vadd.f32 %v2543_v48, %v2542_v3  ;;  %v2550_v58 = vmul.f32 %v6037_v61, %v2290_v32  ;;  %v2551_v56 = vmul.f32 %v6038_v54, %v2291_v41  ;;  %v4251_v42 = vmul.f32 %v6039_v51, %v2292_v13  ;;  %v6069_v3 = vld [vmem:[#allocation137_spill] sm:$0xff]  ;;  %v6071_v32 = vld [vmem:[#allocation112_spill] sm:$0xff] }
 0x126   : > { %2753 = vadd.xlane.f32.xlu1 %v2752_v25  ;;  %v1476_v37 = vmul.f32 %v5989_v21, %v1326_v28  ;;  %v1477_v60 = vmul.f32 %v5990_v47, %v1326_v28  ;;  %v1478_v15 = vmul.f32 %v5991_v26, %v1326_v28  ;;  %v1479_v31 = vmul.f32 %v5993_v52, %v1326_v28  ;;  %v6072_v13 = vld [vmem:[#allocation140_spill] sm:$0xff] }
 0x127   : > { %v2756_v0 = vadd.f32 %v2755_v36, %v2544_v34  ;;  %v2554_v45 = vmul.f32 %v6040_v9, %v2294_v57  ;;  %v1480_v8 = vmul.f32 %v5994_v10, %v1326_v28  ;;  %v1481_v33 = vmul.f32 %v5995_v20, %v1326_v28  ;;  %v6073_v34 = vld [vmem:[#allocation141_spill] sm:$0xff]  ;;  %v6074_v36 = vld [vmem:[#allocation142_spill] sm:$0xff] }
 0x128   : > { %v1482_v19 = vmul.f32 %v5997_v53, %v1326_v28  ;;  %v1483_v55 = vmul.f32 %v5998_v7, %v1326_v28  ;;  %v1484_v50 = vmul.f32 %v6064_v22, %v1326_v28  ;;  %v1485_v43 = vmul.f32 %v6065_v27, %v1326_v28  ;;  %v6076_v22 = vld [vmem:[#allocation144_spill] sm:$0xff] }
 0x129   : > { %v2757_v12 = vadd.f32 %v2756_v0, %v2545_v5  ;;  %v1486_v1 = vmul.f32 %v6066_v29, %v1326_v28  ;;  %v1487_v44 = vmul.f32 %v6067_v49, %v1326_v28  ;;  %v1488_v59 = vmul.f32 %v6068_v39, %v1326_v28  ;;  %v6075_v29 = vld [vmem:[#allocation143_spill] sm:$0xff]  ;;  %v6077_v39 = vld [vmem:[#allocation145_spill] sm:$0xff] }
 0x12a   : > { %v1684_v48 = vadd.f32 %v1476_v37, %v6069_v3  ;;  %v1685_v2 = vadd.f32 %v1477_v60, %v6070_v18  ;;  %v1686_v41 = vadd.f32 %v1478_v15, %v6071_v32  ;;  %v1687_v57 = vadd.f32 %v1479_v31, %v6072_v13  ;;  %v6079_v60 = vld [vmem:[#allocation146_spill] sm:$0xff]  ;;  %v6080_v15 = vld [vmem:[#allocation116_spill] sm:$0xff]  ;;  %v6081_v31 = vld [vmem:[#allocation147_spill] sm:$0xff] }
 0x12b   : > { %v2758_v4 = vadd.f32 %v2757_v12, %v2546_v63  ;;  %v2766_v25 = vsel %vm2735_vm13, %v2554_v45, 0.0  ;;  %v1688_v5 = vadd.f32 %v1480_v8, %v6073_v34  ;;  %v1689_v0 = vadd.f32 %v1481_v33, %v6074_v36  ;;  %v6078_v63 = vld [vmem:[#allocation115_spill] sm:$0xff] }
 0x12c   : > { %v1690_v27 = vadd.f32 %v1482_v19, %v6075_v29  ;;  %v1691_v28 = vadd.f32 %v1483_v55, %v6076_v22  ;;  %v1692_v37 = vadd.f32 %v1484_v50, %v6077_v39  ;;  %v1693_v12 = vadd.f32 %v1485_v43, %v6078_v63 }
 0x12d   : > { %v2759_v49 = vadd.f32 %v2758_v4, %v2547_v24  ;;  %v1694_v3 = vadd.f32 %v1486_v1, %v6079_v60  ;;  %v1695_v18 = vadd.f32 %v1487_v44, %v6080_v15  ;;  %v1696_v32 = vadd.f32 %v1488_v59, %v6081_v31 }
 0x12e   : > { %vm1892_vm9 = vcmp.ge.f32.partialorder %v1684_v48, 0.0  ;;  %vm1893_vm10 = vcmp.ge.f32.partialorder %v1685_v2, 0.0  ;;  %vm1894_vm11 = vcmp.ge.f32.partialorder %v1686_v41, 0.0  ;;  %vm1895_vm12 = vcmp.ge.f32.partialorder %v1687_v57, 0.0 }
 0x12f   : > { %v2760_v45 = vadd.f32 %v2759_v49, %v2548_v14  ;;  %vm1896_vm14 = vcmp.ge.f32.partialorder %v1688_v5, 0.0  ;;  %vm1897_vm15 = vcmp.ge.f32.partialorder %v1689_v0, 0.0  ;;  %vm1898_vm0 = vcmp.ge.f32.partialorder %v1690_v27, 0.0 }
 0x130   : > { %v2100_v24 = vmul.f32 0.01, %v1684_v48  ;;  %vm1899_vm1 = vcmp.ge.f32.partialorder %v1691_v28, 0.0  ;;  %vm1900_vm2 = vcmp.ge.f32.partialorder %v1692_v37, 0.0  ;;  %v2101_v33 = vmul.f32 0.01, %v1685_v2 }
 0x131   : > { %v2761_v8 = vadd.f32 %v2760_v45, %v2549_v16  ;;  %vm1901_vm3 = vcmp.ge.f32.partialorder %v1693_v12, 0.0  ;;  %vm1902_vm4 = vcmp.ge.f32.partialorder %v1694_v3, 0.0  ;;  %vm1903_vm5 = vcmp.ge.f32.partialorder %v1695_v18, 0.0 }
 0x132   : > { %vm1904_vm6 = vcmp.ge.f32.partialorder %v1696_v32, 0.0  ;;  %v2102_v55 = vmul.f32 0.01, %v1686_v41  ;;  %v2103_v22 = vmul.f32 0.01, %v1687_v57  ;;  %v2308_v1 = vsel %vm1892_vm9, %v1684_v48, %v2100_v24 }
 0x133   : > { %v2762_v19 = vadd.f32 %v2761_v8, %v2550_v58  ;;  %v2104_v50 = vmul.f32 0.01, %v1688_v5  ;;  %v2105_v14 = vmul.f32 0.01, %v1689_v0  ;;  %v2106_v43 = vmul.f32 0.01, %v1690_v27 }
 0x134   : > { %v2107_v29 = vmul.f32 0.01, %v1691_v28  ;;  %v2108_v44 = vmul.f32 0.01, %v1692_v37  ;;  %v2109_v39 = vmul.f32 0.01, %v1693_v12  ;;  %v2309_v16 = vsel %vm1893_vm10, %v1685_v2, %v2101_v33 }
 0x135   : > { %v2763_v49 = vadd.f32 %v2762_v19, %v2551_v56  ;;  %v2553_v59 = vmul.f32 %v6047_v35, %v4240_v30  ;;  %v2110_v4 = vmul.f32 0.01, %v1694_v3  ;;  %v2111_v13 = vmul.f32 0.01, %v1695_v18 }
 0x136   : > { %v2112_v34 = vmul.f32 0.01, %v1696_v32  ;;  %v2310_v36 = vsel %vm1894_vm11, %v1686_v41, %v2102_v55  ;;  %v2311_v63 = vsel %vm1895_vm12, %v1687_v57, %v2103_v22  ;;  %v2312_v60 = vsel %vm1896_vm14, %v1688_v5, %v2104_v50  ;;  %v1322_v41 = vpop.permute.xlu1 %1321 }
 0x137   : > { %v2764_v58 = vadd.f32 %v2763_v49, %v4251_v42  ;;  %v2313_v56 = vsel %vm1897_vm15, %v1689_v0, %v2105_v14  ;;  %v2314_v48 = vsel %vm1898_vm0, %v1690_v27, %v2106_v43  ;;  %v2568_v2 = vmul.f32 %v6029_v40, %v2308_v1 }
 0x138   : > { %v2569_v15 = vmul.f32 %v6030_v38, %v2309_v16  ;;  %v2315_v31 = vsel %vm1899_vm1, %v1691_v28, %v2107_v29  ;;  %v2316_v45 = vsel %vm1900_vm2, %v1692_v37, %v2108_v44  ;;  %v2317_v42 = vsel %vm1901_vm3, %v1693_v12, %v2109_v39  ;;  %v6082_v16 = vld [vmem:[#allocation50_spill] sm:$0xff] }
 0x139   : > { %v2765_v30 = vadd.f32 %v2764_v58, %v2553_v59  ;;  %v2318_v57 = vsel %vm1902_vm4, %v1694_v3, %v2110_v4  ;;  %v4298_v5 = vsel %vm1903_vm5, %v1695_v18, %v2111_v13  ;;  %v2320_v0 = vsel %vm1904_vm6, %v1696_v32, %v2112_v34  ;;  %v6083_v4 = vld [vmem:[#allocation51_spill] sm:$0xff]  ;;  %v6084_v34 = vld [vmem:[#allocation52_spill] sm:$0xff] }
 0x13a   : > { %v2570_v27 = vmul.f32 %v6031_v6, %v2310_v36  ;;  %v2571_v8 = vmul.f32 %v6032_v17, %v2311_v63  ;;  %v2572_v33 = vmul.f32 %v6033_v62, %v2312_v60  ;;  %v2785_v28 = vadd.f32 %v2569_v15, %v2568_v2  ;;  %v6085_v63 = vld [vmem:[#allocation53_spill] sm:$0xff]  ;;  %v6087_v2 = vld [vmem:[#allocation150_spill] sm:$0xff] }
 0x13b   : > { %v2767_v24 = vadd.f32 %v2766_v25, %v2765_v30  ;;  %v2573_v37 = vmul.f32 %v6034_v23, %v2313_v56  ;;  %v2574_v12 = vmul.f32 %v6035_v46, %v2314_v48  ;;  %v2575_v19 = vmul.f32 %v6036_v11, %v2315_v31  ;;  %v6086_v56 = vld [vmem:[#allocation54_spill] sm:$0xff]  ;;  %v6088_v30 = vld [vmem:[#allocation151_spill] sm:$0xff] }
 0x13c   : > { %v2576_v3 = vmul.f32 %v6037_v61, %v2316_v45  ;;  %v2577_v18 = vmul.f32 %v6038_v54, %v2317_v42  ;;  %v4310_v32 = vmul.f32 %v6039_v51, %v2318_v57  ;;  %v2786_v25 = vadd.f32 %v2785_v28, %v2570_v27  ;;  %v6089_v45 = vld [vmem:[#allocation152_spill] sm:$0xff]  ;;  %v6090_v57 = vld [vmem:[#allocation153_spill] sm:$0xff]  ;;  %v6092_v28 = vld [vmem:[#allocation155_spill] sm:$0xff] }
 0x13d   : > { %2768 = vadd.xlane.f32.xlu0 %v2767_v24  ;;  %v1463_v55 = vmul.f32 %v5989_v21, %v1322_v41  ;;  %v1464_v22 = vmul.f32 %v5990_v47, %v1322_v41  ;;  %v1465_v50 = vmul.f32 %v5991_v26, %v1322_v41  ;;  %v1466_v14 = vmul.f32 %v5993_v52, %v1322_v41 }
 0x13e   : > { %v1467_v43 = vmul.f32 %v5994_v10, %v1322_v41  ;;  %v2787_v29 = vadd.f32 %v2786_v25, %v2571_v8  ;;  %v1468_v1 = vmul.f32 %v5995_v20, %v1322_v41  ;;  %v1469_v49 = vmul.f32 %v5997_v53, %v1322_v41 }
 0x13f   : > { %v1470_v44 = vmul.f32 %v5998_v7, %v1322_v41  ;;  %v2580_v39 = vmul.f32 %v6040_v9, %v2320_v0  ;;  %v1471_v59 = vmul.f32 %v6082_v16, %v1322_v41  ;;  %v1472_v13 = vmul.f32 %v6083_v4, %v1322_v41  ;;  %v6091_v0 = vld [vmem:[#allocation154_spill] sm:$0xff]  ;;  %v6093_v4 = vld [vmem:[#allocation156_spill] sm:$0xff] }
 0x140   : > { %v1473_v58 = vmul.f32 %v6084_v34, %v1322_v41  ;;  %v2788_v36 = vadd.f32 %v2787_v29, %v2572_v33  ;;  %v1474_v60 = vmul.f32 %v6085_v63, %v1322_v41  ;;  %v1475_v48 = vmul.f32 %v6086_v56, %v1322_v41  ;;  %v6094_v33 = vld [vmem:[#allocation117_spill] sm:$0xff]  ;;  %v6095_v41 = vld [vmem:[#allocation118_spill] sm:$0xff] }
 0x141   : > { %v1671_v15 = vadd.f32 %v1463_v55, %v6087_v2  ;;  %v1672_v31 = vadd.f32 %v1464_v22, %v6088_v30  ;;  %v1673_v42 = vadd.f32 %v1465_v50, %v6089_v45  ;;  %v1674_v27 = vadd.f32 %v1466_v14, %v6090_v57  ;;  %v6096_v55 = vld [vmem:[#allocation119_spill] sm:$0xff]  ;;  %v6097_v22 = vld [vmem:[#allocation120_spill] sm:$0xff]  ;;  %v6098_v45 = vld [vmem:[#allocation82_spill] sm:$0xff] }
 0x142   : > { %v1675_v24 = vadd.f32 %v1467_v43, %v6091_v0  ;;  %v2789_v8 = vadd.f32 %v2788_v36, %v2573_v37  ;;  %v1676_v25 = vadd.f32 %v1468_v1, %v6092_v28  ;;  %v1677_v34 = vadd.f32 %v1469_v49, %v6093_v4  ;;  %v6099_v57 = vld [vmem:[#allocation121_spill] sm:$0xff] }
 0x143   : > { %v1678_v29 = vadd.f32 %v1470_v44, %v6094_v33  ;;  %v2796_v63 = vsel %vm2735_vm13, %v2580_v39, 0.0  ;;  %v1679_v56 = vadd.f32 %v1471_v59, %v6095_v41  ;;  %v1680_v2 = vadd.f32 %v1472_v13, %v6096_v55 }
 0x144   : > { %v1681_v30 = vadd.f32 %v1473_v58, %v6097_v22  ;;  %v2790_v50 = vadd.f32 %v2789_v8, %v2574_v12  ;;  %v1682_v14 = vadd.f32 %v1474_v60, %v6098_v45  ;;  %v1683_v43 = vadd.f32 %v1475_v48, %v6099_v57  ;;  %v6100_v22 = vld [vmem:[#allocation81_spill] sm:$0xff] }
 0x145   : > { %vm1879_vm7 = vcmp.ge.f32.partialorder %v1671_v15, 0.0  ;;  %vm1880_vm8 = vcmp.ge.f32.partialorder %v1672_v31, 0.0  ;;  %vm1881_vm9 = vcmp.ge.f32.partialorder %v1673_v42, 0.0  ;;  %vm1882_vm10 = vcmp.ge.f32.partialorder %v1674_v27, 0.0 }
 0x146   : > { %vm1883_vm11 = vcmp.ge.f32.partialorder %v1675_v24, 0.0  ;;  %v2791_v37 = vadd.f32 %v2790_v50, %v2575_v19  ;;  %vm1884_vm12 = vcmp.ge.f32.partialorder %v1676_v25, 0.0  ;;  %vm1885_vm14 = vcmp.ge.f32.partialorder %v1677_v34, 0.0  ;;  %v6101_v50 = vld [vmem:[#allocation7_spill] sm:$0xff] }
 0x147   : > { %vm1886_vm15 = vcmp.ge.f32.partialorder %v1678_v29, 0.0  ;;  %vm1887_vm0 = vcmp.ge.f32.partialorder %v1679_v56, 0.0  ;;  %vm1888_vm1 = vcmp.ge.f32.partialorder %v1680_v2, 0.0  ;;  %v2087_v1 = vmul.f32 0.01, %v1671_v15 }
 0x148   : > { %v2088_v49 = vmul.f32 0.01, %v1672_v31  ;;  %v2792_v44 = vadd.f32 %v2791_v37, %v2576_v3  ;;  %vm1889_vm2 = vcmp.ge.f32.partialorder %v1681_v30, 0.0  ;;  %vm1890_vm3 = vcmp.ge.f32.partialorder %v1682_v14, 0.0 }
 0x149   : > { %vm1891_vm4 = vcmp.ge.f32.partialorder %v1683_v43, 0.0  ;;  %v2579_v12 = vmul.f32 %v6047_v35, %v4298_v5  ;;  %v2089_v39 = vmul.f32 0.01, %v1673_v42  ;;  %v2090_v59 = vmul.f32 0.01, %v1674_v27 }
 0x14a   : > { %v2091_v4 = vmul.f32 0.01, %v1675_v24  ;;  %v2793_v13 = vadd.f32 %v2792_v44, %v2577_v18  ;;  %v2092_v58 = vmul.f32 0.01, %v1676_v25  ;;  %v2093_v19 = vmul.f32 0.01, %v1677_v34 }
 0x14b   : > { %v2094_v36 = vmul.f32 0.01, %v1678_v29  ;;  %v2095_v60 = vmul.f32 0.01, %v1679_v56  ;;  %v2099_v48 = vmul.f32 0.01, %v1683_v43  ;;  %v2295_v0 = vsel %vm1879_vm7, %v1671_v15, %v2087_v1 }
 0x14c   : > { %v2296_v8 = vsel %vm1880_vm8, %v1672_v31, %v2088_v49  ;;  %v2794_v3 = vadd.f32 %v2793_v13, %v4310_v32  ;;  %v2096_v28 = vmul.f32 0.01, %v1680_v2  ;;  %v2097_v33 = vmul.f32 0.01, %v1681_v30 }
 0x14d   : > { %v2098_v41 = vmul.f32 0.01, %v1682_v14  ;;  %v2297_v5 = vsel %vm1881_vm9, %v1673_v42, %v2089_v39  ;;  %v2298_v55 = vsel %vm1882_vm10, %v1674_v27, %v2090_v59  ;;  %v2299_v18 = vsel %vm1883_vm11, %v1675_v24, %v2091_v4 }
 0x14e   : > { %v390_v45 = vmul.f32 %v6101_v50, %v6100_v22  ;;  %v2795_v57 = vadd.f32 %v2794_v3, %v2579_v12  ;;  %v2300_v37 = vsel %vm1884_vm12, %v1676_v25, %v2092_v58  ;;  %v2555_v15 = vmul.f32 %v6029_v40, %v2295_v0  ;;  %v6102_v58 = vld [vmem:[#allocation11_spill] sm:$0xff]  ;;  %v6105_v3 = vld [vmem:[#allocation18_spill] sm:$0xff] }
 0x14f   : > { %v2556_v31 = vmul.f32 %v6030_v38, %v2296_v8  ;;  %v2301_v32 = vsel %vm1885_vm14, %v1677_v34, %v2093_v19  ;;  %v2302_v1 = vsel %vm1886_vm15, %v1678_v29, %v2094_v36  ;;  %v2303_v42 = vsel %vm1887_vm0, %v1679_v56, %v2095_v60  ;;  %v6103_v36 = vld [vmem:[#allocation12_spill] sm:$0xff]  ;;  %v6125_v50 = vld [vmem:[#allocation27_spill] sm:$0xff] }
 0x150   : > { %v2307_v27 = vsel %vm1891_vm4, %v1683_v43, %v2099_v48  ;;  %v2797_v49 = vadd.f32 %v2796_v63, %v2795_v57  ;;  %v2304_v24 = vsel %vm1888_vm1, %v1680_v2, %v2096_v28  ;;  %v2305_v44 = vsel %vm1889_vm2, %v1681_v30, %v2097_v33  ;;  %v6104_v48 = vld [vmem:[#allocation15_spill] sm:$0xff]  ;;  %v6108_v57 = vld [vmem:[#allocation22_spill] sm:$0xff] }
 0x151   : > { %v2306_v12 = vsel %vm1890_vm3, %v1682_v14, %v2098_v41  ;;  %v2557_v25 = vmul.f32 %v6031_v6, %v2297_v5  ;;  %v2558_v39 = vmul.f32 %v6032_v17, %v2298_v55  ;;  %v2559_v59 = vmul.f32 %v6033_v62, %v2299_v18  ;;  %v6106_v33 = vld [vmem:[#allocation19_spill] sm:$0xff]  ;;  %v6107_v5 = vld [vmem:[#allocation20_spill] sm:$0xff] }
 0x152   : > { %v2770_v34 = vadd.f32 %v2556_v31, %v2555_v15  ;;  %2798 = vadd.xlane.f32.xlu1 %v2797_v49  ;;  %v2560_v29 = vmul.f32 %v6034_v23, %v2300_v37  ;;  %v2561_v56 = vmul.f32 %v6035_v46, %v2301_v32  ;;  %v2562_v63 = vmul.f32 %v6036_v11, %v2302_v1  ;;  %v6109_v15 = vld [vmem:[#allocation23_spill] sm:$0xff]  ;;  %v6111_v1 = vld [vmem:[#allocation8_spill] sm:$0xff] }
 0x153   : > { %v2567_v2 = vmul.f32 %v6040_v9, %v2307_v27  ;;  %v2563_v30 = vmul.f32 %v6037_v61, %v2303_v42  ;;  %v2564_v14 = vmul.f32 %v6038_v54, %v2304_v24  ;;  %v4370_v43 = vmul.f32 %v6039_v51, %v2305_v44  ;;  %v6110_v32 = vld [vmem:[#allocation123_spill] sm:$0xff]  ;;  %v6112_v49 = vld [vmem:[#allocation124_spill] sm:$0xff]  ;;  %v6113_v24 = vld [vmem:[#allocation9_spill] sm:$0xff] }
 0x154   : > { %v2771_v4 = vadd.f32 %v2770_v34, %v2557_v25  ;;  %v4373_v13 = vmul.f32 %v6047_v35, %v2306_v12  ;;  %v391_v19 = vmul.f32 %v6102_v58, %v6100_v22  ;;  %v392_v60 = vmul.f32 %v6103_v36, %v6100_v22  ;;  %v6114_v12 = vld [vmem:[#allocation83_spill] sm:$0xff]  ;;  %v6115_v25 = vld [vmem:[#allocation10_spill] sm:$0xff]  ;;  %v6116_v34 = vld [vmem:[#allocation45_spill] sm:$0xff] }
 0x155   : > { %v393_v0 = vmul.f32 %v6104_v48, %v6100_v22  ;;  %v394_v28 = vmul.f32 %v6105_v3, %v6100_v22  ;;  %v395_v41 = vmul.f32 %v6106_v33, %v6100_v22  ;;  %v396_v55 = vmul.f32 %v6107_v5, %v6100_v22  ;;  %v6118_v5 = vld [vmem:[#allocation14_spill] sm:$0xff]  ;;  %v6119_v3 = vld [vmem:[#allocation16_spill] sm:$0xff]  ;;  %v6120_v48 = vld [vmem:[#allocation17_spill] sm:$0xff] }
 0x156   : > { %v2772_v8 = vadd.f32 %v2771_v4, %v2558_v39  ;;  %v4388_v18 = vsel %vm2735_vm13, %v2567_v2, 0.0  ;;  %v397_v37 = vmul.f32 %v6108_v57, %v6100_v22  ;;  %v398_v31 = vmul.f32 %v6109_v15, %v6100_v22  ;;  %v6117_v4 = vld [vmem:[#allocation13_spill] sm:$0xff] }
 0x157   : > { %v646_v42 = vadd.f32 %v6111_v1, %v6110_v32  ;;  %v647_v44 = vadd.f32 %v6113_v24, %v6112_v49  ;;  %v648_v39 = vadd.f32 %v6115_v25, %v6114_v12  ;;  %v649_v2 = vadd.f32 %v6117_v4, %v6116_v34  ;;  %v6121_v22 = vld [vmem:[#allocation21_spill] sm:$0xff]  ;;  %v6122_v32 = vld [vmem:[#allocation24_spill] sm:$0xff]  ;;  %v6124_v49 = vld [vmem:[#allocation26_spill] sm:$0xff]  ;;  %v1334_v4 = vpop.permute.xlu0 %1333 }
 0x158   : > { %v2773_v27 = vadd.f32 %v2772_v8, %v2559_v59  ;;  %v650_v33 = vadd.f32 %v6118_v5, %v390_v45  ;;  %v651_v57 = vadd.f32 %v6119_v3, %v391_v19  ;;  %v652_v36 = vadd.f32 %v6120_v48, %v392_v60  ;;  %v6123_v8 = vld [vmem:[#allocation25_spill] sm:$0xff]  ;;  %v6126_v25 = vld [vmem:[#allocation128_spill] sm:$0xff]  ;;  %v6128_v45 = vld [vmem:[#allocation30_spill] sm:$0xff] }
 0x159   : > { %v653_v15 = vadd.f32 %v6121_v22, %v393_v0  ;;  %v654_v59 = vadd.f32 %v6122_v32, %v394_v28  ;;  %v655_v1 = vadd.f32 %v6123_v8, %v395_v41  ;;  %v656_v24 = vadd.f32 %v6124_v49, %v396_v55  ;;  %v6127_v9 = vld [vmem:[#allocation29_spill] sm:$0xff]  ;;  %v6129_v19 = vld [vmem:[#allocation31_spill] sm:$0xff]  ;;  %v6132_v55 = vld [vmem:[#allocation34_spill] sm:$0xff] }
 0x15a   : > { %v2774_v58 = vadd.f32 %v2773_v27, %v2560_v29  ;;  %v657_v12 = vadd.f32 %v6125_v50, %v397_v37  ;;  %v970_v34 = vmul.f32 %v6127_v9, %v6126_v25  ;;  %v971_v5 = vmul.f32 %v6128_v45, %v6126_v25  ;;  %v6130_v29 = vld [vmem:[#allocation32_spill] sm:$0xff]  ;;  %v6131_v28 = vld [vmem:[#allocation33_spill] sm:$0xff]  ;;  %v6133_v37 = vld [vmem:[#allocation35_spill] sm:$0xff] }
 0x15b   : > { %v972_v60 = vmul.f32 %v6129_v19, %v6126_v25  ;;  %v973_v0 = vmul.f32 %v6130_v29, %v6126_v25  ;;  %v974_v41 = vmul.f32 %v6131_v28, %v6126_v25  ;;  %v975_v27 = vmul.f32 %v6132_v55, %v6126_v25  ;;  %v6134_v9 = vld [vmem:[#allocation36_spill] sm:$0xff]  ;;  %v6135_v45 = vld [vmem:[#allocation37_spill] sm:$0xff]  ;;  %v6138_v28 = vld [vmem:[#allocation39_spill] sm:$0xff] }
 0x15c   : > { %v2775_v48 = vadd.f32 %v2774_v58, %v2561_v56  ;;  %v976_v50 = vmul.f32 %v6133_v37, %v6126_v25  ;;  %v977_v49 = vmul.f32 %v6134_v9, %v6126_v25  ;;  %v978_v8 = vmul.f32 %v6135_v45, %v6126_v25  ;;  %v6136_v56 = vld [vmem:[#allocation38_spill] sm:$0xff]  ;;  %v6137_v29 = vld [vmem:[#allocation28_spill] sm:$0xff]  ;;  %v6140_v37 = vld [vmem:[#allocation41_spill] sm:$0xff] }
 0x15d   : > { %v979_v58 = vmul.f32 %v6136_v56, %v6126_v25  ;;  %v658_v32 = vadd.f32 %v6137_v29, %v398_v31  ;;  %v980_v22 = vmul.f32 %v6138_v28, %v6126_v25  ;;  %v6139_v55 = vld [vmem:[#allocation40_spill] sm:$0xff]  ;;  %v982_v35 = vmul.f32 %v6140_v37, %v6126_v25 }
 0x15e   : > { %v2776_v19 = vadd.f32 %v2775_v48, %v2562_v63  ;;  %v981_v3 = vmul.f32 %v6139_v55, %v6126_v25  ;;  %v1178_v9 = vadd.f32 %v970_v34, %v646_v42  ;;  %v1179_v51 = vadd.f32 %v971_v5, %v647_v44  ;;  %v6142_v42 = vld [vmem:[#allocation52_spill] sm:$0xff] }
 0x15f   : > { %v1180_v54 = vadd.f32 %v972_v60, %v648_v39  ;;  %v1181_v61 = vadd.f32 %v973_v0, %v649_v2  ;;  %v1182_v11 = vadd.f32 %v974_v41, %v650_v33  ;;  %v1183_v56 = vadd.f32 %v975_v27, %v651_v57  ;;  %v6144_v2 = vld [vmem:[#allocation54_spill] sm:$0xff] }
 0x160   : > { %v2777_v45 = vadd.f32 %v2776_v19, %v2563_v30  ;;  %v1184_v63 = vadd.f32 %v976_v50, %v652_v36  ;;  %v1185_v48 = vadd.f32 %v977_v49, %v653_v15  ;;  %v1186_v31 = vadd.f32 %v978_v8, %v654_v59  ;;  %v6141_v15 = vld [vmem:[#allocation51_spill] sm:$0xff] }
 0x161   : > { %v1187_v29 = vadd.f32 %v979_v58, %v655_v1  ;;  %v1188_v28 = vadd.f32 %v980_v22, %v656_v24  ;;  %v1502_v23 = vmul.f32 %v5989_v21, %v1334_v4  ;;  %v1503_v55 = vmul.f32 %v5990_v47, %v1334_v4  ;;  %v6143_v24 = vld [vmem:[#allocation53_spill] sm:$0xff] }
 0x162   : > { %v2778_v46 = vadd.f32 %v2777_v45, %v2564_v14  ;;  %v1189_v62 = vadd.f32 %v981_v3, %v657_v12  ;;  %v1504_v25 = vmul.f32 %v5991_v26, %v1334_v4  ;;  %v1505_v5 = vmul.f32 %v5993_v52, %v1334_v4 }
 0x163   : > { %v1506_v30 = vmul.f32 %v5994_v10, %v1334_v4  ;;  %v1507_v50 = vmul.f32 %v5995_v20, %v1334_v4  ;;  %v1508_v36 = vmul.f32 %v5997_v53, %v1334_v4  ;;  %v1509_v14 = vmul.f32 %v5998_v7, %v1334_v4 }
 0x164   : > { %v2779_v33 = vadd.f32 %v2778_v46, %v4370_v43  ;;  %v1510_v57 = vmul.f32 %v6082_v16, %v1334_v4  ;;  %v1511_v1 = vmul.f32 %v6141_v15, %v1334_v4  ;;  %v1512_v3 = vmul.f32 %v6142_v42, %v1334_v4 }
 0x165   : > { %v1513_v44 = vmul.f32 %v6143_v24, %v1334_v4  ;;  %v1514_v22 = vmul.f32 %v6144_v2, %v1334_v4  ;;  %v1710_v59 = vadd.f32 %v1502_v23, %v1178_v9  ;;  %v1711_v46 = vadd.f32 %v1503_v55, %v1179_v51 }
 0x166   : > { %v2780_v39 = vadd.f32 %v2779_v33, %v4373_v13  ;;  %v1190_v43 = vadd.f32 %v982_v35, %v658_v32  ;;  %v1712_v8 = vadd.f32 %v1504_v25, %v1180_v54  ;;  %v1713_v49 = vadd.f32 %v1505_v5, %v1181_v61  ;;  %v6146_v25 = vld [vmem:[#allocation3_spill] sm:$0xff] }
 0x167   : > { %v1714_v12 = vadd.f32 %v1506_v30, %v1182_v11  ;;  %v1715_v45 = vadd.f32 %v1507_v50, %v1183_v56  ;;  %v1716_v19 = vadd.f32 %v1508_v36, %v1184_v63  ;;  %v1717_v60 = vadd.f32 %v1509_v14, %v1185_v48 }
 0x168   : > { %v2782_v34 = vadd.f32 %v4388_v18, %v2780_v39  ;;  %v1718_v0 = vadd.f32 %v1510_v57, %v1186_v31  ;;  %v1719_v41 = vadd.f32 %v1511_v1, %v1187_v29  ;;  %v1720_v27 = vadd.f32 %v1512_v3, %v1188_v28  ;;  %v6145_v31 = vld [vmem:[#allocation74_spill] sm:$0xff] }
 0x169   : > { %v1721_v58 = vadd.f32 %v1513_v44, %v1189_v62  ;;  %v1722_v24 = vadd.f32 %v1514_v22, %v1190_v43  ;;  %vm1918_vm5 = vcmp.ge.f32.partialorder %v1710_v59, 0.0  ;;  %vm1919_vm6 = vcmp.ge.f32.partialorder %v1711_v46, 0.0  ;;  %v6147_v43 = vld [vmem:[#allocation59_spill] sm:$0xff] }
 0x16a   : > { %2783 = vadd.xlane.f32.xlu0 %v2782_v34  ;;  %vm1920_vm7 = vcmp.ge.f32.partialorder %v1712_v8, 0.0  ;;  %vm1921_vm8 = vcmp.ge.f32.partialorder %v1713_v49, 0.0  ;;  %v2126_v23 = vmul.f32 0.01, %v1710_v59  ;;  %v2127_v51 = vmul.f32 0.01, %v1711_v46 }
 0x16b   : > { %vm1922_vm9 = vcmp.ge.f32.partialorder %v1714_v12, 0.0  ;;  %vm1923_vm10 = vcmp.ge.f32.partialorder %v1715_v45, 0.0  ;;  %vm1924_vm11 = vcmp.ge.f32.partialorder %v1716_v19, 0.0  ;;  %vm1925_vm12 = vcmp.ge.f32.partialorder %v1717_v60, 0.0  ;;  %v6149_v34 = vld [vmem:[#allocation61_spill] sm:$0xff] }
 0x16c   : > { %vm1926_vm14 = vcmp.ge.f32.partialorder %v1718_v0, 0.0  ;;  %vm1927_vm15 = vcmp.ge.f32.partialorder %v1719_v41, 0.0  ;;  %vm1928_vm0 = vcmp.ge.f32.partialorder %v1720_v27, 0.0  ;;  %v2128_v11 = vmul.f32 0.01, %v1712_v8 }
 0x16d   : > { %v2129_v61 = vmul.f32 0.01, %v1713_v49  ;;  %v2130_v54 = vmul.f32 0.01, %v1714_v12  ;;  %v2131_v9 = vmul.f32 0.01, %v1715_v45  ;;  %v2334_v13 = vsel %vm1918_vm5, %v1710_v59, %v2126_v23 }
 0x16e   : > { %v2132_v35 = vmul.f32 0.01, %v1716_v19  ;;  %v2133_v62 = vmul.f32 0.01, %v1717_v60  ;;  %v2335_v18 = vsel %vm1919_vm6, %v1711_v46, %v2127_v51  ;;  %v2134_v4 = vmul.f32 0.01, %v1718_v0 }
 0x16f   : > { %v2135_v32 = vmul.f32 0.01, %v1719_v41  ;;  %v2136_v29 = vmul.f32 0.01, %v1720_v27  ;;  %vm1929_vm1 = vcmp.ge.f32.partialorder %v1721_v58, 0.0  ;;  %vm1930_vm2 = vcmp.ge.f32.partialorder %v1722_v24, 0.0 }
 0x170   : > { %v2137_v28 = vmul.f32 0.01, %v1721_v58  ;;  %v2138_v55 = vmul.f32 0.01, %v1722_v24  ;;  %v2336_v56 = vsel %vm1920_vm7, %v1712_v8, %v2128_v11  ;;  %v2594_v63 = vmul.f32 %v6029_v40, %v2334_v13  ;;  %v6153_v51 = vld [vmem:[#allocation65_spill] sm:$0xff]  ;;  %v6154_v11 = vld [vmem:[#allocation66_spill] sm:$0xff] }
 0x171   : > { %v2595_v48 = vmul.f32 %v6030_v38, %v2335_v18  ;;  %v373_v5 = vmul.f32 %v6146_v25, %v6145_v31  ;;  %v2337_v30 = vsel %vm1921_vm8, %v1713_v49, %v2129_v61  ;;  %v2338_v33 = vsel %vm1922_vm9, %v1714_v12, %v2130_v54  ;;  %v6148_v49 = vld [vmem:[#allocation60_spill] sm:$0xff]  ;;  %v6155_v54 = vld [vmem:[#allocation67_spill] sm:$0xff]  ;;  %v6157_v18 = vld [vmem:[#allocation5_spill] sm:$0xff] }
 0x172   : > { %v2339_v50 = vsel %vm1923_vm10, %v1715_v45, %v2131_v9  ;;  %v2340_v36 = vsel %vm1924_vm11, %v1716_v19, %v2132_v35  ;;  %v2341_v14 = vsel %vm1925_vm12, %v1717_v60, %v2133_v62  ;;  %v2342_v57 = vsel %vm1926_vm14, %v1718_v0, %v2134_v4  ;;  %v6150_v19 = vld [vmem:[#allocation62_spill] sm:$0xff]  ;;  %v6151_v0 = vld [vmem:[#allocation63_spill] sm:$0xff]  ;;  %v6156_v35 = vld [vmem:[#allocation4_spill] sm:$0xff] }
 0x173   : > { %v2343_v1 = vsel %vm1927_vm15, %v1719_v41, %v2135_v32  ;;  %v2344_v3 = vsel %vm1928_vm0, %v1720_v27, %v2136_v29  ;;  %v2345_v44 = vsel %vm1929_vm1, %v1721_v58, %v2137_v28  ;;  %v2346_v39 = vsel %vm1930_vm2, %v1722_v24, %v2138_v55  ;;  %v6152_v27 = vld [vmem:[#allocation64_spill] sm:$0xff]  ;;  %v6158_v32 = vld [vmem:[#allocation6_spill] sm:$0xff]  ;;  %v6159_v28 = vld [vmem:[#allocation7_spill] sm:$0xff] }
 0x174   : > { %v2596_v22 = vmul.f32 %v6031_v6, %v2336_v56  ;;  %v2815_v59 = vadd.f32 %v2595_v48, %v2594_v63  ;;  %v2597_v46 = vmul.f32 %v6032_v17, %v2337_v30  ;;  %v2598_v8 = vmul.f32 %v6147_v43, %v2338_v33  ;;  %v6160_v56 = vld [vmem:[#allocation11_spill] sm:$0xff]  ;;  %v6161_v48 = vld [vmem:[#allocation12_spill] sm:$0xff] }
 0x175   : > { %v2599_v12 = vmul.f32 %v6148_v49, %v2339_v50  ;;  %v2600_v45 = vmul.f32 %v6149_v34, %v2340_v36  ;;  %v2601_v60 = vmul.f32 %v6150_v19, %v2341_v14  ;;  %v2602_v41 = vmul.f32 %v6151_v0, %v2342_v57  ;;  %v6162_v33 = vld [vmem:[#allocation15_spill] sm:$0xff]  ;;  %v6163_v36 = vld [vmem:[#allocation18_spill] sm:$0xff]  ;;  %v6175_v0 = vld [vmem:[#allocation21_spill] sm:$0xff] }
 0x176   : > { %v2603_v23 = vmul.f32 %v6152_v27, %v2343_v1  ;;  %v2816_v58 = vadd.f32 %v2815_v59, %v2596_v22  ;;  %v2604_v24 = vmul.f32 %v6153_v51, %v2344_v3  ;;  %v4480_v61 = vmul.f32 %v6154_v11, %v2345_v44  ;;  %v6164_v1 = vld [vmem:[#allocation19_spill] sm:$0xff]  ;;  %v6165_v44 = vld [vmem:[#allocation20_spill] sm:$0xff]  ;;  %v6166_v22 = vld [vmem:[#allocation22_spill] sm:$0xff] }
 0x177   : > { %v2606_v9 = vmul.f32 %v6155_v54, %v2346_v39  ;;  %v374_v62 = vmul.f32 %v6156_v35, %v6145_v31  ;;  %v375_v4 = vmul.f32 %v6157_v18, %v6145_v31  ;;  %v376_v29 = vmul.f32 %v6158_v32, %v6145_v31  ;;  %v6171_v18 = vld [vmem:[#allocation13_spill] sm:$0xff]  ;;  %v6172_v11 = vld [vmem:[#allocation14_spill] sm:$0xff]  ;;  %v6176_v19 = vld [vmem:[#allocation24_spill] sm:$0xff] }
 0x178   : > { %v2817_v13 = vadd.f32 %v2816_v58, %v2597_v46  ;;  %v377_v55 = vmul.f32 %v6159_v28, %v6145_v31  ;;  %v378_v63 = vmul.f32 %v6160_v56, %v6145_v31  ;;  %v379_v30 = vmul.f32 %v6161_v48, %v6145_v31  ;;  %v6167_v58 = vld [vmem:[#allocation23_spill] sm:$0xff]  ;;  %v6168_v56 = vld [vmem:[#allocation8_spill] sm:$0xff]  ;;  %v6169_v28 = vld [vmem:[#allocation9_spill] sm:$0xff] }
 0x179   : > { %v380_v50 = vmul.f32 %v6162_v33, %v6145_v31  ;;  %v381_v14 = vmul.f32 %v6163_v36, %v6145_v31  ;;  %v382_v3 = vmul.f32 %v6164_v1, %v6145_v31  ;;  %v383_v39 = vmul.f32 %v6165_v44, %v6145_v31  ;;  %v6173_v44 = vld [vmem:[#allocation16_spill] sm:$0xff]  ;;  %v6174_v27 = vld [vmem:[#allocation17_spill] sm:$0xff] }
 0x17a   : > { %v2818_v57 = vadd.f32 %v2817_v13, %v2598_v8  ;;  %v384_v59 = vmul.f32 %v6166_v22, %v6145_v31  ;;  %v2826_v46 = vsel %vm2735_vm13, %v2606_v9, 0.0  ;;  %v385_v48 = vmul.f32 %v6167_v58, %v6145_v31  ;;  %v6170_v8 = vld [vmem:[#allocation10_spill] sm:$0xff]  ;;  %v6177_v58 = vld [vmem:[#allocation25_spill] sm:$0xff] }
 0x17b   : > { %v633_v33 = vadd.f32 %v6168_v56, %v373_v5  ;;  %v634_v32 = vadd.f32 %v6169_v28, %v374_v62  ;;  %v635_v13 = vadd.f32 %v6170_v8, %v375_v4  ;;  %v636_v1 = vadd.f32 %v6171_v18, %v376_v29  ;;  %v6178_v56 = vld [vmem:[#allocation26_spill] sm:$0xff]  ;;  %v6180_v4 = vld [vmem:[#allocation127_spill] sm:$0xff]  ;;  %v6181_v8 = vld [vmem:[#allocation29_spill] sm:$0xff]  ;;  %v1330_v18 = vpop.permute.xlu1 %1329 }
 0x17c   : > { %v2819_v36 = vadd.f32 %v2818_v57, %v2599_v12  ;;  %v637_v51 = vadd.f32 %v6172_v11, %v377_v55  ;;  %v638_v54 = vadd.f32 %v6173_v44, %v378_v63  ;;  %v639_v22 = vadd.f32 %v6174_v27, %v379_v30  ;;  %v6179_v12 = vld [vmem:[#allocation27_spill] sm:$0xff]  ;;  %v6182_v55 = vld [vmem:[#allocation30_spill] sm:$0xff] }
 0x17d   : > { %v640_v9 = vadd.f32 %v6175_v0, %v380_v50  ;;  %v641_v34 = vadd.f32 %v6176_v19, %v381_v14  ;;  %v642_v5 = vadd.f32 %v6177_v58, %v382_v3  ;;  %v643_v62 = vadd.f32 %v6178_v56, %v383_v39  ;;  %v6183_v63 = vld [vmem:[#allocation31_spill] sm:$0xff]  ;;  %v6184_v50 = vld [vmem:[#allocation32_spill] sm:$0xff]  ;;  %v6186_v3 = vld [vmem:[#allocation34_spill] sm:$0xff] }
 0x17e   : > { %v2820_v31 = vadd.f32 %v2819_v36, %v2600_v45  ;;  %v644_v57 = vadd.f32 %v6179_v12, %v384_v59  ;;  %v957_v29 = vmul.f32 %v6181_v8, %v6180_v4  ;;  %v958_v11 = vmul.f32 %v6182_v55, %v6180_v4  ;;  %v6185_v45 = vld [vmem:[#allocation33_spill] sm:$0xff]  ;;  %v6187_v59 = vld [vmem:[#allocation35_spill] sm:$0xff]  ;;  %v6188_v8 = vld [vmem:[#allocation36_spill] sm:$0xff] }
 0x17f   : > { %v959_v30 = vmul.f32 %v6183_v63, %v6180_v4  ;;  %v960_v0 = vmul.f32 %v6184_v50, %v6180_v4  ;;  %v961_v36 = vmul.f32 %v6185_v45, %v6180_v4  ;;  %v962_v39 = vmul.f32 %v6186_v3, %v6180_v4  ;;  %v6189_v55 = vld [vmem:[#allocation37_spill] sm:$0xff]  ;;  %v6190_v63 = vld [vmem:[#allocation38_spill] sm:$0xff]  ;;  %v6192_v45 = vld [vmem:[#allocation28_spill] sm:$0xff] }
 0x180   : > { %v2821_v14 = vadd.f32 %v2820_v31, %v2601_v60  ;;  %v963_v12 = vmul.f32 %v6187_v59, %v6180_v4  ;;  %v964_v56 = vmul.f32 %v6188_v8, %v6180_v4  ;;  %v965_v58 = vmul.f32 %v6189_v55, %v6180_v4  ;;  %v6191_v60 = vld [vmem:[#allocation39_spill] sm:$0xff]  ;;  %v6193_v3 = vld [vmem:[#allocation40_spill] sm:$0xff] }
 0x181   : > { %v966_v19 = vmul.f32 %v6190_v63, %v6180_v4  ;;  %v967_v31 = vmul.f32 %v6191_v60, %v6180_v4  ;;  %v645_v27 = vadd.f32 %v6192_v45, %v385_v48  ;;  %v968_v44 = vmul.f32 %v6193_v3, %v6180_v4 }
 0x182   : > { %v2822_v50 = vadd.f32 %v2821_v14, %v2602_v41  ;;  %v969_v59 = vmul.f32 %v6140_v37, %v6180_v4  ;;  %v1165_v8 = vadd.f32 %v957_v29, %v633_v33  ;;  %v1166_v28 = vadd.f32 %v958_v11, %v634_v32  ;;  %v6194_v32 = vld [vmem:[#allocation53_spill] sm:$0xff] }
 0x183   : > { %v1167_v49 = vadd.f32 %v959_v30, %v635_v13  ;;  %v1168_v55 = vadd.f32 %v960_v0, %v636_v1  ;;  %v1169_v35 = vadd.f32 %v961_v36, %v637_v51  ;;  %v1170_v63 = vadd.f32 %v962_v39, %v638_v54 }
 0x184   : > { %v2823_v43 = vadd.f32 %v2822_v50, %v2603_v23  ;;  %v1171_v17 = vadd.f32 %v963_v12, %v639_v22  ;;  %v1172_v6 = vadd.f32 %v964_v56, %v640_v9  ;;  %v1173_v60 = vadd.f32 %v965_v58, %v641_v34 }
 0x185   : > { %v1174_v41 = vadd.f32 %v966_v19, %v642_v5  ;;  %v1175_v14 = vadd.f32 %v967_v31, %v643_v62  ;;  %v1489_v45 = vmul.f32 %v5989_v21, %v1330_v18  ;;  %v1490_v3 = vmul.f32 %v5990_v47, %v1330_v18 }
 0x186   : > { %v2824_v48 = vadd.f32 %v2823_v43, %v2604_v24  ;;  %v1491_v4 = vmul.f32 %v5991_v26, %v1330_v18  ;;  %v1492_v33 = vmul.f32 %v5993_v52, %v1330_v18  ;;  %v1493_v11 = vmul.f32 %v5994_v10, %v1330_v18 }
 0x187   : > { %v1494_v0 = vmul.f32 %v5995_v20, %v1330_v18  ;;  %v1495_v23 = vmul.f32 %v5997_v53, %v1330_v18  ;;  %v1496_v34 = vmul.f32 %v5998_v7, %v1330_v18  ;;  %v1497_v43 = vmul.f32 %v6082_v16, %v1330_v18 }
 0x188   : > { %v2825_v51 = vadd.f32 %v2824_v48, %v4480_v61  ;;  %v1498_v19 = vmul.f32 %v6141_v15, %v1330_v18  ;;  %v1176_v24 = vadd.f32 %v968_v44, %v644_v57  ;;  %v1499_v54 = vmul.f32 %v6142_v42, %v1330_v18 }
 0x189   : > { %v1500_v56 = vmul.f32 %v6194_v32, %v1330_v18  ;;  %v1501_v1 = vmul.f32 %v6144_v2, %v1330_v18  ;;  %v1177_v58 = vadd.f32 %v969_v59, %v645_v27  ;;  %v1697_v13 = vadd.f32 %v1489_v45, %v1165_v8 }
 0x18a   : > { %v2827_v22 = vadd.f32 %v2826_v46, %v2825_v51  ;;  %v1698_v9 = vadd.f32 %v1490_v3, %v1166_v28  ;;  %v1699_v5 = vadd.f32 %v1491_v4, %v1167_v49  ;;  %v1700_v62 = vadd.f32 %v1492_v33, %v1168_v55  ;;  %v6195_v33 = vld [vmem:[#allocation93_spill] sm:$0xff] }
 0x18b   : > { %v1701_v61 = vadd.f32 %v1493_v11, %v1169_v35  ;;  %v1702_v12 = vadd.f32 %v1494_v0, %v1170_v63  ;;  %v1703_v29 = vadd.f32 %v1495_v23, %v1171_v17  ;;  %v1704_v30 = vadd.f32 %v1496_v34, %v1172_v6 }
 0x18c   : > { %2828 = vadd.xlane.f32.xlu1 %v2827_v22  ;;  %v1705_v50 = vadd.f32 %v1497_v43, %v1173_v60  ;;  %v1706_v36 = vadd.f32 %v1498_v19, %v1174_v41  ;;  %v1707_v44 = vadd.f32 %v1499_v54, %v1175_v14  ;;  %v1708_v57 = vadd.f32 %v1500_v56, %v1176_v24  ;;  %v6196_v24 = vld [vmem:[#allocation57_spill] sm:$0xff] }
 0x18d   : > { %v1709_v39 = vadd.f32 %v1501_v1, %v1177_v58  ;;  %vm1905_vm3 = vcmp.ge.f32.partialorder %v1697_v13, 0.0  ;;  %vm1906_vm4 = vcmp.ge.f32.partialorder %v1698_v9, 0.0  ;;  %v2113_v31 = vmul.f32 0.01, %v1697_v13  ;;  %v6197_v58 = vld [vmem:[#allocation58_spill] sm:$0xff] }
 0x18e   : > { %v2114_v18 = vmul.f32 0.01, %v1698_v9  ;;  %vm1907_vm5 = vcmp.ge.f32.partialorder %v1699_v5, 0.0  ;;  %vm1908_vm6 = vcmp.ge.f32.partialorder %v1700_v62, 0.0  ;;  %vm1909_vm7 = vcmp.ge.f32.partialorder %v1701_v61, 0.0 }
 0x18f   : > { %vm1910_vm8 = vcmp.ge.f32.partialorder %v1702_v12, 0.0  ;;  %vm1911_vm9 = vcmp.ge.f32.partialorder %v1703_v29, 0.0  ;;  %vm1912_vm10 = vcmp.ge.f32.partialorder %v1704_v30, 0.0  ;;  %vm1913_vm11 = vcmp.ge.f32.partialorder %v1705_v50, 0.0 }
 0x190   : > { %vm1914_vm12 = vcmp.ge.f32.partialorder %v1706_v36, 0.0  ;;  %vm1915_vm14 = vcmp.ge.f32.partialorder %v1707_v44, 0.0  ;;  %vm1917_vm15 = vcmp.ge.f32.partialorder %v1709_v39, 0.0  ;;  %v2115_v6 = vmul.f32 0.01, %v1699_v5 }
 0x191   : > { %v2116_v17 = vmul.f32 0.01, %v1700_v62  ;;  %v2117_v49 = vmul.f32 0.01, %v1701_v61  ;;  %v2118_v27 = vmul.f32 0.01, %v1702_v12  ;;  %v2321_v35 = vsel %vm1905_vm3, %v1697_v13, %v2113_v31 }
 0x192   : > { %v2322_v28 = vsel %vm1906_vm4, %v1698_v9, %v2114_v18  ;;  %v2119_v46 = vmul.f32 0.01, %v1703_v29  ;;  %v2120_v8 = vmul.f32 0.01, %v1704_v30  ;;  %v2121_v55 = vmul.f32 0.01, %v1705_v50 }
 0x193   : > { %v2122_v63 = vmul.f32 0.01, %v1706_v36  ;;  %v2123_v45 = vmul.f32 0.01, %v1707_v44  ;;  %v2125_v3 = vmul.f32 0.01, %v1709_v39  ;;  %v2323_v60 = vsel %vm1907_vm5, %v1699_v5, %v2115_v6 }
 0x194   : > { %v2124_v59 = vmul.f32 0.01, %v1708_v57  ;;  %v2581_v41 = vmul.f32 %v6029_v40, %v2321_v35  ;;  %v2582_v14 = vmul.f32 %v6030_v38, %v2322_v28  ;;  %vm1916_vm0 = vcmp.ge.f32.partialorder %v1708_v57, 0.0  ;;  %v6198_v9 = vld [vmem:[#allocation4_spill] sm:$0xff]  ;;  %v6202_v31 = vld [vmem:[#allocation62_spill] sm:$0xff]  ;;  %v6203_v18 = vld [vmem:[#allocation63_spill] sm:$0xff] }
 0x195   : > { %v2324_v48 = vsel %vm1908_vm6, %v1700_v62, %v2116_v17  ;;  %v2325_v4 = vsel %vm1909_vm7, %v1701_v61, %v2117_v49  ;;  %v412_v11 = vmul.f32 %v6146_v25, %v6195_v33  ;;  %v2326_v0 = vsel %vm1910_vm8, %v1702_v12, %v2118_v27  ;;  %v6199_v62 = vld [vmem:[#allocation59_spill] sm:$0xff]  ;;  %v6200_v12 = vld [vmem:[#allocation60_spill] sm:$0xff]  ;;  %v6206_v27 = vld [vmem:[#allocation65_spill] sm:$0xff] }
 0x196   : > { %v2327_v23 = vsel %vm1911_vm9, %v1703_v29, %v2119_v46  ;;  %v2328_v51 = vsel %vm1912_vm10, %v1704_v30, %v2120_v8  ;;  %v2329_v34 = vsel %vm1913_vm11, %v1705_v50, %v2121_v55  ;;  %v2330_v43 = vsel %vm1914_vm12, %v1706_v36, %v2122_v63  ;;  %v6201_v30 = vld [vmem:[#allocation61_spill] sm:$0xff]  ;;  %v6204_v17 = vld [vmem:[#allocation64_spill] sm:$0xff]  ;;  %v6207_v28 = vld [vmem:[#allocation66_spill] sm:$0xff] }
 0x197   : > { %v2333_v19 = vsel %vm1917_vm15, %v1709_v39, %v2125_v3  ;;  %v2583_v54 = vmul.f32 %v6196_v24, %v2323_v60  ;;  %v2800_v56 = vadd.f32 %v2582_v14, %v2581_v41  ;;  %v2331_v1 = vsel %vm1915_vm14, %v1707_v44, %v2123_v45  ;;  %v6205_v44 = vld [vmem:[#allocation67_spill] sm:$0xff]  ;;  %v6208_v55 = vld [vmem:[#allocation5_spill] sm:$0xff]  ;;  %v6209_v45 = vld [vmem:[#allocation6_spill] sm:$0xff] }
 0x198   : > { %v2332_v22 = vsel %vm1916_vm0, %v1708_v57, %v2124_v59  ;;  %v2584_v13 = vmul.f32 %v6197_v58, %v2324_v48  ;;  %v413_v5 = vmul.f32 %v6198_v9, %v6195_v33  ;;  %v2585_v61 = vmul.f32 %v6199_v62, %v2325_v4  ;;  %v6210_v59 = vld [vmem:[#allocation7_spill] sm:$0xff]  ;;  %v6212_v48 = vld [vmem:[#allocation12_spill] sm:$0xff] }
 0x199   : > { %v2586_v29 = vmul.f32 %v6200_v12, %v2326_v0  ;;  %v2587_v50 = vmul.f32 %v6201_v30, %v2327_v23  ;;  %v2801_v36 = vadd.f32 %v2800_v56, %v2583_v54  ;;  %v2588_v39 = vmul.f32 %v6202_v31, %v2328_v51  ;;  %v6211_v41 = vld [vmem:[#allocation11_spill] sm:$0xff]  ;;  %v6227_v12 = vld [vmem:[#allocation24_spill] sm:$0xff] }
 0x19a   : > { %v2589_v6 = vmul.f32 %v6203_v18, %v2329_v34  ;;  %v2590_v49 = vmul.f32 %v6204_v17, %v2330_v43  ;;  %v2593_v57 = vmul.f32 %v6205_v44, %v2333_v19  ;;  %v2591_v35 = vmul.f32 %v6206_v27, %v2331_v1  ;;  %v6213_v23 = vld [vmem:[#allocation15_spill] sm:$0xff]  ;;  %v6214_v34 = vld [vmem:[#allocation18_spill] sm:$0xff]  ;;  %v6216_v1 = vld [vmem:[#allocation20_spill] sm:$0xff] }
 0x19b   : > { %v4590_v46 = vmul.f32 %v6207_v28, %v2332_v22  ;;  %v2802_v8 = vadd.f32 %v2801_v36, %v2584_v13  ;;  %v414_v63 = vmul.f32 %v6208_v55, %v6195_v33  ;;  %v415_v3 = vmul.f32 %v6209_v45, %v6195_v33  ;;  %v6215_v19 = vld [vmem:[#allocation19_spill] sm:$0xff]  ;;  %v6217_v13 = vld [vmem:[#allocation22_spill] sm:$0xff]  ;;  %v6222_v28 = vld [vmem:[#allocation13_spill] sm:$0xff] }
 0x19c   : > { %v416_v60 = vmul.f32 %v6210_v59, %v6195_v33  ;;  %v417_v14 = vmul.f32 %v6211_v41, %v6195_v33  ;;  %v418_v4 = vmul.f32 %v6212_v48, %v6195_v33  ;;  %v419_v51 = vmul.f32 %v6213_v23, %v6195_v33  ;;  %v6218_v48 = vld [vmem:[#allocation23_spill] sm:$0xff]  ;;  %v6219_v41 = vld [vmem:[#allocation8_spill] sm:$0xff]  ;;  %v6220_v59 = vld [vmem:[#allocation9_spill] sm:$0xff] }
 0x19d   : > { %v2803_v0 = vadd.f32 %v2802_v8, %v2585_v61  ;;  %v420_v43 = vmul.f32 %v6214_v34, %v6195_v33  ;;  %v421_v54 = vmul.f32 %v6215_v19, %v6195_v33  ;;  %v2811_v56 = vsel %vm2735_vm13, %v2593_v57, 0.0  ;;  %v6221_v34 = vld [vmem:[#allocation10_spill] sm:$0xff]  ;;  %v6224_v27 = vld [vmem:[#allocation16_spill] sm:$0xff] }
 0x19e   : > { %v422_v22 = vmul.f32 %v6216_v1, %v6195_v33  ;;  %v423_v36 = vmul.f32 %v6217_v13, %v6195_v33  ;;  %v424_v61 = vmul.f32 %v6218_v48, %v6195_v33  ;;  %v672_v23 = vadd.f32 %v6219_v41, %v412_v11  ;;  %v6223_v44 = vld [vmem:[#allocation14_spill] sm:$0xff]  ;;  %v6225_v1 = vld [vmem:[#allocation17_spill] sm:$0xff] }
 0x19f   : > { %v2804_v8 = vadd.f32 %v2803_v0, %v2586_v29  ;;  %v673_v45 = vadd.f32 %v6220_v59, %v413_v5  ;;  %v674_v55 = vadd.f32 %v6221_v34, %v414_v63  ;;  %v675_v19 = vadd.f32 %v6222_v28, %v415_v3  ;;  %v6226_v13 = vld [vmem:[#allocation21_spill] sm:$0xff]  ;;  %v6229_v11 = vld [vmem:[#allocation26_spill] sm:$0xff]  ;;  %v6230_v5 = vld [vmem:[#allocation27_spill] sm:$0xff] }
 0x1a0   : > { %v676_v57 = vadd.f32 %v6223_v44, %v416_v60  ;;  %v677_v17 = vadd.f32 %v6224_v27, %v417_v14  ;;  %v678_v18 = vadd.f32 %v6225_v1, %v418_v4  ;;  %v679_v30 = vadd.f32 %v6226_v13, %v419_v51  ;;  %v6228_v29 = vld [vmem:[#allocation25_spill] sm:$0xff]  ;;  %v6231_v63 = vld [vmem:[#allocation132_spill] sm:$0xff]  ;;  %v6233_v60 = vld [vmem:[#allocation30_spill] sm:$0xff]  ;;  %v1342_v27 = vpop.permute.xlu0 %1341 }
 0x1a1   : > { %v2805_v31 = vadd.f32 %v2804_v8, %v2587_v50  ;;  %v680_v33 = vadd.f32 %v6227_v12, %v420_v43  ;;  %v681_v0 = vadd.f32 %v6228_v29, %v421_v54  ;;  %v682_v41 = vadd.f32 %v6229_v11, %v422_v22  ;;  %v6232_v34 = vld [vmem:[#allocation29_spill] sm:$0xff]  ;;  %v6234_v4 = vld [vmem:[#allocation31_spill] sm:$0xff]  ;;  %v6235_v51 = vld [vmem:[#allocation32_spill] sm:$0xff] }
 0x1a2   : > { %v683_v59 = vadd.f32 %v6230_v5, %v423_v36  ;;  %v996_v3 = vmul.f32 %v6232_v34, %v6231_v63  ;;  %v997_v44 = vmul.f32 %v6233_v60, %v6231_v63  ;;  %v998_v50 = vmul.f32 %v6234_v4, %v6231_v63  ;;  %v6236_v43 = vld [vmem:[#allocation33_spill] sm:$0xff]  ;;  %v6237_v22 = vld [vmem:[#allocation34_spill] sm:$0xff]  ;;  %v6238_v36 = vld [vmem:[#allocation35_spill] sm:$0xff] }
 0x1a3   : > { %v2806_v14 = vadd.f32 %v2805_v31, %v2588_v39  ;;  %v999_v8 = vmul.f32 %v6235_v51, %v6231_v63  ;;  %v1000_v54 = vmul.f32 %v6236_v43, %v6231_v63  ;;  %v1001_v11 = vmul.f32 %v6237_v22, %v6231_v63  ;;  %v6239_v34 = vld [vmem:[#allocation36_spill] sm:$0xff]  ;;  %v6240_v31 = vld [vmem:[#allocation37_spill] sm:$0xff]  ;;  %v6242_v51 = vld [vmem:[#allocation38_spill] sm:$0xff] }
 0x1a4   : > { %v1002_v5 = vmul.f32 %v6238_v36, %v6231_v63  ;;  %v1003_v29 = vmul.f32 %v6239_v34, %v6231_v63  ;;  %v1004_v39 = vmul.f32 %v6240_v31, %v6231_v63  ;;  %v6241_v4 = vld [vmem:[#allocation28_spill] sm:$0xff]  ;;  %v1005_v13 = vmul.f32 %v6242_v51, %v6231_v63  ;;  %v6243_v43 = vld [vmem:[#allocation39_spill] sm:$0xff] }
 0x1a5   : > { %v2807_v60 = vadd.f32 %v2806_v14, %v2589_v6  ;;  %v684_v12 = vadd.f32 %v6241_v4, %v424_v61  ;;  %v1006_v1 = vmul.f32 %v6243_v43, %v6231_v63  ;;  %v6244_v22 = vld [vmem:[#allocation40_spill] sm:$0xff]  ;;  %v1008_v36 = vmul.f32 %v6140_v37, %v6231_v63 }
 0x1a6   : > { %v1007_v28 = vmul.f32 %v6244_v22, %v6231_v63  ;;  %v1204_v34 = vadd.f32 %v996_v3, %v672_v23  ;;  %v1205_v48 = vadd.f32 %v997_v44, %v673_v45  ;;  %v1206_v31 = vadd.f32 %v998_v50, %v674_v55 }
 0x1a7   : > { %v2808_v62 = vadd.f32 %v2807_v60, %v2590_v49  ;;  %v1207_v6 = vadd.f32 %v999_v8, %v675_v19  ;;  %v1208_v14 = vadd.f32 %v1000_v54, %v676_v57  ;;  %v1209_v61 = vadd.f32 %v1001_v11, %v677_v17 }
 0x1a8   : > { %v1210_v4 = vadd.f32 %v1002_v5, %v678_v18  ;;  %v1211_v58 = vadd.f32 %v1003_v29, %v679_v30  ;;  %v1212_v51 = vadd.f32 %v1004_v39, %v680_v33  ;;  %v1213_v24 = vadd.f32 %v1005_v13, %v681_v0 }
 0x1a9   : > { %v2809_v9 = vadd.f32 %v2808_v62, %v2591_v35  ;;  %v1528_v43 = vmul.f32 %v5989_v21, %v1342_v27  ;;  %v1529_v25 = vmul.f32 %v5990_v47, %v1342_v27  ;;  %v1214_v22 = vadd.f32 %v1006_v1, %v682_v41 }
 0x1aa   : > { %v1530_v38 = vmul.f32 %v5991_v26, %v1342_v27  ;;  %v1531_v23 = vmul.f32 %v5993_v52, %v1342_v27  ;;  %v1532_v49 = vmul.f32 %v5994_v10, %v1342_v27  ;;  %v1533_v17 = vmul.f32 %v5995_v20, %v1342_v27 }
 0x1ab   : > { %v2810_v44 = vadd.f32 %v2809_v9, %v4590_v46  ;;  %v1534_v30 = vmul.f32 %v5997_v53, %v1342_v27  ;;  %v1535_v62 = vmul.f32 %v5998_v7, %v1342_v27  ;;  %v1536_v18 = vmul.f32 %v6082_v16, %v1342_v27 }
 0x1ac   : > { %v1537_v35 = vmul.f32 %v6141_v15, %v1342_v27  ;;  %v1538_v55 = vmul.f32 %v6142_v42, %v1342_v27  ;;  %v1539_v45 = vmul.f32 %v6194_v32, %v1342_v27  ;;  %v1540_v19 = vmul.f32 %v6144_v2, %v1342_v27 }
 0x1ad   : > { %v2812_v41 = vadd.f32 %v2811_v56, %v2810_v44  ;;  %v1736_v1 = vadd.f32 %v1528_v43, %v1204_v34  ;;  %v1737_v13 = vadd.f32 %v1529_v25, %v1205_v48  ;;  %v1215_v9 = vadd.f32 %v1007_v28, %v683_v59 }
 0x1ae   : > { %v1216_v46 = vadd.f32 %v1008_v36, %v684_v12  ;;  %v1738_v57 = vadd.f32 %v1530_v38, %v1206_v31  ;;  %v1739_v33 = vadd.f32 %v1531_v23, %v1207_v6  ;;  %v1740_v29 = vadd.f32 %v1532_v49, %v1208_v14  ;;  %v6245_v36 = vld [vmem:[#allocation56_spill] sm:$0xff]  ;;  %v6247_v14 = vld [vmem:[#allocation3_spill] sm:$0xff] }
 0x1af   : > { %2813 = vadd.xlane.f32.xlu0 %v2812_v41  ;;  %v1741_v0 = vadd.f32 %v1533_v17, %v1209_v61  ;;  %v1742_v11 = vadd.f32 %v1534_v30, %v1210_v4  ;;  %v1743_v5 = vadd.f32 %v1535_v62, %v1211_v58  ;;  %v1744_v63 = vadd.f32 %v1536_v18, %v1212_v51  ;;  %v6246_v6 = vld [vmem:[#allocation80_spill] sm:$0xff]  ;;  %v6248_v18 = vld [vmem:[#allocation57_spill] sm:$0xff] }
 0x1b0   : > { %v1745_v3 = vadd.f32 %v1537_v35, %v1213_v24  ;;  %v1746_v60 = vadd.f32 %v1538_v55, %v1214_v22  ;;  %v1747_v50 = vadd.f32 %v1539_v45, %v1215_v9  ;;  %v1748_v8 = vadd.f32 %v1540_v19, %v1216_v46  ;;  %v6250_v46 = vld [vmem:[#allocation58_spill] sm:$0xff] }
 0x1b1   : > { %v2152_v54 = vmul.f32 0.01, %v1736_v1  ;;  %v2153_v56 = vmul.f32 0.01, %v1737_v13  ;;  %vm1944_vm1 = vcmp.ge.f32.partialorder %v1736_v1, 0.0  ;;  %vm1945_vm2 = vcmp.ge.f32.partialorder %v1737_v13, 0.0 }
 0x1b2   : > { %vm1946_vm3 = vcmp.ge.f32.partialorder %v1738_v57, 0.0  ;;  %vm1947_vm4 = vcmp.ge.f32.partialorder %v1739_v33, 0.0  ;;  %vm1948_vm5 = vcmp.ge.f32.partialorder %v1740_v29, 0.0  ;;  %vm1949_vm6 = vcmp.ge.f32.partialorder %v1741_v0, 0.0 }
 0x1b3   : > { %vm1950_vm7 = vcmp.ge.f32.partialorder %v1742_v11, 0.0  ;;  %vm1951_vm8 = vcmp.ge.f32.partialorder %v1743_v5, 0.0  ;;  %vm1952_vm9 = vcmp.ge.f32.partialorder %v1744_v63, 0.0  ;;  %vm1953_vm10 = vcmp.ge.f32.partialorder %v1745_v3, 0.0 }
 0x1b4   : > { %vm1954_vm11 = vcmp.ge.f32.partialorder %v1746_v60, 0.0  ;;  %v2154_v38 = vmul.f32 0.01, %v1738_v57  ;;  %v2155_v25 = vmul.f32 0.01, %v1739_v33  ;;  %v2360_v24 = vsel %vm1944_vm1, %v1736_v1, %v2152_v54  ;;  %v6249_v1 = vld [vmem:[#allocation4_spill] sm:$0xff] }
 0x1b5   : > { %v2156_v58 = vmul.f32 0.01, %v1740_v29  ;;  %v2361_v12 = vsel %vm1945_vm2, %v1737_v13, %v2153_v56  ;;  %v2157_v27 = vmul.f32 0.01, %v1741_v0  ;;  %v2158_v28 = vmul.f32 0.01, %v1742_v11 }
 0x1b6   : > { %v2159_v59 = vmul.f32 0.01, %v1743_v5  ;;  %v2160_v48 = vmul.f32 0.01, %v1744_v63  ;;  %v2161_v34 = vmul.f32 0.01, %v1745_v3  ;;  %v2362_v43 = vsel %vm1946_vm3, %v1738_v57, %v2154_v38 }
 0x1b7   : > { %v2162_v4 = vmul.f32 0.01, %v1746_v60  ;;  %v2164_v51 = vmul.f32 0.01, %v1748_v8  ;;  %v2620_v22 = vmul.f32 %v6029_v40, %v2360_v24  ;;  %v2621_v31 = vmul.f32 %v6245_v36, %v2361_v12  ;;  %v6254_v56 = vld [vmem:[#allocation62_spill] sm:$0xff]  ;;  %v6258_v12 = vld [vmem:[#allocation67_spill] sm:$0xff] }
 0x1b8   : > { %vm1955_vm12 = vcmp.ge.f32.partialorder %v1747_v50, 0.0  ;;  %vm1956_vm14 = vcmp.ge.f32.partialorder %v1748_v8, 0.0  ;;  %v2163_v39 = vmul.f32 0.01, %v1747_v50  ;;  %v399_v61 = vmul.f32 %v6247_v14, %v6246_v6 }
 0x1b9   : > { %v2363_v23 = vsel %vm1947_vm4, %v1739_v33, %v2155_v25  ;;  %v2364_v49 = vsel %vm1948_vm5, %v1740_v29, %v2156_v58  ;;  %v2365_v44 = vsel %vm1949_vm6, %v1741_v0, %v2157_v27  ;;  %v2366_v17 = vsel %vm1950_vm7, %v1742_v11, %v2158_v28  ;;  %v6251_v33 = vld [vmem:[#allocation59_spill] sm:$0xff]  ;;  %v6252_v11 = vld [vmem:[#allocation60_spill] sm:$0xff]  ;;  %v6257_v58 = vld [vmem:[#allocation65_spill] sm:$0xff] }
 0x1ba   : > { %v2367_v30 = vsel %vm1951_vm8, %v1743_v5, %v2159_v59  ;;  %v2368_v62 = vsel %vm1952_vm9, %v1744_v63, %v2160_v48  ;;  %v2622_v35 = vmul.f32 %v6248_v18, %v2362_v43  ;;  %v2845_v55 = vadd.f32 %v2621_v31, %v2620_v22  ;;  %v6253_v63 = vld [vmem:[#allocation61_spill] sm:$0xff]  ;;  %v6259_v28 = vld [vmem:[#allocation66_spill] sm:$0xff]  ;;  %v6262_v43 = vld [vmem:[#allocation7_spill] sm:$0xff] }
 0x1bb   : > { %v2369_v45 = vsel %vm1953_vm10, %v1745_v3, %v2161_v34  ;;  %v2370_v41 = vsel %vm1954_vm11, %v1746_v60, %v2162_v4  ;;  %v2372_v19 = vsel %vm1956_vm14, %v1748_v8, %v2164_v51  ;;  %v400_v13 = vmul.f32 %v6249_v1, %v6246_v6  ;;  %v6255_v3 = vld [vmem:[#allocation63_spill] sm:$0xff]  ;;  %v6256_v60 = vld [vmem:[#allocation64_spill] sm:$0xff]  ;;  %v6260_v48 = vld [vmem:[#allocation5_spill] sm:$0xff] }
 0x1bc   : > { %v2371_v9 = vsel %vm1955_vm12, %v1747_v50, %v2163_v39  ;;  %v2623_v57 = vmul.f32 %v6250_v46, %v2363_v23  ;;  %v2624_v29 = vmul.f32 %v6251_v33, %v2364_v49  ;;  %v2846_v0 = vadd.f32 %v2845_v55, %v2622_v35  ;;  %v6261_v4 = vld [vmem:[#allocation6_spill] sm:$0xff]  ;;  %v6263_v39 = vld [vmem:[#allocation11_spill] sm:$0xff]  ;;  %v6264_v49 = vld [vmem:[#allocation12_spill] sm:$0xff] }
 0x1bd   : > { %v2625_v5 = vmul.f32 %v6252_v11, %v2365_v44  ;;  %v2626_v54 = vmul.f32 %v6253_v63, %v2366_v17  ;;  %v2627_v38 = vmul.f32 %v6254_v56, %v2367_v30  ;;  %v2628_v25 = vmul.f32 %v6255_v3, %v2368_v62  ;;  %v6265_v17 = vld [vmem:[#allocation15_spill] sm:$0xff]  ;;  %v6266_v62 = vld [vmem:[#allocation18_spill] sm:$0xff]  ;;  %v6274_v1 = vld [vmem:[#allocation13_spill] sm:$0xff] }
 0x1be   : > { %v2629_v8 = vmul.f32 %v6256_v60, %v2369_v45  ;;  %v2630_v24 = vmul.f32 %v6257_v58, %v2370_v41  ;;  %v2632_v27 = vmul.f32 %v6258_v12, %v2372_v19  ;;  %v2847_v50 = vadd.f32 %v2846_v0, %v2623_v57  ;;  %v6267_v55 = vld [vmem:[#allocation19_spill] sm:$0xff]  ;;  %v6268_v41 = vld [vmem:[#allocation20_spill] sm:$0xff] }
 0x1bf   : > { %v2631_v59 = vmul.f32 %v6259_v28, %v2371_v9  ;;  %v401_v34 = vmul.f32 %v6260_v48, %v6246_v6  ;;  %v402_v51 = vmul.f32 %v6261_v4, %v6246_v6  ;;  %v403_v22 = vmul.f32 %v6262_v43, %v6246_v6  ;;  %v6269_v9 = vld [vmem:[#allocation22_spill] sm:$0xff]  ;;  %v6272_v43 = vld [vmem:[#allocation9_spill] sm:$0xff]  ;;  %v6276_v58 = vld [vmem:[#allocation16_spill] sm:$0xff] }
 0x1c0   : > { %v2848_v31 = vadd.f32 %v2847_v50, %v2624_v29  ;;  %v404_v23 = vmul.f32 %v6263_v39, %v6246_v6  ;;  %v405_v44 = vmul.f32 %v6264_v49, %v6246_v6  ;;  %v406_v30 = vmul.f32 %v6265_v17, %v6246_v6  ;;  %v6270_v50 = vld [vmem:[#allocation23_spill] sm:$0xff]  ;;  %v6271_v39 = vld [vmem:[#allocation8_spill] sm:$0xff]  ;;  %v6275_v28 = vld [vmem:[#allocation14_spill] sm:$0xff] }
 0x1c1   : > { %v407_v35 = vmul.f32 %v6266_v62, %v6246_v6  ;;  %v408_v45 = vmul.f32 %v6267_v55, %v6246_v6  ;;  %v409_v19 = vmul.f32 %v6268_v41, %v6246_v6  ;;  %v410_v57 = vmul.f32 %v6269_v9, %v6246_v6  ;;  %v6273_v62 = vld [vmem:[#allocation10_spill] sm:$0xff]  ;;  %v6277_v9 = vld [vmem:[#allocation17_spill] sm:$0xff]  ;;  %v6279_v3 = vld [vmem:[#allocation24_spill] sm:$0xff] }
 0x1c2   : > { %v2849_v29 = vadd.f32 %v2848_v31, %v2625_v5  ;;  %v2856_v0 = vsel %vm2735_vm13, %v2632_v27, 0.0  ;;  %v411_v49 = vmul.f32 %v6270_v50, %v6246_v6  ;;  %v659_v17 = vadd.f32 %v6271_v39, %v399_v61  ;;  %v6278_v31 = vld [vmem:[#allocation21_spill] sm:$0xff]  ;;  %v6281_v61 = vld [vmem:[#allocation26_spill] sm:$0xff] }
 0x1c3   : > { %v660_v4 = vadd.f32 %v6272_v43, %v400_v13  ;;  %v661_v48 = vadd.f32 %v6273_v62, %v401_v34  ;;  %v662_v55 = vadd.f32 %v6274_v1, %v402_v51  ;;  %v663_v12 = vadd.f32 %v6275_v28, %v403_v22  ;;  %v6280_v6 = vld [vmem:[#allocation25_spill] sm:$0xff]  ;;  %v6282_v13 = vld [vmem:[#allocation27_spill] sm:$0xff] }
 0x1c4   : > { %v2850_v41 = vadd.f32 %v2849_v29, %v2626_v54  ;;  %v664_v60 = vadd.f32 %v6276_v58, %v404_v23  ;;  %v665_v5 = vadd.f32 %v6277_v9, %v405_v44  ;;  %v666_v27 = vadd.f32 %v6278_v31, %v406_v30  ;;  %v6283_v62 = vld [vmem:[#allocation131_spill] sm:$0xff]  ;;  %v6284_v51 = vld [vmem:[#allocation29_spill] sm:$0xff]  ;;  %v6285_v54 = vld [vmem:[#allocation30_spill] sm:$0xff] }
 0x1c5   : > { %v667_v56 = vadd.f32 %v6279_v3, %v407_v35  ;;  %v668_v50 = vadd.f32 %v6280_v6, %v408_v45  ;;  %v669_v39 = vadd.f32 %v6281_v61, %v409_v19  ;;  %v670_v43 = vadd.f32 %v6282_v13, %v410_v57  ;;  %v6286_v23 = vld [vmem:[#allocation31_spill] sm:$0xff]  ;;  %v6287_v29 = vld [vmem:[#allocation28_spill] sm:$0xff]  ;;  %v6289_v45 = vld [vmem:[#allocation33_spill] sm:$0xff] }
 0x1c6   : > { %v2851_v34 = vadd.f32 %v2850_v41, %v2627_v38  ;;  %v983_v1 = vmul.f32 %v6284_v51, %v6283_v62  ;;  %v984_v22 = vmul.f32 %v6285_v54, %v6283_v62  ;;  %v985_v44 = vmul.f32 %v6286_v23, %v6283_v62  ;;  %v6288_v35 = vld [vmem:[#allocation32_spill] sm:$0xff]  ;;  %v6290_v57 = vld [vmem:[#allocation34_spill] sm:$0xff]  ;;  %v1338_v41 = vpop.permute.xlu1 %1337  ;;  %v6291_v51 = vld [vmem:[#allocation35_spill] sm:$0xff] }
 0x1c7   : > { %v671_v30 = vadd.f32 %v6287_v29, %v411_v49  ;;  %v986_v3 = vmul.f32 %v6288_v35, %v6283_v62  ;;  %v987_v19 = vmul.f32 %v6289_v45, %v6283_v62  ;;  %v988_v38 = vmul.f32 %v6290_v57, %v6283_v62  ;;  %v6292_v54 = vld [vmem:[#allocation36_spill] sm:$0xff]  ;;  %v6293_v23 = vld [vmem:[#allocation37_spill] sm:$0xff]  ;;  %v6294_v29 = vld [vmem:[#allocation38_spill] sm:$0xff] }
 0x1c8   : > { %v2852_v13 = vadd.f32 %v2851_v34, %v2628_v25  ;;  %v989_v61 = vmul.f32 %v6291_v51, %v6283_v62  ;;  %v990_v6 = vmul.f32 %v6292_v54, %v6283_v62  ;;  %v991_v49 = vmul.f32 %v6293_v23, %v6283_v62  ;;  %v6295_v31 = vld [vmem:[#allocation39_spill] sm:$0xff]  ;;  %v6296_v9 = vld [vmem:[#allocation40_spill] sm:$0xff] }
 0x1c9   : > { %v992_v35 = vmul.f32 %v6294_v29, %v6283_v62  ;;  %v993_v45 = vmul.f32 %v6295_v31, %v6283_v62  ;;  %v994_v57 = vmul.f32 %v6296_v9, %v6283_v62  ;;  %v995_v25 = vmul.f32 %v6140_v37, %v6283_v62 }
 0x1ca   : > { %v2853_v34 = vadd.f32 %v2852_v13, %v2629_v8  ;;  %v1191_v51 = vadd.f32 %v983_v1, %v659_v17  ;;  %v1192_v58 = vadd.f32 %v984_v22, %v660_v4  ;;  %v1193_v28 = vadd.f32 %v985_v44, %v661_v48 }
 0x1cb   : > { %v1194_v54 = vadd.f32 %v986_v3, %v662_v55  ;;  %v1195_v63 = vadd.f32 %v987_v19, %v663_v12  ;;  %v1196_v11 = vadd.f32 %v988_v38, %v664_v60  ;;  %v1515_v23 = vmul.f32 %v5989_v21, %v1338_v41 }
 0x1cc   : > { %v2854_v14 = vadd.f32 %v2853_v34, %v2630_v24  ;;  %v1197_v29 = vadd.f32 %v989_v61, %v665_v5  ;;  %v1198_v33 = vadd.f32 %v990_v6, %v666_v27  ;;  %v1516_v31 = vmul.f32 %v5990_v47, %v1338_v41 }
 0x1cd   : > { %v1199_v46 = vadd.f32 %v991_v49, %v667_v56  ;;  %v1200_v18 = vadd.f32 %v992_v35, %v668_v50  ;;  %v1517_v9 = vmul.f32 %v5991_v26, %v1338_v41  ;;  %v1518_v62 = vmul.f32 %v5993_v52, %v1338_v41 }
 0x1ce   : > { %v2855_v8 = vadd.f32 %v2854_v14, %v2631_v59  ;;  %v1519_v1 = vmul.f32 %v5994_v10, %v1338_v41  ;;  %v1520_v3 = vmul.f32 %v5995_v20, %v1338_v41  ;;  %v1521_v60 = vmul.f32 %v5997_v53, %v1338_v41 }
 0x1cf   : > { %v1201_v12 = vadd.f32 %v993_v45, %v669_v39  ;;  %v1522_v24 = vmul.f32 %v5998_v7, %v1338_v41  ;;  %v1523_v48 = vmul.f32 %v6082_v16, %v1338_v41  ;;  %v1723_v4 = vadd.f32 %v1515_v23, %v1191_v51 }
 0x1d0   : > { %v2857_v17 = vadd.f32 %v2856_v0, %v2855_v8  ;;  %v1202_v56 = vadd.f32 %v994_v57, %v670_v43  ;;  %v1524_v55 = vmul.f32 %v6141_v15, %v1338_v41  ;;  %v1724_v50 = vadd.f32 %v1516_v31, %v1192_v58  ;;  %v6297_v8 = vld [vmem:[#allocation57_spill] sm:$0xff] }
 0x1d1   : > { %v1525_v5 = vmul.f32 %v6142_v42, %v1338_v41  ;;  %v1527_v14 = vmul.f32 %v6144_v2, %v1338_v41  ;;  %v1725_v59 = vadd.f32 %v1517_v9, %v1193_v28  ;;  %v1726_v27 = vadd.f32 %v1518_v62, %v1194_v54 }
 0x1d2   : > { %2858 = vadd.xlane.f32.xlu1 %v2857_v17  ;;  %v1203_v6 = vadd.f32 %v995_v25, %v671_v30  ;;  %v1727_v61 = vadd.f32 %v1519_v1, %v1195_v63  ;;  %v1728_v39 = vadd.f32 %v1520_v3, %v1196_v11  ;;  %v1729_v13 = vadd.f32 %v1521_v60, %v1197_v29 }
 0x1d3   : > { %v1526_v22 = vmul.f32 %v6194_v32, %v1338_v41  ;;  %v1730_v44 = vadd.f32 %v1522_v24, %v1198_v33  ;;  %v1731_v51 = vadd.f32 %v1523_v48, %v1199_v46  ;;  %v2139_v0 = vmul.f32 0.01, %v1723_v4 }
 0x1d4   : > { %v1732_v43 = vadd.f32 %v1524_v55, %v1200_v18  ;;  %vm1931_vm15 = vcmp.ge.f32.partialorder %v1723_v4, 0.0  ;;  %vm1932_vm0 = vcmp.ge.f32.partialorder %v1724_v50, 0.0  ;;  %v2140_v58 = vmul.f32 0.01, %v1724_v50 }
 0x1d5   : > { %v1733_v31 = vadd.f32 %v1525_v5, %v1201_v12  ;;  %v1735_v23 = vadd.f32 %v1527_v14, %v1203_v6  ;;  %vm1933_vm1 = vcmp.ge.f32.partialorder %v1725_v59, 0.0  ;;  %vm1934_vm2 = vcmp.ge.f32.partialorder %v1726_v27, 0.0  ;;  %v6299_v14 = vld [vmem:[#allocation59_spill] sm:$0xff] }
 0x1d6   : > { %vm1935_vm3 = vcmp.ge.f32.partialorder %v1727_v61, 0.0  ;;  %vm1936_vm4 = vcmp.ge.f32.partialorder %v1728_v39, 0.0  ;;  %vm1937_vm5 = vcmp.ge.f32.partialorder %v1729_v13, 0.0  ;;  %v2141_v28 = vmul.f32 0.01, %v1725_v59  ;;  %v6301_v6 = vld [vmem:[#allocation3_spill] sm:$0xff] }
 0x1d7   : > { %vm1938_vm6 = vcmp.ge.f32.partialorder %v1730_v44, 0.0  ;;  %vm1939_vm7 = vcmp.ge.f32.partialorder %v1731_v51, 0.0  ;;  %v2347_v11 = vsel %vm1931_vm15, %v1723_v4, %v2139_v0  ;;  %v2348_v63 = vsel %vm1932_vm0, %v1724_v50, %v2140_v58 }
 0x1d8   : > { %v1734_v9 = vadd.f32 %v1526_v22, %v1202_v56  ;;  %v2142_v33 = vmul.f32 0.01, %v1726_v27  ;;  %v2143_v46 = vmul.f32 0.01, %v1727_v61  ;;  %v2144_v54 = vmul.f32 0.01, %v1728_v39 }
 0x1d9   : > { %v2145_v18 = vmul.f32 0.01, %v1729_v13  ;;  %v2146_v29 = vmul.f32 0.01, %v1730_v44  ;;  %v2147_v30 = vmul.f32 0.01, %v1731_v51  ;;  %v2349_v45 = vsel %vm1933_vm1, %v1725_v59, %v2141_v28 }
 0x1da   : > { %v2148_v35 = vmul.f32 0.01, %v1732_v43  ;;  %v2607_v19 = vmul.f32 %v6029_v40, %v2347_v11  ;;  %v2608_v57 = vmul.f32 %v6245_v36, %v2348_v63  ;;  %vm1940_vm8 = vcmp.ge.f32.partialorder %v1732_v43, 0.0  ;;  %v6298_v56 = vld [vmem:[#allocation58_spill] sm:$0xff]  ;;  %v6307_v11 = vld [vmem:[#allocation65_spill] sm:$0xff] }
 0x1db   : > { %vm1941_vm9 = vcmp.ge.f32.partialorder %v1733_v31, 0.0  ;;  %v2149_v38 = vmul.f32 0.01, %v1733_v31  ;;  %v2151_v41 = vmul.f32 0.01, %v1735_v23  ;;  %vm1942_vm10 = vcmp.ge.f32.partialorder %v1734_v9, 0.0 }
 0x1dc   : > { %vm1943_vm11 = vcmp.ge.f32.partialorder %v1735_v23, 0.0  ;;  %v2150_v49 = vmul.f32 0.01, %v1734_v9  ;;  %v2350_v25 = vsel %vm1934_vm2, %v1726_v27, %v2142_v33  ;;  %v2351_v34 = vsel %vm1935_vm3, %v1727_v61, %v2143_v46  ;;  %v6300_v27 = vld [vmem:[#allocation99_spill] sm:$0xff]  ;;  %v6309_v46 = vld [vmem:[#allocation66_spill] sm:$0xff] }
 0x1dd   : > { %v2352_v62 = vsel %vm1936_vm4, %v1728_v39, %v2144_v54  ;;  %v2609_v1 = vmul.f32 %v6297_v8, %v2349_v45  ;;  %v2830_v3 = vadd.f32 %v2608_v57, %v2607_v19  ;;  %v2353_v60 = vsel %vm1937_vm5, %v1729_v13, %v2145_v18  ;;  %v6302_v39 = vld [vmem:[#allocation60_spill] sm:$0xff]  ;;  %v6303_v13 = vld [vmem:[#allocation61_spill] sm:$0xff]  ;;  %v6308_v33 = vld [vmem:[#allocation67_spill] sm:$0xff] }
 0x1de   : > { %v2354_v12 = vsel %vm1938_vm6, %v1730_v44, %v2146_v29  ;;  %v2355_v24 = vsel %vm1939_vm7, %v1731_v51, %v2147_v30  ;;  %v2356_v48 = vsel %vm1940_vm8, %v1732_v43, %v2148_v35  ;;  %v2357_v4 = vsel %vm1941_vm9, %v1733_v31, %v2149_v38  ;;  %v6304_v44 = vld [vmem:[#allocation62_spill] sm:$0xff]  ;;  %v6305_v43 = vld [vmem:[#allocation63_spill] sm:$0xff]  ;;  %v6310_v29 = vld [vmem:[#allocation4_spill] sm:$0xff] }
 0x1df   : > { %v2359_v17 = vsel %vm1943_vm11, %v1735_v23, %v2151_v41  ;;  %v2610_v55 = vmul.f32 %v6298_v56, %v2350_v25  ;;  %v2831_v50 = vadd.f32 %v2830_v3, %v2609_v1  ;;  %v2358_v5 = vsel %vm1942_vm10, %v1734_v9, %v2150_v49  ;;  %v6306_v23 = vld [vmem:[#allocation64_spill] sm:$0xff]  ;;  %v6311_v35 = vld [vmem:[#allocation5_spill] sm:$0xff]  ;;  %v6312_v19 = vld [vmem:[#allocation6_spill] sm:$0xff] }
 0x1e0   : > { %v2611_v59 = vmul.f32 %v6299_v14, %v2351_v34  ;;  %v438_v61 = vmul.f32 %v6301_v6, %v6300_v27  ;;  %v2612_v22 = vmul.f32 %v6302_v39, %v2352_v62  ;;  %v2613_v0 = vmul.f32 %v6303_v13, %v2353_v60  ;;  %v6313_v38 = vld [vmem:[#allocation7_spill] sm:$0xff]  ;;  %v6315_v34 = vld [vmem:[#allocation12_spill] sm:$0xff] }
 0x1e1   : > { %v2614_v58 = vmul.f32 %v6304_v44, %v2354_v12  ;;  %v2832_v51 = vadd.f32 %v2831_v50, %v2610_v55  ;;  %v2615_v31 = vmul.f32 %v6305_v43, %v2355_v24  ;;  %v2616_v28 = vmul.f32 %v6306_v23, %v2356_v48  ;;  %v6314_v49 = vld [vmem:[#allocation11_spill] sm:$0xff]  ;;  %v6317_v12 = vld [vmem:[#allocation18_spill] sm:$0xff]  ;;  %v6319_v55 = vld [vmem:[#allocation20_spill] sm:$0xff] }
 0x1e2   : > { %v2617_v63 = vmul.f32 %v6307_v11, %v2357_v4  ;;  %v2619_v9 = vmul.f32 %v6308_v33, %v2359_v17  ;;  %v2618_v54 = vmul.f32 %v6309_v46, %v2358_v5  ;;  %v439_v30 = vmul.f32 %v6310_v29, %v6300_v27  ;;  %v6316_v3 = vld [vmem:[#allocation15_spill] sm:$0xff]  ;;  %v6320_v5 = vld [vmem:[#allocation22_spill] sm:$0xff]  ;;  %v6327_v33 = vld [vmem:[#allocation16_spill] sm:$0xff] }
 0x1e3   : > { %v2833_v18 = vadd.f32 %v2832_v51, %v2611_v59  ;;  %v440_v45 = vmul.f32 %v6311_v35, %v6300_v27  ;;  %v441_v57 = vmul.f32 %v6312_v19, %v6300_v27  ;;  %v442_v41 = vmul.f32 %v6313_v38, %v6300_v27  ;;  %v6318_v48 = vld [vmem:[#allocation19_spill] sm:$0xff]  ;;  %v6325_v35 = vld [vmem:[#allocation13_spill] sm:$0xff]  ;;  %v6326_v29 = vld [vmem:[#allocation14_spill] sm:$0xff] }
 0x1e4   : > { %v443_v25 = vmul.f32 %v6314_v49, %v6300_v27  ;;  %v444_v62 = vmul.f32 %v6315_v34, %v6300_v27  ;;  %v445_v60 = vmul.f32 %v6316_v3, %v6300_v27  ;;  %v446_v24 = vmul.f32 %v6317_v12, %v6300_v27  ;;  %v6321_v51 = vld [vmem:[#allocation23_spill] sm:$0xff]  ;;  %v6322_v34 = vld [vmem:[#allocation8_spill] sm:$0xff]  ;;  %v6323_v49 = vld [vmem:[#allocation9_spill] sm:$0xff] }
 0x1e5   : > { %v2834_v1 = vadd.f32 %v2833_v18, %v2612_v22  ;;  %v447_v4 = vmul.f32 %v6318_v48, %v6300_v27  ;;  %v2841_v17 = vsel %vm2735_vm13, %v2619_v9, 0.0  ;;  %v448_v50 = vmul.f32 %v6319_v55, %v6300_v27  ;;  %v6324_v12 = vld [vmem:[#allocation10_spill] sm:$0xff]  ;;  %v6328_v55 = vld [vmem:[#allocation17_spill] sm:$0xff]  ;;  %v6330_v44 = vld [vmem:[#allocation24_spill] sm:$0xff] }
 0x1e6   : > { %v449_v59 = vmul.f32 %v6320_v5, %v6300_v27  ;;  %v450_v22 = vmul.f32 %v6321_v51, %v6300_v27  ;;  %v698_v3 = vadd.f32 %v6322_v34, %v438_v61  ;;  %v699_v38 = vadd.f32 %v6323_v49, %v439_v30  ;;  %v6329_v5 = vld [vmem:[#allocation21_spill] sm:$0xff]  ;;  %v6332_v61 = vld [vmem:[#allocation26_spill] sm:$0xff]  ;;  %v6333_v30 = vld [vmem:[#allocation27_spill] sm:$0xff] }
 0x1e7   : > { %v2835_v18 = vadd.f32 %v2834_v1, %v2613_v0  ;;  %v700_v19 = vadd.f32 %v6324_v12, %v440_v45  ;;  %v701_v48 = vadd.f32 %v6325_v35, %v441_v57  ;;  %v702_v9 = vadd.f32 %v6326_v29, %v442_v41  ;;  %v6331_v0 = vld [vmem:[#allocation25_spill] sm:$0xff]  ;;  %v6334_v45 = vld [vmem:[#allocation135_spill] sm:$0xff]  ;;  %v6336_v41 = vld [vmem:[#allocation30_spill] sm:$0xff] }
 0x1e8   : > { %v703_v46 = vadd.f32 %v6327_v33, %v443_v25  ;;  %v704_v11 = vadd.f32 %v6328_v55, %v444_v62  ;;  %v705_v43 = vadd.f32 %v6329_v5, %v445_v60  ;;  %v706_v27 = vadd.f32 %v6330_v44, %v446_v24  ;;  %v6335_v12 = vld [vmem:[#allocation29_spill] sm:$0xff]  ;;  %v6337_v33 = vld [vmem:[#allocation28_spill] sm:$0xff]  ;;  %v6346_v44 = vld [vmem:[#allocation39_spill] sm:$0xff] }
 0x1e9   : > { %v2836_v23 = vadd.f32 %v2835_v18, %v2614_v58  ;;  %v707_v1 = vadd.f32 %v6331_v0, %v447_v4  ;;  %v708_v34 = vadd.f32 %v6332_v61, %v448_v50  ;;  %v709_v49 = vadd.f32 %v6333_v30, %v449_v59  ;;  %v6338_v58 = vld [vmem:[#allocation31_spill] sm:$0xff]  ;;  %v6339_v24 = vld [vmem:[#allocation32_spill] sm:$0xff]  ;;  %v1350_v4 = vpop.permute.xlu0 %1349  ;;  %v6340_v50 = vld [vmem:[#allocation33_spill] sm:$0xff] }
 0x1ea   : > { %v1022_v57 = vmul.f32 %v6335_v12, %v6334_v45  ;;  %v1023_v29 = vmul.f32 %v6336_v41, %v6334_v45  ;;  %v710_v62 = vadd.f32 %v6337_v33, %v450_v22  ;;  %v1024_v60 = vmul.f32 %v6338_v58, %v6334_v45  ;;  %v6341_v59 = vld [vmem:[#allocation34_spill] sm:$0xff]  ;;  %v6342_v12 = vld [vmem:[#allocation35_spill] sm:$0xff]  ;;  %v6344_v41 = vld [vmem:[#allocation37_spill] sm:$0xff] }
 0x1eb   : > { %v2837_v25 = vadd.f32 %v2836_v23, %v2615_v31  ;;  %v1025_v18 = vmul.f32 %v6339_v24, %v6334_v45  ;;  %v1026_v61 = vmul.f32 %v6340_v50, %v6334_v45  ;;  %v1027_v30 = vmul.f32 %v6341_v59, %v6334_v45  ;;  %v6343_v31 = vld [vmem:[#allocation36_spill] sm:$0xff]  ;;  %v6345_v33 = vld [vmem:[#allocation38_spill] sm:$0xff] }
 0x1ec   : > { %v1028_v0 = vmul.f32 %v6342_v12, %v6334_v45  ;;  %v1029_v23 = vmul.f32 %v6343_v31, %v6334_v45  ;;  %v1030_v58 = vmul.f32 %v6344_v41, %v6334_v45  ;;  %v1031_v24 = vmul.f32 %v6345_v33, %v6334_v45  ;;  %v6347_v50 = vld [vmem:[#allocation40_spill] sm:$0xff] }
 0x1ed   : > { %v2838_v22 = vadd.f32 %v2837_v25, %v2616_v28  ;;  %v1032_v5 = vmul.f32 %v6346_v44, %v6334_v45  ;;  %v1033_v55 = vmul.f32 %v6347_v50, %v6334_v45  ;;  %v1034_v59 = vmul.f32 %v6140_v37, %v6334_v45 }
 0x1ee   : > { %v1230_v12 = vadd.f32 %v1022_v57, %v698_v3  ;;  %v1231_v35 = vadd.f32 %v1023_v29, %v699_v38  ;;  %v1232_v31 = vadd.f32 %v1024_v60, %v700_v19  ;;  %v1554_v28 = vmul.f32 %v5989_v21, %v1350_v4 }
 0x1ef   : > { %v2839_v51 = vadd.f32 %v2838_v22, %v2617_v63  ;;  %v1555_v25 = vmul.f32 %v5990_v47, %v1350_v4  ;;  %v1233_v41 = vadd.f32 %v1025_v18, %v701_v48  ;;  %v1234_v13 = vadd.f32 %v1026_v61, %v702_v9 }
 0x1f0   : > { %v1235_v33 = vadd.f32 %v1027_v30, %v703_v46  ;;  %v1236_v6 = vadd.f32 %v1028_v0, %v704_v11  ;;  %v1237_v44 = vadd.f32 %v1029_v23, %v705_v43  ;;  %v1238_v14 = vadd.f32 %v1030_v58, %v706_v27 }
 0x1f1   : > { %v2840_v39 = vadd.f32 %v2839_v51, %v2618_v54  ;;  %v1239_v56 = vadd.f32 %v1031_v24, %v707_v1  ;;  %v1556_v50 = vmul.f32 %v5991_v26, %v1350_v4  ;;  %v1557_v45 = vmul.f32 %v5993_v52, %v1350_v4 }
 0x1f2   : > { %v1558_v29 = vmul.f32 %v5994_v10, %v1350_v4  ;;  %v1559_v63 = vmul.f32 %v5995_v20, %v1350_v4  ;;  %v1560_v38 = vmul.f32 %v5997_v53, %v1350_v4  ;;  %v1762_v3 = vadd.f32 %v1554_v28, %v1230_v12 }
 0x1f3   : > { %v2842_v19 = vadd.f32 %v2841_v17, %v2840_v39  ;;  %v1763_v48 = vadd.f32 %v1555_v25, %v1231_v35  ;;  %v1240_v9 = vadd.f32 %v1032_v5, %v708_v34  ;;  %v1241_v46 = vadd.f32 %v1033_v55, %v709_v49 }
 0x1f4   : > { %v1561_v11 = vmul.f32 %v5998_v7, %v1350_v4  ;;  %v1562_v43 = vmul.f32 %v6082_v16, %v1350_v4  ;;  %v1242_v54 = vadd.f32 %v1034_v59, %v710_v62  ;;  %v1563_v51 = vmul.f32 %v6141_v15, %v1350_v4 }
 0x1f5   : > { %2843 = vadd.xlane.f32.xlu0 %v2842_v19  ;;  %v1564_v27 = vmul.f32 %v6142_v42, %v1350_v4  ;;  %v1565_v0 = vmul.f32 %v6194_v32, %v1350_v4  ;;  %v1566_v39 = vmul.f32 %v6144_v2, %v1350_v4  ;;  %v1764_v17 = vadd.f32 %v1556_v50, %v1232_v31 }
 0x1f6   : > { %v1765_v1 = vadd.f32 %v1557_v45, %v1233_v41  ;;  %v1766_v12 = vadd.f32 %v1558_v29, %v1234_v13  ;;  %v1767_v35 = vadd.f32 %v1559_v63, %v1235_v33  ;;  %v1768_v34 = vadd.f32 %v1560_v38, %v1236_v6 }
 0x1f7   : > { %v2178_v49 = vmul.f32 0.01, %v1762_v3  ;;  %v2179_v55 = vmul.f32 0.01, %v1763_v48  ;;  %v1769_v5 = vadd.f32 %v1561_v11, %v1237_v44  ;;  %v1770_v61 = vadd.f32 %v1562_v43, %v1238_v14 }
 0x1f8   : > { %vm1970_vm12 = vcmp.ge.f32.partialorder %v1762_v3, 0.0  ;;  %vm1971_vm14 = vcmp.ge.f32.partialorder %v1763_v48, 0.0  ;;  %v1771_v30 = vadd.f32 %v1563_v51, %v1239_v56  ;;  %v1772_v57 = vadd.f32 %v1564_v27, %v1240_v9  ;;  %v6348_v9 = vld [vmem:[#allocation58_spill] sm:$0xff]  ;;  %v6349_v27 = vld [vmem:[#allocation59_spill] sm:$0xff] }
 0x1f9   : > { %v1773_v62 = vadd.f32 %v1565_v0, %v1241_v46  ;;  %v1774_v58 = vadd.f32 %v1566_v39, %v1242_v54  ;;  %vm1972_vm15 = vcmp.ge.f32.partialorder %v1764_v17, 0.0  ;;  %vm1973_vm0 = vcmp.ge.f32.partialorder %v1765_v1, 0.0  ;;  %v6350_v39 = vld [vmem:[#allocation60_spill] sm:$0xff] }
 0x1fa   : > { %v2180_v60 = vmul.f32 0.01, %v1764_v17  ;;  %vm1974_vm1 = vcmp.ge.f32.partialorder %v1766_v12, 0.0  ;;  %vm1975_vm2 = vcmp.ge.f32.partialorder %v1767_v35, 0.0  ;;  %v2386_v24 = vsel %vm1970_vm12, %v1762_v3, %v2178_v49  ;;  %v6353_v49 = vld [vmem:[#allocation61_spill] sm:$0xff] }
 0x1fb   : > { %v2387_v41 = vsel %vm1971_vm14, %v1763_v48, %v2179_v55  ;;  %vm1976_vm3 = vcmp.ge.f32.partialorder %v1768_v34, 0.0  ;;  %vm1977_vm4 = vcmp.ge.f32.partialorder %v1769_v5, 0.0  ;;  %vm1978_vm5 = vcmp.ge.f32.partialorder %v1770_v61, 0.0 }
 0x1fc   : > { %v2181_v6 = vmul.f32 0.01, %v1765_v1  ;;  %v2182_v13 = vmul.f32 0.01, %v1766_v12  ;;  %v2183_v44 = vmul.f32 0.01, %v1767_v35  ;;  %v2388_v18 = vsel %vm1972_vm15, %v1764_v17, %v2180_v60 }
 0x1fd   : > { %v2184_v14 = vmul.f32 0.01, %v1768_v34  ;;  %v2185_v33 = vmul.f32 0.01, %v1769_v5  ;;  %v2646_v56 = vmul.f32 %v6029_v40, %v2386_v24  ;;  %v2647_v4 = vmul.f32 %v6245_v36, %v2387_v41  ;;  %v6356_v24 = vld [vmem:[#allocation64_spill] sm:$0xff] }
 0x1fe   : > { %vm1979_vm6 = vcmp.ge.f32.partialorder %v1771_v30, 0.0  ;;  %vm1980_vm7 = vcmp.ge.f32.partialorder %v1772_v57, 0.0  ;;  %v2186_v50 = vmul.f32 0.01, %v1770_v61  ;;  %v2187_v59 = vmul.f32 0.01, %v1771_v30 }
 0x1ff   : > { %v2188_v31 = vmul.f32 0.01, %v1772_v57  ;;  %v2189_v23 = vmul.f32 0.01, %v1773_v62  ;;  %v2190_v22 = vmul.f32 0.01, %v1774_v58  ;;  %v2389_v28 = vsel %vm1973_vm0, %v1765_v1, %v2181_v6 }
 0x200   : > { %vm1981_vm8 = vcmp.ge.f32.partialorder %v1773_v62, 0.0  ;;  %vm1982_vm9 = vcmp.ge.f32.partialorder %v1774_v58, 0.0  ;;  %v2648_v25 = vmul.f32 %v6297_v8, %v2388_v18  ;;  %v2875_v45 = vadd.f32 %v2647_v4, %v2646_v56  ;;  %v6357_v6 = vld [vmem:[#allocation65_spill] sm:$0xff] }
 0x201   : > { %v2390_v29 = vsel %vm1974_vm1, %v1766_v12, %v2182_v13  ;;  %v2391_v63 = vsel %vm1975_vm2, %v1767_v35, %v2183_v44  ;;  %v2392_v19 = vsel %vm1976_vm3, %v1768_v34, %v2184_v14  ;;  %v2393_v38 = vsel %vm1977_vm4, %v1769_v5, %v2185_v33  ;;  %v6351_v12 = vld [vmem:[#allocation92_spill] sm:$0xff]  ;;  %v6352_v35 = vld [vmem:[#allocation3_spill] sm:$0xff]  ;;  %v6354_v5 = vld [vmem:[#allocation62_spill] sm:$0xff] }
 0x202   : > { %v2394_v3 = vsel %vm1978_vm5, %v1770_v61, %v2186_v50  ;;  %v2395_v48 = vsel %vm1979_vm6, %v1771_v30, %v2187_v59  ;;  %v2649_v46 = vmul.f32 %v6348_v9, %v2389_v28  ;;  %v2876_v11 = vadd.f32 %v2875_v45, %v2648_v25  ;;  %v6355_v30 = vld [vmem:[#allocation63_spill] sm:$0xff]  ;;  %v6360_v33 = vld [vmem:[#allocation4_spill] sm:$0xff]  ;;  %v6361_v56 = vld [vmem:[#allocation5_spill] sm:$0xff] }
 0x203   : > { %v2396_v43 = vsel %vm1980_vm7, %v1772_v57, %v2188_v31  ;;  %v2397_v54 = vsel %vm1981_vm8, %v1773_v62, %v2189_v23  ;;  %v2398_v51 = vsel %vm1982_vm9, %v1774_v58, %v2190_v22  ;;  %v2650_v0 = vmul.f32 %v6349_v27, %v2390_v29  ;;  %v6358_v62 = vld [vmem:[#allocation66_spill] sm:$0xff]  ;;  %v6359_v13 = vld [vmem:[#allocation67_spill] sm:$0xff]  ;;  %v6365_v45 = vld [vmem:[#allocation12_spill] sm:$0xff] }
 0x204   : > { %v2651_v17 = vmul.f32 %v6350_v39, %v2391_v63  ;;  %v2877_v1 = vadd.f32 %v2876_v11, %v2649_v46  ;;  %v425_v34 = vmul.f32 %v6352_v35, %v6351_v12  ;;  %v2652_v55 = vmul.f32 %v6353_v49, %v2392_v19  ;;  %v6362_v50 = vld [vmem:[#allocation6_spill] sm:$0xff]  ;;  %v6363_v31 = vld [vmem:[#allocation7_spill] sm:$0xff]  ;;  %v6369_v11 = vld [vmem:[#allocation20_spill] sm:$0xff] }
 0x205   : > { %v2653_v61 = vmul.f32 %v6354_v5, %v2393_v38  ;;  %v2654_v60 = vmul.f32 %v6355_v30, %v2394_v3  ;;  %v2655_v41 = vmul.f32 %v6356_v24, %v2395_v48  ;;  %v2656_v57 = vmul.f32 %v6357_v6, %v2396_v43  ;;  %v6364_v28 = vld [vmem:[#allocation11_spill] sm:$0xff]  ;;  %v6367_v38 = vld [vmem:[#allocation18_spill] sm:$0xff]  ;;  %v6377_v6 = vld [vmem:[#allocation16_spill] sm:$0xff] }
 0x206   : > { %v2657_v58 = vmul.f32 %v6358_v62, %v2397_v54  ;;  %v2658_v44 = vmul.f32 %v6359_v13, %v2398_v51  ;;  %v2878_v14 = vadd.f32 %v2877_v1, %v2650_v0  ;;  %v426_v18 = vmul.f32 %v6360_v33, %v6351_v12  ;;  %v6366_v63 = vld [vmem:[#allocation15_spill] sm:$0xff]  ;;  %v6370_v54 = vld [vmem:[#allocation22_spill] sm:$0xff]  ;;  %v6380_v30 = vld [vmem:[#allocation24_spill] sm:$0xff] }
 0x207   : > { %v427_v4 = vmul.f32 %v6361_v56, %v6351_v12  ;;  %v428_v59 = vmul.f32 %v6362_v50, %v6351_v12  ;;  %v429_v23 = vmul.f32 %v6363_v31, %v6351_v12  ;;  %v430_v25 = vmul.f32 %v6364_v28, %v6351_v12  ;;  %v6368_v48 = vld [vmem:[#allocation19_spill] sm:$0xff]  ;;  %v6373_v28 = vld [vmem:[#allocation9_spill] sm:$0xff]  ;;  %v6376_v13 = vld [vmem:[#allocation14_spill] sm:$0xff] }
 0x208   : > { %v2879_v22 = vadd.f32 %v2878_v14, %v2651_v17  ;;  %v431_v29 = vmul.f32 %v6365_v45, %v6351_v12  ;;  %v432_v19 = vmul.f32 %v6366_v63, %v6351_v12  ;;  %v433_v3 = vmul.f32 %v6367_v38, %v6351_v12  ;;  %v6371_v1 = vld [vmem:[#allocation23_spill] sm:$0xff]  ;;  %v6372_v45 = vld [vmem:[#allocation8_spill] sm:$0xff]  ;;  %v6374_v38 = vld [vmem:[#allocation10_spill] sm:$0xff] }
 0x209   : > { %v434_v46 = vmul.f32 %v6368_v48, %v6351_v12  ;;  %v435_v43 = vmul.f32 %v6369_v11, %v6351_v12  ;;  %v436_v51 = vmul.f32 %v6370_v54, %v6351_v12  ;;  %v2886_v17 = vsel %vm2735_vm13, %v2658_v44, 0.0  ;;  %v6375_v56 = vld [vmem:[#allocation13_spill] sm:$0xff] }
 0x20a   : > { %v2880_v0 = vadd.f32 %v2879_v22, %v2652_v55  ;;  %v437_v14 = vmul.f32 %v6371_v1, %v6351_v12  ;;  %v685_v63 = vadd.f32 %v6372_v45, %v425_v34  ;;  %v686_v31 = vadd.f32 %v6373_v28, %v426_v18  ;;  %v6378_v54 = vld [vmem:[#allocation17_spill] sm:$0xff]  ;;  %v6382_v34 = vld [vmem:[#allocation26_spill] sm:$0xff]  ;;  %v6383_v18 = vld [vmem:[#allocation27_spill] sm:$0xff] }
 0x20b   : > { %v687_v50 = vadd.f32 %v6374_v38, %v427_v4  ;;  %v688_v48 = vadd.f32 %v6375_v56, %v428_v59  ;;  %v689_v62 = vadd.f32 %v6376_v13, %v429_v23  ;;  %v690_v24 = vadd.f32 %v6377_v6, %v430_v25  ;;  %v6379_v22 = vld [vmem:[#allocation21_spill] sm:$0xff]  ;;  %v6384_v38 = vld [vmem:[#allocation28_spill] sm:$0xff]  ;;  %v6387_v25 = vld [vmem:[#allocation30_spill] sm:$0xff] }
 0x20c   : > { %v2881_v11 = vadd.f32 %v2880_v0, %v2653_v61  ;;  %v691_v55 = vadd.f32 %v6378_v54, %v431_v29  ;;  %v692_v44 = vadd.f32 %v6379_v22, %v432_v19  ;;  %v693_v5 = vadd.f32 %v6380_v30, %v433_v3  ;;  %v6381_v12 = vld [vmem:[#allocation25_spill] sm:$0xff]  ;;  %v6385_v56 = vld [vmem:[#allocation136_spill] sm:$0xff]  ;;  %v1346_v29 = vpop.permute.xlu1 %1345  ;;  %v6388_v19 = vld [vmem:[#allocation31_spill] sm:$0xff] }
 0x20d   : > { %v694_v1 = vadd.f32 %v6381_v12, %v434_v46  ;;  %v695_v45 = vadd.f32 %v6382_v34, %v435_v43  ;;  %v696_v28 = vadd.f32 %v6383_v18, %v436_v51  ;;  %v697_v59 = vadd.f32 %v6384_v38, %v437_v14  ;;  %v6386_v23 = vld [vmem:[#allocation29_spill] sm:$0xff]  ;;  %v6389_v3 = vld [vmem:[#allocation32_spill] sm:$0xff]  ;;  %v6392_v14 = vld [vmem:[#allocation35_spill] sm:$0xff] }
 0x20e   : > { %v2882_v4 = vadd.f32 %v2881_v11, %v2654_v60  ;;  %v1009_v61 = vmul.f32 %v6386_v23, %v6385_v56  ;;  %v1010_v0 = vmul.f32 %v6387_v25, %v6385_v56  ;;  %v1011_v22 = vmul.f32 %v6388_v19, %v6385_v56  ;;  %v6390_v43 = vld [vmem:[#allocation33_spill] sm:$0xff]  ;;  %v6391_v60 = vld [vmem:[#allocation34_spill] sm:$0xff]  ;;  %v6393_v38 = vld [vmem:[#allocation36_spill] sm:$0xff] }
 0x20f   : > { %v1012_v46 = vmul.f32 %v6389_v3, %v6385_v56  ;;  %v1013_v34 = vmul.f32 %v6390_v43, %v6385_v56  ;;  %v1014_v11 = vmul.f32 %v6391_v60, %v6385_v56  ;;  %v1015_v23 = vmul.f32 %v6392_v14, %v6385_v56  ;;  %v6394_v18 = vld [vmem:[#allocation37_spill] sm:$0xff]  ;;  %v6395_v19 = vld [vmem:[#allocation38_spill] sm:$0xff]  ;;  %v6396_v3 = vld [vmem:[#allocation39_spill] sm:$0xff] }
 0x210   : > { %v2883_v51 = vadd.f32 %v2882_v4, %v2655_v41  ;;  %v1016_v25 = vmul.f32 %v6393_v38, %v6385_v56  ;;  %v1017_v12 = vmul.f32 %v6394_v18, %v6385_v56  ;;  %v1018_v30 = vmul.f32 %v6395_v19, %v6385_v56  ;;  %v6397_v43 = vld [vmem:[#allocation40_spill] sm:$0xff] }
 0x211   : > { %v1019_v54 = vmul.f32 %v6396_v3, %v6385_v56  ;;  %v1020_v6 = vmul.f32 %v6397_v43, %v6385_v56  ;;  %v1021_v41 = vmul.f32 %v6140_v37, %v6385_v56  ;;  %v1217_v14 = vadd.f32 %v1009_v61, %v685_v63 }
 0x212   : > { %v2884_v4 = vadd.f32 %v2883_v51, %v2656_v57  ;;  %v1541_v60 = vmul.f32 %v5989_v21, %v1346_v29  ;;  %v1542_v38 = vmul.f32 %v5990_v47, %v1346_v29  ;;  %v1218_v13 = vadd.f32 %v1010_v0, %v686_v31 }
 0x213   : > { %v1219_v18 = vadd.f32 %v1011_v22, %v687_v50  ;;  %v1220_v33 = vadd.f32 %v1012_v46, %v688_v48  ;;  %v1221_v35 = vadd.f32 %v1013_v34, %v689_v62  ;;  %v1222_v49 = vadd.f32 %v1014_v11, %v690_v24 }
 0x214   : > { %v2885_v19 = vadd.f32 %v2884_v4, %v2657_v58  ;;  %v1223_v39 = vadd.f32 %v1015_v23, %v691_v55  ;;  %v1224_v3 = vadd.f32 %v1016_v25, %v692_v44  ;;  %v1225_v27 = vadd.f32 %v1017_v12, %v693_v5 }
 0x215   : > { %v1226_v9 = vadd.f32 %v1018_v30, %v694_v1  ;;  %v1543_v43 = vmul.f32 %v5991_v26, %v1346_v29  ;;  %v1544_v56 = vmul.f32 %v5993_v52, %v1346_v29  ;;  %v1545_v63 = vmul.f32 %v5994_v10, %v1346_v29 }
 0x216   : > { %v2887_v57 = vadd.f32 %v2886_v17, %v2885_v19  ;;  %v1749_v61 = vadd.f32 %v1541_v60, %v1217_v14  ;;  %v1750_v51 = vadd.f32 %v1542_v38, %v1218_v13  ;;  %v1227_v37 = vadd.f32 %v1019_v54, %v695_v45 }
 0x217   : > { %v1228_v31 = vadd.f32 %v1020_v6, %v696_v28  ;;  %v1546_v50 = vmul.f32 %v5995_v20, %v1346_v29  ;;  %v1547_v62 = vmul.f32 %v5997_v53, %v1346_v29  ;;  %v1548_v24 = vmul.f32 %v5998_v7, %v1346_v29 }
 0x218   : > { %2888 = vadd.xlane.f32.xlu1 %v2887_v57  ;;  %v1549_v5 = vmul.f32 %v6082_v16, %v1346_v29  ;;  %v1550_v30 = vmul.f32 %v6141_v15, %v1346_v29  ;;  %v1551_v58 = vmul.f32 %v6142_v42, %v1346_v29  ;;  %v1229_v48 = vadd.f32 %v1021_v41, %v697_v59 }
 0x219   : > { %v1552_v17 = vmul.f32 %v6194_v32, %v1346_v29  ;;  %v1553_v13 = vmul.f32 %v6144_v2, %v1346_v29  ;;  %v1751_v45 = vadd.f32 %v1543_v43, %v1219_v18  ;;  %v1752_v6 = vadd.f32 %v1544_v56, %v1220_v33 }
 0x21a   : > { %v1753_v28 = vadd.f32 %v1545_v63, %v1221_v35  ;;  %v2165_v38 = vmul.f32 0.01, %v1749_v61  ;;  %v2166_v54 = vmul.f32 0.01, %v1750_v51  ;;  %v1754_v1 = vadd.f32 %v1546_v50, %v1222_v49  ;;  %v6398_v63 = vld [vmem:[#allocation58_spill] sm:$0xff] }
 0x21b   : > { %v1755_v55 = vadd.f32 %v1547_v62, %v1223_v39  ;;  %vm1957_vm10 = vcmp.ge.f32.partialorder %v1749_v61, 0.0  ;;  %vm1958_vm11 = vcmp.ge.f32.partialorder %v1750_v51, 0.0  ;;  %v1756_v22 = vadd.f32 %v1548_v24, %v1224_v3 }
 0x21c   : > { %v1757_v44 = vadd.f32 %v1549_v5, %v1225_v27  ;;  %v1758_v12 = vadd.f32 %v1550_v30, %v1226_v9  ;;  %v1759_v34 = vadd.f32 %v1551_v58, %v1227_v37  ;;  %v1760_v23 = vadd.f32 %v1552_v17, %v1228_v31  ;;  %v6399_v58 = vld [vmem:[#allocation59_spill] sm:$0xff] }
 0x21d   : > { %v1761_v25 = vadd.f32 %v1553_v13, %v1229_v48  ;;  %v2167_v59 = vmul.f32 0.01, %v1751_v45  ;;  %vm1959_vm12 = vcmp.ge.f32.partialorder %v1751_v45, 0.0  ;;  %vm1960_vm14 = vcmp.ge.f32.partialorder %v1752_v6, 0.0  ;;  %v6400_v13 = vld [vmem:[#allocation60_spill] sm:$0xff] }
 0x21e   : > { %v2373_v0 = vsel %vm1957_vm10, %v1749_v61, %v2165_v38  ;;  %v2374_v29 = vsel %vm1958_vm11, %v1750_v51, %v2166_v54  ;;  %vm1961_vm15 = vcmp.ge.f32.partialorder %v1753_v28, 0.0  ;;  %vm1962_vm0 = vcmp.ge.f32.partialorder %v1754_v1, 0.0  ;;  %v6402_v38 = vld [vmem:[#allocation108_spill] sm:$0xff]  ;;  %v6403_v54 = vld [vmem:[#allocation3_spill] sm:$0xff] }
 0x21f   : > { %vm1963_vm1 = vcmp.ge.f32.partialorder %v1755_v55, 0.0  ;;  %v2168_v35 = vmul.f32 0.01, %v1752_v6  ;;  %vm1964_vm2 = vcmp.ge.f32.partialorder %v1756_v22, 0.0  ;;  %vm1965_vm3 = vcmp.ge.f32.partialorder %v1757_v44, 0.0 }
 0x220   : > { %vm1966_vm4 = vcmp.ge.f32.partialorder %v1758_v12, 0.0  ;;  %vm1967_vm5 = vcmp.ge.f32.partialorder %v1759_v34, 0.0  ;;  %v2169_v39 = vmul.f32 0.01, %v1753_v28  ;;  %v2375_v49 = vsel %vm1959_vm12, %v1751_v45, %v2167_v59 }
 0x221   : > { %v2633_v9 = vmul.f32 %v6029_v40, %v2373_v0  ;;  %v2634_v37 = vmul.f32 %v6245_v36, %v2374_v29  ;;  %v2170_v27 = vmul.f32 0.01, %v1754_v1  ;;  %v2171_v33 = vmul.f32 0.01, %v1755_v55  ;;  %v6408_v29 = vld [vmem:[#allocation65_spill] sm:$0xff] }
 0x222   : > { %v2172_v18 = vmul.f32 0.01, %v1756_v22  ;;  %v2173_v19 = vmul.f32 0.01, %v1757_v44  ;;  %v2174_v3 = vmul.f32 0.01, %v1758_v12  ;;  %v2376_v43 = vsel %vm1960_vm14, %v1752_v6, %v2168_v35 }
 0x223   : > { %v2175_v46 = vmul.f32 0.01, %v1759_v34  ;;  %v2176_v60 = vmul.f32 0.01, %v1760_v23  ;;  %v2177_v11 = vmul.f32 0.01, %v1761_v25  ;;  %v2635_v14 = vmul.f32 %v6297_v8, %v2375_v49 }
 0x224   : > { %v2860_v41 = vadd.f32 %v2634_v37, %v2633_v9  ;;  %vm1968_vm6 = vcmp.ge.f32.partialorder %v1760_v23, 0.0  ;;  %vm1969_vm7 = vcmp.ge.f32.partialorder %v1761_v25, 0.0  ;;  %v2377_v4 = vsel %vm1961_vm15, %v1753_v28, %v2169_v39  ;;  %v6401_v6 = vld [vmem:[#allocation61_spill] sm:$0xff]  ;;  %v6409_v39 = vld [vmem:[#allocation66_spill] sm:$0xff]  ;;  %v6410_v9 = vld [vmem:[#allocation67_spill] sm:$0xff] }
 0x225   : > { %v2378_v56 = vsel %vm1962_vm0, %v1754_v1, %v2170_v27  ;;  %v2379_v57 = vsel %vm1963_vm1, %v1755_v55, %v2171_v33  ;;  %v2636_v61 = vmul.f32 %v6398_v63, %v2376_v43  ;;  %v2380_v31 = vsel %vm1964_vm2, %v1756_v22, %v2172_v18  ;;  %v6404_v55 = vld [vmem:[#allocation4_spill] sm:$0xff]  ;;  %v6411_v27 = vld [vmem:[#allocation5_spill] sm:$0xff] }
 0x226   : > { %v2861_v51 = vadd.f32 %v2860_v41, %v2635_v14  ;;  %v2381_v50 = vsel %vm1965_vm3, %v1757_v44, %v2173_v19  ;;  %v2382_v62 = vsel %vm1966_vm4, %v1758_v12, %v2174_v3  ;;  %v2383_v24 = vsel %vm1967_vm5, %v1759_v34, %v2175_v46  ;;  %v6405_v44 = vld [vmem:[#allocation62_spill] sm:$0xff]  ;;  %v6406_v12 = vld [vmem:[#allocation63_spill] sm:$0xff]  ;;  %v6407_v34 = vld [vmem:[#allocation64_spill] sm:$0xff] }
 0x227   : > { %v2384_v5 = vsel %vm1968_vm6, %v1760_v23, %v2176_v60  ;;  %v2385_v30 = vsel %vm1969_vm7, %v1761_v25, %v2177_v11  ;;  %v2637_v48 = vmul.f32 %v6399_v58, %v2377_v4  ;;  %v2638_v45 = vmul.f32 %v6400_v13, %v2378_v56  ;;  %v6412_v19 = vld [vmem:[#allocation6_spill] sm:$0xff]  ;;  %v6413_v46 = vld [vmem:[#allocation7_spill] sm:$0xff]  ;;  %v6415_v14 = vld [vmem:[#allocation12_spill] sm:$0xff] }
 0x228   : > { %v2862_v17 = vadd.f32 %v2861_v51, %v2636_v61  ;;  %v2639_v28 = vmul.f32 %v6401_v6, %v2379_v57  ;;  %v464_v1 = vmul.f32 %v6403_v54, %v6402_v38  ;;  %v465_v22 = vmul.f32 %v6404_v55, %v6402_v38  ;;  %v6414_v60 = vld [vmem:[#allocation11_spill] sm:$0xff]  ;;  %v6417_v57 = vld [vmem:[#allocation18_spill] sm:$0xff] }
 0x229   : > { %v2640_v59 = vmul.f32 %v6405_v44, %v2380_v31  ;;  %v2641_v0 = vmul.f32 %v6406_v12, %v2381_v50  ;;  %v2642_v23 = vmul.f32 %v6407_v34, %v2382_v62  ;;  %v2643_v35 = vmul.f32 %v6408_v29, %v2383_v24  ;;  %v6416_v4 = vld [vmem:[#allocation15_spill] sm:$0xff]  ;;  %v6419_v62 = vld [vmem:[#allocation20_spill] sm:$0xff]  ;;  %v6428_v29 = vld [vmem:[#allocation17_spill] sm:$0xff] }
 0x22a   : > { %v2863_v25 = vadd.f32 %v2862_v17, %v2637_v48  ;;  %v2644_v49 = vmul.f32 %v6409_v39, %v2384_v5  ;;  %v2645_v37 = vmul.f32 %v6410_v9, %v2385_v30  ;;  %v466_v33 = vmul.f32 %v6411_v27, %v6402_v38  ;;  %v6418_v51 = vld [vmem:[#allocation19_spill] sm:$0xff]  ;;  %v6420_v5 = vld [vmem:[#allocation22_spill] sm:$0xff]  ;;  %v6429_v9 = vld [vmem:[#allocation21_spill] sm:$0xff] }
 0x22b   : > { %v467_v3 = vmul.f32 %v6412_v19, %v6402_v38  ;;  %v468_v43 = vmul.f32 %v6413_v46, %v6402_v38  ;;  %v469_v11 = vmul.f32 %v6414_v60, %v6402_v38  ;;  %v470_v41 = vmul.f32 %v6415_v14, %v6402_v38  ;;  %v6421_v48 = vld [vmem:[#allocation23_spill] sm:$0xff]  ;;  %v6423_v14 = vld [vmem:[#allocation9_spill] sm:$0xff] }
 0x22c   : > { %v2864_v18 = vadd.f32 %v2863_v25, %v2638_v45  ;;  %v471_v56 = vmul.f32 %v6416_v4, %v6402_v38  ;;  %v472_v61 = vmul.f32 %v6417_v57, %v6402_v38  ;;  %v473_v31 = vmul.f32 %v6418_v51, %v6402_v38  ;;  %v6422_v25 = vld [vmem:[#allocation8_spill] sm:$0xff]  ;;  %v6424_v57 = vld [vmem:[#allocation10_spill] sm:$0xff]  ;;  %v6425_v51 = vld [vmem:[#allocation13_spill] sm:$0xff] }
 0x22d   : > { %v474_v24 = vmul.f32 %v6419_v62, %v6402_v38  ;;  %v475_v30 = vmul.f32 %v6420_v5, %v6402_v38  ;;  %v476_v17 = vmul.f32 %v6421_v48, %v6402_v38  ;;  %v2871_v45 = vsel %vm2735_vm13, %v2645_v37, 0.0  ;;  %v6427_v62 = vld [vmem:[#allocation16_spill] sm:$0xff]  ;;  %v6431_v37 = vld [vmem:[#allocation25_spill] sm:$0xff] }
 0x22e   : > { %v2865_v50 = vadd.f32 %v2864_v18, %v2639_v28  ;;  %v724_v4 = vadd.f32 %v6422_v25, %v464_v1  ;;  %v725_v60 = vadd.f32 %v6423_v14, %v465_v22  ;;  %v726_v46 = vadd.f32 %v6424_v57, %v466_v33  ;;  %v6426_v18 = vld [vmem:[#allocation14_spill] sm:$0xff]  ;;  %v6430_v38 = vld [vmem:[#allocation24_spill] sm:$0xff]  ;;  %v6433_v14 = vld [vmem:[#allocation27_spill] sm:$0xff] }
 0x22f   : > { %v727_v28 = vadd.f32 %v6425_v51, %v467_v3  ;;  %v728_v27 = vadd.f32 %v6426_v18, %v468_v43  ;;  %v729_v39 = vadd.f32 %v6427_v62, %v469_v11  ;;  %v730_v5 = vadd.f32 %v6428_v29, %v470_v41  ;;  %v6432_v25 = vld [vmem:[#allocation26_spill] sm:$0xff]  ;;  %v1358_v3 = vpop.permute.xlu0 %1357  ;;  %v6436_v43 = vld [vmem:[#allocation29_spill] sm:$0xff] }
 0x230   : > { %v2866_v19 = vadd.f32 %v2865_v50, %v2640_v59  ;;  %v731_v34 = vadd.f32 %v6429_v9, %v471_v56  ;;  %v732_v48 = vadd.f32 %v6430_v38, %v472_v61  ;;  %v733_v12 = vadd.f32 %v6431_v37, %v473_v31  ;;  %v6434_v59 = vld [vmem:[#allocation28_spill] sm:$0xff]  ;;  %v6435_v51 = vld [vmem:[#allocation138_spill] sm:$0xff]  ;;  %v6438_v56 = vld [vmem:[#allocation31_spill] sm:$0xff] }
 0x231   : > { %v734_v22 = vadd.f32 %v6432_v25, %v474_v24  ;;  %v735_v33 = vadd.f32 %v6433_v14, %v475_v30  ;;  %v736_v50 = vadd.f32 %v6434_v59, %v476_v17  ;;  %v1048_v18 = vmul.f32 %v6436_v43, %v6435_v51  ;;  %v6437_v11 = vld [vmem:[#allocation30_spill] sm:$0xff]  ;;  %v6439_v61 = vld [vmem:[#allocation32_spill] sm:$0xff]  ;;  %v6442_v59 = vld [vmem:[#allocation35_spill] sm:$0xff] }
 0x232   : > { %v2867_v1 = vadd.f32 %v2866_v19, %v2641_v0  ;;  %v1049_v41 = vmul.f32 %v6437_v11, %v6435_v51  ;;  %v1050_v9 = vmul.f32 %v6438_v56, %v6435_v51  ;;  %v1051_v31 = vmul.f32 %v6439_v61, %v6435_v51  ;;  %v6440_v19 = vld [vmem:[#allocation33_spill] sm:$0xff]  ;;  %v6441_v30 = vld [vmem:[#allocation34_spill] sm:$0xff]  ;;  %v6443_v43 = vld [vmem:[#allocation36_spill] sm:$0xff] }
 0x233   : > { %v1052_v24 = vmul.f32 %v6440_v19, %v6435_v51  ;;  %v1053_v17 = vmul.f32 %v6441_v30, %v6435_v51  ;;  %v1054_v14 = vmul.f32 %v6442_v59, %v6435_v51  ;;  %v1055_v25 = vmul.f32 %v6443_v43, %v6435_v51  ;;  %v6444_v11 = vld [vmem:[#allocation37_spill] sm:$0xff]  ;;  %v6445_v56 = vld [vmem:[#allocation38_spill] sm:$0xff]  ;;  %v6447_v19 = vld [vmem:[#allocation40_spill] sm:$0xff] }
 0x234   : > { %v2868_v0 = vadd.f32 %v2867_v1, %v2642_v23  ;;  %v1056_v37 = vmul.f32 %v6444_v11, %v6435_v51  ;;  %v1057_v38 = vmul.f32 %v6445_v56, %v6435_v51  ;;  %v6446_v23 = vld [vmem:[#allocation39_spill] sm:$0xff]  ;;  %v1059_v29 = vmul.f32 %v6447_v19, %v6435_v51  ;;  %v6448_v62 = vld [vmem:[#allocation41_spill] sm:$0xff] }
 0x235   : > { %v1058_v1 = vmul.f32 %v6446_v23, %v6435_v51  ;;  %v1580_v30 = vmul.f32 %v5989_v21, %v1358_v3  ;;  %v1581_v59 = vmul.f32 %v5990_v47, %v1358_v3  ;;  %v1060_v43 = vmul.f32 %v6448_v62, %v6435_v51 }
 0x236   : > { %v2869_v61 = vadd.f32 %v2868_v0, %v2643_v35  ;;  %v1256_v57 = vadd.f32 %v1048_v18, %v724_v4  ;;  %v1257_v55 = vadd.f32 %v1049_v41, %v725_v60  ;;  %v1258_v11 = vadd.f32 %v1050_v9, %v726_v46 }
 0x237   : > { %v1259_v6 = vadd.f32 %v1051_v31, %v727_v28  ;;  %v1260_v56 = vadd.f32 %v1052_v24, %v728_v27  ;;  %v1261_v13 = vadd.f32 %v1053_v17, %v729_v39  ;;  %v1262_v58 = vadd.f32 %v1054_v14, %v730_v5  ;;  %v6449_v31 = vld [vmem:[#allocation57_spill] sm:$0xff] }
 0x238   : > { %v2870_v44 = vadd.f32 %v2869_v61, %v2644_v49  ;;  %v1263_v23 = vadd.f32 %v1055_v25, %v731_v34  ;;  %v1264_v35 = vadd.f32 %v1056_v37, %v732_v48  ;;  %v1582_v0 = vmul.f32 %v5991_v26, %v1358_v3 }
 0x239   : > { %v1583_v21 = vmul.f32 %v5993_v52, %v1358_v3  ;;  %v1788_v54 = vadd.f32 %v1580_v30, %v1256_v57  ;;  %v1789_v47 = vadd.f32 %v1581_v59, %v1257_v55  ;;  %v1265_v63 = vadd.f32 %v1057_v38, %v733_v12 }
 0x23a   : > { %v2872_v19 = vadd.f32 %v2871_v45, %v2870_v44  ;;  %v1266_v8 = vadd.f32 %v1058_v1, %v734_v22  ;;  %v1584_v4 = vmul.f32 %v5994_v10, %v1358_v3  ;;  %v1585_v9 = vmul.f32 %v5995_v20, %v1358_v3 }
 0x23b   : > { %v1267_v49 = vadd.f32 %v1059_v29, %v735_v33  ;;  %v1586_v39 = vmul.f32 %v5997_v53, %v1358_v3  ;;  %v1587_v34 = vmul.f32 %v5998_v7, %v1358_v3  ;;  %v1588_v27 = vmul.f32 %v6082_v16, %v1358_v3 }
 0x23c   : > { %2873 = vadd.xlane.f32.xlu0 %v2872_v19  ;;  %v1589_v44 = vmul.f32 %v6141_v15, %v1358_v3  ;;  %v1590_v46 = vmul.f32 %v6142_v42, %v1358_v3  ;;  %v1591_v55 = vmul.f32 %v6194_v32, %v1358_v3  ;;  %v1790_v12 = vadd.f32 %v1582_v0, %v1258_v11 }
 0x23d   : > { %v1592_v60 = vmul.f32 %v6144_v2, %v1358_v3  ;;  %v1791_v14 = vadd.f32 %v1583_v21, %v1259_v6  ;;  %v2204_v57 = vmul.f32 0.01, %v1788_v54  ;;  %v2205_v51 = vmul.f32 0.01, %v1789_v47 }
 0x23e   : > { %v1792_v5 = vadd.f32 %v1584_v4, %v1260_v56  ;;  %v1793_v29 = vadd.f32 %v1585_v9, %v1261_v13  ;;  %vm1996_vm8 = vcmp.ge.f32.partialorder %v1788_v54, 0.0  ;;  %vm1997_vm9 = vcmp.ge.f32.partialorder %v1789_v47, 0.0 }
 0x23f   : > { %v1268_v48 = vadd.f32 %v1060_v43, %v736_v50  ;;  %v1794_v45 = vadd.f32 %v1586_v39, %v1262_v58  ;;  %v1795_v25 = vadd.f32 %v1587_v34, %v1263_v23  ;;  %v1796_v28 = vadd.f32 %v1588_v27, %v1264_v35  ;;  %v6450_v35 = vld [vmem:[#allocation58_spill] sm:$0xff]  ;;  %v6452_v27 = vld [vmem:[#allocation3_spill] sm:$0xff] }
 0x240   : > { %v1797_v18 = vadd.f32 %v1589_v44, %v1265_v63  ;;  %v1798_v38 = vadd.f32 %v1590_v46, %v1266_v8  ;;  %v1799_v37 = vadd.f32 %v1591_v55, %v1267_v49  ;;  %v2206_v22 = vmul.f32 0.01, %v1790_v12  ;;  %v6451_v34 = vld [vmem:[#allocation98_spill] sm:$0xff] }
 0x241   : > { %v1800_v33 = vadd.f32 %v1592_v60, %v1268_v48  ;;  %vm1998_vm10 = vcmp.ge.f32.partialorder %v1790_v12, 0.0  ;;  %v2412_v59 = vsel %vm1996_vm8, %v1788_v54, %v2204_v57  ;;  %v2413_v11 = vsel %vm1997_vm9, %v1789_v47, %v2205_v51  ;;  %v6454_v57 = vld [vmem:[#allocation60_spill] sm:$0xff]  ;;  %v6456_v48 = vld [vmem:[#allocation62_spill] sm:$0xff] }
 0x242   : > { %vm1999_vm11 = vcmp.ge.f32.partialorder %v1791_v14, 0.0  ;;  %vm2000_vm12 = vcmp.ge.f32.partialorder %v1792_v5, 0.0  ;;  %vm2001_vm14 = vcmp.ge.f32.partialorder %v1793_v29, 0.0  ;;  %v2207_v21 = vmul.f32 0.01, %v1791_v14 }
 0x243   : > { %vm2002_vm15 = vcmp.ge.f32.partialorder %v1794_v45, 0.0  ;;  %vm2003_vm0 = vcmp.ge.f32.partialorder %v1795_v25, 0.0  ;;  %vm2004_vm1 = vcmp.ge.f32.partialorder %v1796_v28, 0.0  ;;  %v2208_v13 = vmul.f32 0.01, %v1792_v5 }
 0x244   : > { %v2209_v6 = vmul.f32 0.01, %v1793_v29  ;;  %v2414_v58 = vsel %vm1998_vm10, %v1790_v12, %v2206_v22  ;;  %v2672_v50 = vmul.f32 %v6029_v40, %v2412_v59  ;;  %v2673_v8 = vmul.f32 %v6245_v36, %v2413_v11  ;;  %v6453_v12 = vld [vmem:[#allocation59_spill] sm:$0xff] }
 0x245   : > { %vm2005_vm2 = vcmp.ge.f32.partialorder %v1797_v18, 0.0  ;;  %vm2008_vm3 = vcmp.ge.f32.partialorder %v1800_v33, 0.0  ;;  %v2210_v63 = vmul.f32 0.01, %v1794_v45  ;;  %v2211_v3 = vmul.f32 0.01, %v1795_v25 }
 0x246   : > { %v2212_v54 = vmul.f32 0.01, %v1796_v28  ;;  %v2213_v47 = vmul.f32 0.01, %v1797_v18  ;;  %v2216_v43 = vmul.f32 0.01, %v1800_v33  ;;  %v2415_v41 = vsel %vm1999_vm11, %v1791_v14, %v2207_v21 }
 0x247   : > { %v2214_v56 = vmul.f32 0.01, %v1798_v38  ;;  %v2215_v61 = vmul.f32 0.01, %v1799_v37  ;;  %v2674_v19 = vmul.f32 %v6449_v31, %v2414_v58  ;;  %v2905_v24 = vadd.f32 %v2673_v8, %v2672_v50  ;;  %v6460_v11 = vld [vmem:[#allocation67_spill] sm:$0xff]  ;;  %v6463_v50 = vld [vmem:[#allocation5_spill] sm:$0xff] }
 0x248   : > { %vm2006_vm4 = vcmp.ge.f32.partialorder %v1798_v38, 0.0  ;;  %vm2007_vm5 = vcmp.ge.f32.partialorder %v1799_v37, 0.0  ;;  %v2416_v30 = vsel %vm2000_vm12, %v1792_v5, %v2208_v13  ;;  %v2417_v17 = vsel %vm2001_vm14, %v1793_v29, %v2209_v6  ;;  %v6455_v5 = vld [vmem:[#allocation61_spill] sm:$0xff]  ;;  %v6462_v6 = vld [vmem:[#allocation66_spill] sm:$0xff] }
 0x249   : > { %v2418_v23 = vsel %vm2002_vm15, %v1794_v45, %v2210_v63  ;;  %v2419_v1 = vsel %vm2003_vm0, %v1795_v25, %v2211_v3  ;;  %v2675_v0 = vmul.f32 %v6450_v35, %v2415_v41  ;;  %v2906_v4 = vadd.f32 %v2905_v24, %v2674_v19  ;;  %v6457_v25 = vld [vmem:[#allocation4_spill] sm:$0xff]  ;;  %v6464_v63 = vld [vmem:[#allocation6_spill] sm:$0xff]  ;;  %v6466_v41 = vld [vmem:[#allocation11_spill] sm:$0xff] }
 0x24a   : > { %v2420_v9 = vsel %vm2004_vm1, %v1796_v28, %v2212_v54  ;;  %v2421_v49 = vsel %vm2005_vm2, %v1797_v18, %v2213_v47  ;;  %v2424_v39 = vsel %vm2008_vm3, %v1800_v33, %v2216_v43  ;;  %v451_v44 = vmul.f32 %v6452_v27, %v6451_v34  ;;  %v6458_v18 = vld [vmem:[#allocation63_spill] sm:$0xff]  ;;  %v6459_v33 = vld [vmem:[#allocation64_spill] sm:$0xff] }
 0x24b   : > { %v2422_v46 = vsel %vm2006_vm4, %v1798_v38, %v2214_v56  ;;  %v2423_v55 = vsel %vm2007_vm5, %v1799_v37, %v2215_v61  ;;  %v2676_v60 = vmul.f32 %v6453_v12, %v2416_v30  ;;  %v2907_v14 = vadd.f32 %v2906_v4, %v2675_v0  ;;  %v6461_v37 = vld [vmem:[#allocation65_spill] sm:$0xff]  ;;  %v6465_v47 = vld [vmem:[#allocation7_spill] sm:$0xff]  ;;  %v6467_v61 = vld [vmem:[#allocation12_spill] sm:$0xff] }
 0x24c   : > { %v2677_v51 = vmul.f32 %v6454_v57, %v2417_v17  ;;  %v2678_v29 = vmul.f32 %v6455_v5, %v2418_v23  ;;  %v2679_v45 = vmul.f32 %v6456_v48, %v2419_v1  ;;  %v452_v28 = vmul.f32 %v6457_v25, %v6451_v34  ;;  %v6468_v24 = vld [vmem:[#allocation15_spill] sm:$0xff]  ;;  %v6469_v17 = vld [vmem:[#allocation18_spill] sm:$0xff]  ;;  %v6471_v4 = vld [vmem:[#allocation20_spill] sm:$0xff] }
 0x24d   : > { %v2680_v22 = vmul.f32 %v6458_v18, %v2420_v9  ;;  %v2681_v59 = vmul.f32 %v6459_v33, %v2421_v49  ;;  %v2684_v21 = vmul.f32 %v6460_v11, %v2424_v39  ;;  %v2908_v38 = vadd.f32 %v2907_v14, %v2676_v60  ;;  %v6470_v1 = vld [vmem:[#allocation19_spill] sm:$0xff]  ;;  %v6481_v11 = vld [vmem:[#allocation21_spill] sm:$0xff] }
 0x24e   : > { %v2682_v13 = vmul.f32 %v6461_v37, %v2422_v46  ;;  %v2683_v58 = vmul.f32 %v6462_v6, %v2423_v55  ;;  %v453_v8 = vmul.f32 %v6463_v50, %v6451_v34  ;;  %v454_v3 = vmul.f32 %v6464_v63, %v6451_v34  ;;  %v6472_v46 = vld [vmem:[#allocation22_spill] sm:$0xff]  ;;  %v6473_v60 = vld [vmem:[#allocation23_spill] sm:$0xff]  ;;  %v6482_v6 = vld [vmem:[#allocation24_spill] sm:$0xff] }
 0x24f   : > { %v2909_v54 = vadd.f32 %v2908_v38, %v2677_v51  ;;  %v455_v43 = vmul.f32 %v6465_v47, %v6451_v34  ;;  %v456_v56 = vmul.f32 %v6466_v41, %v6451_v34  ;;  %v457_v19 = vmul.f32 %v6467_v61, %v6451_v34  ;;  %v6474_v51 = vld [vmem:[#allocation8_spill] sm:$0xff]  ;;  %v6477_v47 = vld [vmem:[#allocation13_spill] sm:$0xff]  ;;  %v6478_v50 = vld [vmem:[#allocation14_spill] sm:$0xff] }
 0x250   : > { %v458_v30 = vmul.f32 %v6468_v24, %v6451_v34  ;;  %v459_v23 = vmul.f32 %v6469_v17, %v6451_v34  ;;  %v460_v0 = vmul.f32 %v6470_v1, %v6451_v34  ;;  %v461_v9 = vmul.f32 %v6471_v4, %v6451_v34  ;;  %v6475_v24 = vld [vmem:[#allocation9_spill] sm:$0xff]  ;;  %v6476_v17 = vld [vmem:[#allocation10_spill] sm:$0xff] }
 0x251   : > { %v2910_v49 = vadd.f32 %v2909_v54, %v2678_v29  ;;  %v2916_v39 = vsel %vm2735_vm13, %v2684_v21, 0.0  ;;  %v462_v55 = vmul.f32 %v6472_v46, %v6451_v34  ;;  %v463_v14 = vmul.f32 %v6473_v60, %v6451_v34  ;;  %v6479_v29 = vld [vmem:[#allocation16_spill] sm:$0xff]  ;;  %v6480_v21 = vld [vmem:[#allocation17_spill] sm:$0xff] }
 0x252   : > { %v711_v38 = vadd.f32 %v6474_v51, %v451_v44  ;;  %v712_v61 = vadd.f32 %v6475_v24, %v452_v28  ;;  %v713_v41 = vadd.f32 %v6476_v17, %v453_v8  ;;  %v714_v1 = vadd.f32 %v6477_v47, %v454_v3  ;;  %v6483_v34 = vld [vmem:[#allocation25_spill] sm:$0xff]  ;;  %v6484_v44 = vld [vmem:[#allocation26_spill] sm:$0xff]  ;;  %v1354_v28 = vpop.permute.xlu1 %1353  ;;  %v6485_v8 = vld [vmem:[#allocation27_spill] sm:$0xff] }
 0x253   : > { %v2911_v63 = vadd.f32 %v2910_v49, %v2679_v45  ;;  %v715_v4 = vadd.f32 %v6478_v50, %v455_v43  ;;  %v716_v54 = vadd.f32 %v6479_v29, %v456_v56  ;;  %v717_v25 = vadd.f32 %v6480_v21, %v457_v19  ;;  %v6486_v3 = vld [vmem:[#allocation28_spill] sm:$0xff]  ;;  %v6488_v43 = vld [vmem:[#allocation29_spill] sm:$0xff]  ;;  %v6489_v56 = vld [vmem:[#allocation30_spill] sm:$0xff] }
 0x254   : > { %v718_v46 = vadd.f32 %v6481_v11, %v458_v30  ;;  %v719_v37 = vadd.f32 %v6482_v6, %v459_v23  ;;  %v720_v60 = vadd.f32 %v6483_v34, %v460_v0  ;;  %v721_v51 = vadd.f32 %v6484_v44, %v461_v9  ;;  %v6487_v49 = vld [vmem:[#allocation148_spill] sm:$0xff]  ;;  %v6490_v30 = vld [vmem:[#allocation31_spill] sm:$0xff]  ;;  %v6492_v9 = vld [vmem:[#allocation33_spill] sm:$0xff] }
 0x255   : > { %v2912_v24 = vadd.f32 %v2911_v63, %v2680_v22  ;;  %v722_v17 = vadd.f32 %v6485_v8, %v462_v55  ;;  %v723_v45 = vadd.f32 %v6486_v3, %v463_v14  ;;  %v1035_v50 = vmul.f32 %v6488_v43, %v6487_v49  ;;  %v6491_v23 = vld [vmem:[#allocation32_spill] sm:$0xff]  ;;  %v6493_v63 = vld [vmem:[#allocation34_spill] sm:$0xff]  ;;  %v6494_v14 = vld [vmem:[#allocation35_spill] sm:$0xff] }
 0x256   : > { %v1036_v19 = vmul.f32 %v6489_v56, %v6487_v49  ;;  %v1037_v11 = vmul.f32 %v6490_v30, %v6487_v49  ;;  %v1038_v0 = vmul.f32 %v6491_v23, %v6487_v49  ;;  %v1039_v44 = vmul.f32 %v6492_v9, %v6487_v49  ;;  %v6495_v43 = vld [vmem:[#allocation36_spill] sm:$0xff]  ;;  %v6496_v56 = vld [vmem:[#allocation37_spill] sm:$0xff]  ;;  %v6497_v30 = vld [vmem:[#allocation38_spill] sm:$0xff] }
 0x257   : > { %v2913_v22 = vadd.f32 %v2912_v24, %v2681_v59  ;;  %v1040_v55 = vmul.f32 %v6493_v63, %v6487_v49  ;;  %v1041_v3 = vmul.f32 %v6494_v14, %v6487_v49  ;;  %v1042_v8 = vmul.f32 %v6495_v43, %v6487_v49  ;;  %v6498_v23 = vld [vmem:[#allocation39_spill] sm:$0xff]  ;;  %v6499_v9 = vld [vmem:[#allocation42_spill] sm:$0xff]  ;;  %v6500_v63 = vld [vmem:[#allocation40_spill] sm:$0xff] }
 0x258   : > { %v1043_v34 = vmul.f32 %v6496_v56, %v6487_v49  ;;  %v1044_v6 = vmul.f32 %v6497_v30, %v6487_v49  ;;  %v1045_v21 = vmul.f32 %v6498_v23, %v6487_v49  ;;  %v1567_v59 = vmul.f32 %v6499_v9, %v1354_v28  ;;  %v6501_v47 = vld [vmem:[#allocation43_spill] sm:$0xff] }
 0x259   : > { %v2914_v24 = vadd.f32 %v2913_v22, %v2682_v13  ;;  %v1046_v29 = vmul.f32 %v6500_v63, %v6487_v49  ;;  %v1047_v14 = vmul.f32 %v6448_v62, %v6487_v49  ;;  %v1568_v43 = vmul.f32 %v6501_v47, %v1354_v28 }
 0x25a   : > { %v1243_v33 = vadd.f32 %v1035_v50, %v711_v38  ;;  %v1244_v18 = vadd.f32 %v1036_v19, %v712_v61  ;;  %v1245_v56 = vadd.f32 %v1037_v11, %v713_v41  ;;  %v1246_v48 = vadd.f32 %v1038_v0, %v714_v1 }
 0x25b   : > { %v2915_v27 = vadd.f32 %v2914_v24, %v2683_v58  ;;  %v1247_v30 = vadd.f32 %v1039_v44, %v715_v4  ;;  %v1248_v5 = vadd.f32 %v1040_v55, %v716_v54  ;;  %v1569_v23 = vmul.f32 %v5991_v26, %v1354_v28 }
 0x25c   : > { %v1249_v57 = vadd.f32 %v1041_v3, %v717_v25  ;;  %v1250_v9 = vadd.f32 %v1042_v8, %v718_v46  ;;  %v1251_v13 = vadd.f32 %v1043_v34, %v719_v37  ;;  %v1775_v22 = vadd.f32 %v1567_v59, %v1243_v33  ;;  %v6502_v59 = vld [vmem:[#allocation58_spill] sm:$0xff] }
 0x25d   : > { %v2917_v12 = vadd.f32 %v2916_v39, %v2915_v27  ;;  %v1252_v63 = vadd.f32 %v1044_v6, %v720_v60  ;;  %v1570_v35 = vmul.f32 %v5993_v52, %v1354_v28  ;;  %v1776_v49 = vadd.f32 %v1568_v43, %v1244_v18 }
 0x25e   : > { %v1253_v62 = vadd.f32 %v1045_v21, %v721_v51  ;;  %v1571_v50 = vmul.f32 %v5994_v10, %v1354_v28  ;;  %v1572_v11 = vmul.f32 %v5995_v20, %v1354_v28  ;;  %v1573_v58 = vmul.f32 %v5997_v53, %v1354_v28 }
 0x25f   : > { %2918 = vadd.xlane.f32.xlu1 %v2917_v12  ;;  %v1574_v41 = vmul.f32 %v5998_v7, %v1354_v28  ;;  %v1575_v25 = vmul.f32 %v6082_v16, %v1354_v28  ;;  %v1576_v37 = vmul.f32 %v6141_v15, %v1354_v28  ;;  %v1777_v33 = vadd.f32 %v1569_v23, %v1245_v56 }
 0x260   : > { %v1577_v27 = vmul.f32 %v6142_v42, %v1354_v28  ;;  %v1578_v6 = vmul.f32 %v6194_v32, %v1354_v28  ;;  %v1579_v18 = vmul.f32 %v6144_v2, %v1354_v28  ;;  %v2191_v61 = vmul.f32 0.01, %v1775_v22 }
 0x261   : > { %v1778_v1 = vadd.f32 %v1570_v35, %v1246_v48  ;;  %vm1983_vm6 = vcmp.ge.f32.partialorder %v1775_v22, 0.0  ;;  %vm1984_vm7 = vcmp.ge.f32.partialorder %v1776_v49, 0.0  ;;  %v2192_v4 = vmul.f32 0.01, %v1776_v49 }
 0x262   : > { %v1254_v39 = vadd.f32 %v1046_v29, %v722_v17  ;;  %v1779_v12 = vadd.f32 %v1571_v50, %v1247_v30  ;;  %v1780_v46 = vadd.f32 %v1572_v11, %v1248_v5  ;;  %v1781_v60 = vadd.f32 %v1573_v58, %v1249_v57 }
 0x263   : > { %v1255_v51 = vadd.f32 %v1047_v14, %v723_v45  ;;  %v1782_v38 = vadd.f32 %v1574_v41, %v1250_v9  ;;  %v1783_v54 = vadd.f32 %v1575_v25, %v1251_v13  ;;  %v2193_v21 = vmul.f32 0.01, %v1777_v33  ;;  %v6503_v25 = vld [vmem:[#allocation59_spill] sm:$0xff] }
 0x264   : > { %v1784_v34 = vadd.f32 %v1576_v37, %v1252_v63  ;;  %vm1985_vm8 = vcmp.ge.f32.partialorder %v1777_v33, 0.0  ;;  %v2399_v44 = vsel %vm1983_vm6, %v1775_v22, %v2191_v61  ;;  %v2400_v8 = vsel %vm1984_vm7, %v1776_v49, %v2192_v4 }
 0x265   : > { %v1785_v3 = vadd.f32 %v1577_v27, %v1253_v62  ;;  %v1786_v43 = vadd.f32 %v1578_v6, %v1254_v39  ;;  %v1787_v28 = vadd.f32 %v1579_v18, %v1255_v51  ;;  %v2194_v56 = vmul.f32 0.01, %v1778_v1  ;;  %v6504_v18 = vld [vmem:[#allocation60_spill] sm:$0xff]  ;;  %v6508_v51 = vld [vmem:[#allocation62_spill] sm:$0xff] }
 0x266   : > { %vm1986_vm9 = vcmp.ge.f32.partialorder %v1778_v1, 0.0  ;;  %vm1987_vm10 = vcmp.ge.f32.partialorder %v1779_v12, 0.0  ;;  %vm1988_vm11 = vcmp.ge.f32.partialorder %v1780_v46, 0.0  ;;  %vm1989_vm12 = vcmp.ge.f32.partialorder %v1781_v60, 0.0 }
 0x267   : > { %v2195_v35 = vmul.f32 0.01, %v1779_v12  ;;  %v2401_v48 = vsel %vm1985_vm8, %v1777_v33, %v2193_v21  ;;  %v2659_v57 = vmul.f32 %v6029_v40, %v2399_v44  ;;  %v2660_v5 = vmul.f32 %v6245_v36, %v2400_v8  ;;  %v6509_v21 = vld [vmem:[#allocation63_spill] sm:$0xff]  ;;  %v6510_v44 = vld [vmem:[#allocation64_spill] sm:$0xff]  ;;  %v6511_v8 = vld [vmem:[#allocation65_spill] sm:$0xff] }
 0x268   : > { %vm1990_vm14 = vcmp.ge.f32.partialorder %v1782_v38, 0.0  ;;  %vm1991_vm15 = vcmp.ge.f32.partialorder %v1783_v54, 0.0  ;;  %vm1992_vm0 = vcmp.ge.f32.partialorder %v1784_v34, 0.0  ;;  %v2196_v17 = vmul.f32 0.01, %v1780_v46 }
 0x269   : > { %v2197_v29 = vmul.f32 0.01, %v1781_v60  ;;  %v2198_v45 = vmul.f32 0.01, %v1782_v38  ;;  %v2199_v62 = vmul.f32 0.01, %v1783_v54  ;;  %v2402_v19 = vsel %vm1986_vm9, %v1778_v1, %v2194_v56 }
 0x26a   : > { %v2200_v30 = vmul.f32 0.01, %v1784_v34  ;;  %v2201_v23 = vmul.f32 0.01, %v1785_v3  ;;  %v2661_v0 = vmul.f32 %v6449_v31, %v2401_v48  ;;  %v2890_v9 = vadd.f32 %v2660_v5, %v2659_v57  ;;  %v6505_v1 = vld [vmem:[#allocation61_spill] sm:$0xff]  ;;  %v6512_v56 = vld [vmem:[#allocation66_spill] sm:$0xff] }
 0x26b   : > { %vm1993_vm1 = vcmp.ge.f32.partialorder %v1785_v3, 0.0  ;;  %v2202_v63 = vmul.f32 0.01, %v1786_v43  ;;  %v2203_v55 = vmul.f32 0.01, %v1787_v28  ;;  %v2403_v14 = vsel %vm1987_vm10, %v1779_v12, %v2195_v35  ;;  %v6506_v12 = vld [vmem:[#allocation114_spill] sm:$0xff] }
 0x26c   : > { %vm1994_vm2 = vcmp.ge.f32.partialorder %v1786_v43, 0.0  ;;  %vm1995_vm3 = vcmp.ge.f32.partialorder %v1787_v28, 0.0  ;;  %v2662_v24 = vmul.f32 %v6502_v59, %v2402_v19  ;;  %v2891_v13 = vadd.f32 %v2890_v9, %v2661_v0  ;;  %v6514_v57 = vld [vmem:[#allocation4_spill] sm:$0xff]  ;;  %v6517_v19 = vld [vmem:[#allocation7_spill] sm:$0xff] }
 0x26d   : > { %v2404_v22 = vsel %vm1988_vm11, %v1780_v46, %v2196_v17  ;;  %v2405_v49 = vsel %vm1989_vm12, %v1781_v60, %v2197_v29  ;;  %v2406_v50 = vsel %vm1990_vm14, %v1782_v38, %v2198_v45  ;;  %v2407_v11 = vsel %vm1991_vm15, %v1783_v54, %v2199_v62  ;;  %v6507_v46 = vld [vmem:[#allocation3_spill] sm:$0xff]  ;;  %v6515_v17 = vld [vmem:[#allocation5_spill] sm:$0xff]  ;;  %v6516_v45 = vld [vmem:[#allocation6_spill] sm:$0xff] }
 0x26e   : > { %v2408_v58 = vsel %vm1992_vm0, %v1784_v34, %v2200_v30  ;;  %v2409_v41 = vsel %vm1993_vm1, %v1785_v3, %v2201_v23  ;;  %v2663_v37 = vmul.f32 %v6503_v25, %v2403_v14  ;;  %v2892_v33 = vadd.f32 %v2891_v13, %v2662_v24  ;;  %v6518_v23 = vld [vmem:[#allocation11_spill] sm:$0xff]  ;;  %v6521_v13 = vld [vmem:[#allocation18_spill] sm:$0xff] }
 0x26f   : > { %v2410_v27 = vsel %vm1994_vm2, %v1786_v43, %v2202_v63  ;;  %v2411_v6 = vsel %vm1995_vm3, %v1787_v28, %v2203_v55  ;;  %v2664_v61 = vmul.f32 %v6504_v18, %v2404_v22  ;;  %v2665_v4 = vmul.f32 %v6505_v1, %v2405_v49  ;;  %v6513_v43 = vld [vmem:[#allocation67_spill] sm:$0xff]  ;;  %v6519_v63 = vld [vmem:[#allocation12_spill] sm:$0xff] }
 0x270   : > { %v2893_v39 = vadd.f32 %v2892_v33, %v2663_v37  ;;  %v490_v60 = vmul.f32 %v6507_v46, %v6506_v12  ;;  %v2666_v38 = vmul.f32 %v6508_v51, %v2406_v50  ;;  %v2667_v54 = vmul.f32 %v6509_v21, %v2407_v11  ;;  %v6520_v14 = vld [vmem:[#allocation15_spill] sm:$0xff]  ;;  %v6523_v11 = vld [vmem:[#allocation20_spill] sm:$0xff] }
 0x271   : > { %v2668_v34 = vmul.f32 %v6510_v44, %v2408_v58  ;;  %v2669_v3 = vmul.f32 %v6511_v8, %v2409_v41  ;;  %v2670_v35 = vmul.f32 %v6512_v56, %v2410_v27  ;;  %v2671_v28 = vmul.f32 %v6513_v43, %v2411_v6  ;;  %v6522_v49 = vld [vmem:[#allocation19_spill] sm:$0xff]  ;;  %v6524_v41 = vld [vmem:[#allocation22_spill] sm:$0xff]  ;;  %v6533_v8 = vld [vmem:[#allocation21_spill] sm:$0xff] }
 0x272   : > { %v2894_v48 = vadd.f32 %v2893_v39, %v2664_v61  ;;  %v491_v5 = vmul.f32 %v6514_v57, %v6506_v12  ;;  %v492_v29 = vmul.f32 %v6515_v17, %v6506_v12  ;;  %v493_v62 = vmul.f32 %v6516_v45, %v6506_v12  ;;  %v6525_v33 = vld [vmem:[#allocation23_spill] sm:$0xff] }
 0x273   : > { %v494_v30 = vmul.f32 %v6517_v19, %v6506_v12  ;;  %v495_v0 = vmul.f32 %v6518_v23, %v6506_v12  ;;  %v496_v55 = vmul.f32 %v6519_v63, %v6506_v12  ;;  %v497_v24 = vmul.f32 %v6520_v14, %v6506_v12  ;;  %v6529_v23 = vld [vmem:[#allocation13_spill] sm:$0xff]  ;;  %v6530_v19 = vld [vmem:[#allocation14_spill] sm:$0xff] }
 0x274   : > { %v2895_v9 = vadd.f32 %v2894_v48, %v2665_v4  ;;  %v498_v22 = vmul.f32 %v6521_v13, %v6506_v12  ;;  %v499_v50 = vmul.f32 %v6522_v49, %v6506_v12  ;;  %v500_v58 = vmul.f32 %v6523_v11, %v6506_v12  ;;  %v6526_v4 = vld [vmem:[#allocation8_spill] sm:$0xff]  ;;  %v6527_v48 = vld [vmem:[#allocation9_spill] sm:$0xff]  ;;  %v6528_v13 = vld [vmem:[#allocation10_spill] sm:$0xff] }
 0x275   : > { %v501_v37 = vmul.f32 %v6524_v41, %v6506_v12  ;;  %v502_v27 = vmul.f32 %v6525_v33, %v6506_v12  ;;  %v2901_v61 = vsel %vm2735_vm13, %v2671_v28, 0.0  ;;  %v750_v39 = vadd.f32 %v6526_v4, %v490_v60  ;;  %v6531_v11 = vld [vmem:[#allocation16_spill] sm:$0xff]  ;;  %v6532_v41 = vld [vmem:[#allocation17_spill] sm:$0xff]  ;;  %v1366_v28 = vpop.permute.xlu0 %1365  ;;  %v6536_v4 = vld [vmem:[#allocation26_spill] sm:$0xff] }
 0x276   : > { %v2896_v6 = vadd.f32 %v2895_v9, %v2666_v38  ;;  %v751_v14 = vadd.f32 %v6527_v48, %v491_v5  ;;  %v752_v63 = vadd.f32 %v6528_v13, %v492_v29  ;;  %v753_v49 = vadd.f32 %v6529_v23, %v493_v62  ;;  %v6534_v38 = vld [vmem:[#allocation24_spill] sm:$0xff]  ;;  %v6535_v33 = vld [vmem:[#allocation25_spill] sm:$0xff]  ;;  %v6537_v48 = vld [vmem:[#allocation27_spill] sm:$0xff] }
 0x277   : > { %v754_v45 = vadd.f32 %v6530_v19, %v494_v30  ;;  %v755_v17 = vadd.f32 %v6531_v11, %v495_v0  ;;  %v756_v56 = vadd.f32 %v6532_v41, %v496_v55  ;;  %v757_v12 = vadd.f32 %v6533_v8, %v497_v24  ;;  %v6538_v13 = vld [vmem:[#allocation28_spill] sm:$0xff]  ;;  %v6539_v30 = vld [vmem:[#allocation149_spill] sm:$0xff]  ;;  %v6542_v24 = vld [vmem:[#allocation31_spill] sm:$0xff] }
 0x278   : > { %v2897_v57 = vadd.f32 %v2896_v6, %v2667_v54  ;;  %v758_v9 = vadd.f32 %v6534_v38, %v498_v22  ;;  %v759_v60 = vadd.f32 %v6535_v33, %v499_v50  ;;  %v760_v5 = vadd.f32 %v6536_v4, %v500_v58  ;;  %v6540_v19 = vld [vmem:[#allocation29_spill] sm:$0xff]  ;;  %v6541_v54 = vld [vmem:[#allocation30_spill] sm:$0xff]  ;;  %v6543_v22 = vld [vmem:[#allocation32_spill] sm:$0xff] }
 0x279   : > { %v761_v29 = vadd.f32 %v6537_v48, %v501_v37  ;;  %v762_v62 = vadd.f32 %v6538_v13, %v502_v27  ;;  %v1074_v0 = vmul.f32 %v6540_v19, %v6539_v30  ;;  %v1075_v55 = vmul.f32 %v6541_v54, %v6539_v30  ;;  %v6544_v50 = vld [vmem:[#allocation33_spill] sm:$0xff]  ;;  %v6545_v37 = vld [vmem:[#allocation34_spill] sm:$0xff]  ;;  %v6547_v13 = vld [vmem:[#allocation36_spill] sm:$0xff] }
 0x27a   : > { %v2898_v23 = vadd.f32 %v2897_v57, %v2668_v34  ;;  %v1076_v6 = vmul.f32 %v6542_v24, %v6539_v30  ;;  %v1077_v38 = vmul.f32 %v6543_v22, %v6539_v30  ;;  %v1078_v58 = vmul.f32 %v6544_v50, %v6539_v30  ;;  %v6546_v34 = vld [vmem:[#allocation35_spill] sm:$0xff]  ;;  %v6548_v54 = vld [vmem:[#allocation42_spill] sm:$0xff]  ;;  %v6549_v33 = vld [vmem:[#allocation37_spill] sm:$0xff] }
 0x27b   : > { %v1079_v48 = vmul.f32 %v6545_v37, %v6539_v30  ;;  %v1080_v57 = vmul.f32 %v6546_v34, %v6539_v30  ;;  %v1081_v19 = vmul.f32 %v6547_v13, %v6539_v30  ;;  %v1606_v4 = vmul.f32 %v6548_v54, %v1366_v28  ;;  %v6550_v8 = vld [vmem:[#allocation38_spill] sm:$0xff]  ;;  %v6551_v41 = vld [vmem:[#allocation39_spill] sm:$0xff]  ;;  %v6552_v11 = vld [vmem:[#allocation40_spill] sm:$0xff] }
 0x27c   : > { %v2899_v27 = vadd.f32 %v2898_v23, %v2669_v3  ;;  %v1607_v24 = vmul.f32 %v6501_v47, %v1366_v28  ;;  %v1082_v22 = vmul.f32 %v6549_v33, %v6539_v30  ;;  %v1083_v50 = vmul.f32 %v6550_v8, %v6539_v30  ;;  %v6553_v23 = vld [vmem:[#allocation41_spill] sm:$0xff] }
 0x27d   : > { %v1084_v37 = vmul.f32 %v6551_v41, %v6539_v30  ;;  %v1085_v34 = vmul.f32 %v6552_v11, %v6539_v30  ;;  %v1086_v13 = vmul.f32 %v6553_v23, %v6539_v30  ;;  %v1282_v43 = vadd.f32 %v1074_v0, %v750_v39 }
 0x27e   : > { %v2900_v3 = vadd.f32 %v2899_v27, %v2670_v35  ;;  %v1283_v54 = vadd.f32 %v1075_v55, %v751_v14  ;;  %v1284_v44 = vadd.f32 %v1076_v6, %v752_v63  ;;  %v1285_v47 = vadd.f32 %v1077_v38, %v753_v49 }
 0x27f   : > { %v1286_v21 = vadd.f32 %v1078_v58, %v754_v45  ;;  %v1608_v33 = vmul.f32 %v5991_v26, %v1366_v28  ;;  %v1287_v51 = vadd.f32 %v1079_v48, %v755_v17  ;;  %v1814_v8 = vadd.f32 %v1606_v4, %v1282_v43 }
 0x280   : > { %v2902_v46 = vadd.f32 %v2901_v61, %v2900_v3  ;;  %v1815_v1 = vadd.f32 %v1607_v24, %v1283_v54  ;;  %v1288_v18 = vadd.f32 %v1080_v57, %v756_v56  ;;  %v1289_v41 = vadd.f32 %v1081_v19, %v757_v12 }
 0x281   : > { %v1290_v25 = vadd.f32 %v1082_v22, %v758_v9  ;;  %v1609_v11 = vmul.f32 %v5993_v52, %v1366_v28  ;;  %v1291_v35 = vadd.f32 %v1083_v50, %v759_v60  ;;  %v1292_v27 = vadd.f32 %v1084_v37, %v760_v5 }
 0x282   : > { %2903 = vadd.xlane.f32.xlu0 %v2902_v46  ;;  %v1293_v30 = vadd.f32 %v1085_v34, %v761_v29  ;;  %v1610_v14 = vmul.f32 %v5994_v10, %v1366_v28  ;;  %v1611_v63 = vmul.f32 %v5995_v20, %v1366_v28  ;;  %v1612_v45 = vmul.f32 %v5997_v53, %v1366_v28 }
 0x283   : > { %v1613_v49 = vmul.f32 %v5998_v7, %v1366_v28  ;;  %v1816_v17 = vadd.f32 %v1608_v33, %v1284_v44  ;;  %v1614_v43 = vmul.f32 %v6082_v16, %v1366_v28  ;;  %v1615_v56 = vmul.f32 %v6141_v15, %v1366_v28 }
 0x284   : > { %v2230_v19 = vmul.f32 0.01, %v1814_v8  ;;  %v2231_v61 = vmul.f32 0.01, %v1815_v1  ;;  %v1618_v46 = vmul.f32 %v6144_v2, %v1366_v28  ;;  %v1817_v4 = vadd.f32 %v1609_v11, %v1285_v47 }
 0x285   : > { %vm2022_vm4 = vcmp.ge.f32.partialorder %v1814_v8, 0.0  ;;  %vm2023_vm5 = vcmp.ge.f32.partialorder %v1815_v1, 0.0  ;;  %v1294_v39 = vadd.f32 %v1086_v13, %v762_v62  ;;  %v1616_v48 = vmul.f32 %v6142_v42, %v1366_v28 }
 0x286   : > { %v1617_v12 = vmul.f32 %v6194_v32, %v1366_v28  ;;  %v1818_v38 = vadd.f32 %v1610_v14, %v1286_v21  ;;  %v1819_v9 = vadd.f32 %v1611_v63, %v1287_v51  ;;  %v1820_v60 = vadd.f32 %v1612_v45, %v1288_v18  ;;  %v6554_v14 = vld [vmem:[#allocation59_spill] sm:$0xff] }
 0x287   : > { %v1821_v44 = vadd.f32 %v1613_v49, %v1289_v41  ;;  %v2232_v33 = vmul.f32 0.01, %v1816_v17  ;;  %v1822_v5 = vadd.f32 %v1614_v43, %v1290_v25  ;;  %vm2024_vm6 = vcmp.ge.f32.partialorder %v1816_v17, 0.0 }
 0x288   : > { %v2438_v29 = vsel %vm2022_vm4, %v1814_v8, %v2230_v19  ;;  %v2439_v0 = vsel %vm2023_vm5, %v1815_v1, %v2231_v61  ;;  %v1823_v54 = vadd.f32 %v1615_v56, %v1291_v35  ;;  %v1826_v55 = vadd.f32 %v1618_v46, %v1294_v39  ;;  %v6555_v61 = vld [vmem:[#allocation60_spill] sm:$0xff]  ;;  %v6556_v39 = vld [vmem:[#allocation61_spill] sm:$0xff] }
 0x289   : > { %v2233_v24 = vmul.f32 0.01, %v1817_v4  ;;  %v1824_v47 = vadd.f32 %v1616_v48, %v1292_v27  ;;  %v1825_v11 = vadd.f32 %v1617_v12, %v1293_v30  ;;  %vm2025_vm7 = vcmp.ge.f32.partialorder %v1817_v4, 0.0  ;;  %v6557_v12 = vld [vmem:[#allocation62_spill] sm:$0xff] }
 0x28a   : > { %vm2026_vm8 = vcmp.ge.f32.partialorder %v1818_v38, 0.0  ;;  %v2234_v13 = vmul.f32 0.01, %v1818_v38  ;;  %v2440_v62 = vsel %vm2024_vm6, %v1816_v17, %v2232_v33  ;;  %v2698_v28 = vmul.f32 %v6029_v40, %v2438_v29  ;;  %v6560_v33 = vld [vmem:[#allocation63_spill] sm:$0xff] }
 0x28b   : > { %v2699_v51 = vmul.f32 %v6245_v36, %v2439_v0  ;;  %vm2027_vm9 = vcmp.ge.f32.partialorder %v1819_v9, 0.0  ;;  %vm2028_vm10 = vcmp.ge.f32.partialorder %v1820_v60, 0.0  ;;  %vm2029_vm11 = vcmp.ge.f32.partialorder %v1821_v44, 0.0  ;;  %v6561_v0 = vld [vmem:[#allocation64_spill] sm:$0xff] }
 0x28c   : > { %vm2030_vm12 = vcmp.ge.f32.partialorder %v1822_v5, 0.0  ;;  %vm2031_vm14 = vcmp.ge.f32.partialorder %v1823_v54, 0.0  ;;  %vm2034_vm15 = vcmp.ge.f32.partialorder %v1826_v55, 0.0  ;;  %v2235_v25 = vmul.f32 0.01, %v1819_v9 }
 0x28d   : > { %v2441_v18 = vsel %vm2025_vm7, %v1817_v4, %v2233_v24  ;;  %v2236_v1 = vmul.f32 0.01, %v1820_v60  ;;  %v2237_v21 = vmul.f32 0.01, %v1821_v44  ;;  %v2700_v8 = vmul.f32 %v6449_v31, %v2440_v62  ;;  %v6562_v24 = vld [vmem:[#allocation67_spill] sm:$0xff] }
 0x28e   : > { %v2935_v41 = vadd.f32 %v2699_v51, %v2698_v28  ;;  %v2238_v6 = vmul.f32 0.01, %v1822_v5  ;;  %v2239_v22 = vmul.f32 0.01, %v1823_v54  ;;  %v2242_v50 = vmul.f32 0.01, %v1826_v55 }
 0x28f   : > { %v2442_v58 = vsel %vm2026_vm8, %v1818_v38, %v2234_v13  ;;  %v2240_v37 = vmul.f32 0.01, %v1824_v47  ;;  %v2241_v34 = vmul.f32 0.01, %v1825_v11  ;;  %v2701_v57 = vmul.f32 %v6502_v59, %v2441_v18  ;;  %v6565_v28 = vld [vmem:[#allocation4_spill] sm:$0xff] }
 0x290   : > { %v2936_v3 = vadd.f32 %v2935_v41, %v2700_v8  ;;  %vm2032_vm0 = vcmp.ge.f32.partialorder %v1824_v47, 0.0  ;;  %vm2033_vm1 = vcmp.ge.f32.partialorder %v1825_v11, 0.0  ;;  %v2443_v35 = vsel %vm2027_vm9, %v1819_v9, %v2235_v25  ;;  %v6558_v9 = vld [vmem:[#allocation107_spill] sm:$0xff]  ;;  %v6566_v25 = vld [vmem:[#allocation5_spill] sm:$0xff] }
 0x291   : > { %v2444_v27 = vsel %vm2028_vm10, %v1820_v60, %v2236_v1  ;;  %v2445_v30 = vsel %vm2029_vm11, %v1821_v44, %v2237_v21  ;;  %v2702_v63 = vmul.f32 %v6554_v14, %v2442_v58  ;;  %v2446_v49 = vsel %vm2030_vm12, %v1822_v5, %v2238_v6  ;;  %v6559_v60 = vld [vmem:[#allocation3_spill] sm:$0xff]  ;;  %v6567_v21 = vld [vmem:[#allocation6_spill] sm:$0xff]  ;;  %v6570_v58 = vld [vmem:[#allocation12_spill] sm:$0xff] }
 0x292   : > { %v2937_v45 = vadd.f32 %v2936_v3, %v2701_v57  ;;  %v2447_v17 = vsel %vm2031_vm14, %v1823_v54, %v2239_v22  ;;  %v2450_v43 = vsel %vm2034_vm15, %v1826_v55, %v2242_v50  ;;  %v2448_v56 = vsel %vm2032_vm0, %v1824_v47, %v2240_v37  ;;  %v6563_v55 = vld [vmem:[#allocation65_spill] sm:$0xff]  ;;  %v6568_v41 = vld [vmem:[#allocation7_spill] sm:$0xff]  ;;  %v6572_v3 = vld [vmem:[#allocation18_spill] sm:$0xff] }
 0x293   : > { %v2449_v19 = vsel %vm2033_vm1, %v1825_v11, %v2241_v34  ;;  %v2703_v46 = vmul.f32 %v6555_v61, %v2443_v35  ;;  %v2704_v48 = vmul.f32 %v6556_v39, %v2444_v27  ;;  %v2705_v38 = vmul.f32 %v6557_v12, %v2445_v30  ;;  %v6564_v11 = vld [vmem:[#allocation66_spill] sm:$0xff]  ;;  %v6569_v22 = vld [vmem:[#allocation11_spill] sm:$0xff] }
 0x294   : > { %v2938_v4 = vadd.f32 %v2937_v45, %v2702_v63  ;;  %v477_v44 = vmul.f32 %v6559_v60, %v6558_v9  ;;  %v2706_v29 = vmul.f32 %v6560_v33, %v2446_v49  ;;  %v2707_v5 = vmul.f32 %v6561_v0, %v2447_v17  ;;  %v6571_v34 = vld [vmem:[#allocation15_spill] sm:$0xff]  ;;  %v6574_v49 = vld [vmem:[#allocation20_spill] sm:$0xff] }
 0x295   : > { %v2710_v54 = vmul.f32 %v6562_v24, %v2450_v43  ;;  %v2708_v47 = vmul.f32 %v6563_v55, %v2448_v56  ;;  %v2709_v62 = vmul.f32 %v6564_v11, %v2449_v19  ;;  %v478_v51 = vmul.f32 %v6565_v28, %v6558_v9  ;;  %v6573_v27 = vld [vmem:[#allocation19_spill] sm:$0xff]  ;;  %v6575_v43 = vld [vmem:[#allocation22_spill] sm:$0xff]  ;;  %v6585_v0 = vld [vmem:[#allocation24_spill] sm:$0xff] }
 0x296   : > { %v2939_v13 = vadd.f32 %v2938_v4, %v2703_v46  ;;  %v479_v18 = vmul.f32 %v6566_v25, %v6558_v9  ;;  %v480_v8 = vmul.f32 %v6567_v21, %v6558_v9  ;;  %v481_v6 = vmul.f32 %v6568_v41, %v6558_v9  ;;  %v6576_v19 = vld [vmem:[#allocation23_spill] sm:$0xff]  ;;  %v6577_v4 = vld [vmem:[#allocation8_spill] sm:$0xff]  ;;  %v6583_v25 = vld [vmem:[#allocation17_spill] sm:$0xff] }
 0x297   : > { %v482_v50 = vmul.f32 %v6569_v22, %v6558_v9  ;;  %v483_v37 = vmul.f32 %v6570_v58, %v6558_v9  ;;  %v484_v57 = vmul.f32 %v6571_v34, %v6558_v9  ;;  %v485_v35 = vmul.f32 %v6572_v3, %v6558_v9  ;;  %v6579_v3 = vld [vmem:[#allocation10_spill] sm:$0xff]  ;;  %v6582_v41 = vld [vmem:[#allocation16_spill] sm:$0xff] }
 0x298   : > { %v2940_v1 = vadd.f32 %v2939_v13, %v2704_v48  ;;  %v486_v30 = vmul.f32 %v6573_v27, %v6558_v9  ;;  %v2946_v45 = vsel %vm2735_vm13, %v2710_v54, 0.0  ;;  %v487_v17 = vmul.f32 %v6574_v49, %v6558_v9  ;;  %v6578_v13 = vld [vmem:[#allocation9_spill] sm:$0xff]  ;;  %v1362_v49 = vpop.permute.xlu1 %1361 }
 0x299   : > { %v488_v56 = vmul.f32 %v6575_v43, %v6558_v9  ;;  %v489_v46 = vmul.f32 %v6576_v19, %v6558_v9  ;;  %v737_v48 = vadd.f32 %v6577_v4, %v477_v44  ;;  %v738_v34 = vadd.f32 %v6578_v13, %v478_v51  ;;  %v6580_v27 = vld [vmem:[#allocation13_spill] sm:$0xff]  ;;  %v6587_v51 = vld [vmem:[#allocation26_spill] sm:$0xff] }
 0x29a   : > { %v2941_v63 = vadd.f32 %v2940_v1, %v2705_v38  ;;  %v739_v58 = vadd.f32 %v6579_v3, %v479_v18  ;;  %v740_v38 = vadd.f32 %v6580_v27, %v480_v8  ;;  %v6581_v1 = vld [vmem:[#allocation14_spill] sm:$0xff]  ;;  %v742_v21 = vadd.f32 %v6582_v41, %v482_v50  ;;  %v6584_v43 = vld [vmem:[#allocation21_spill] sm:$0xff]  ;;  %v6592_v41 = vld [vmem:[#allocation28_spill] sm:$0xff] }
 0x29b   : > { %v741_v54 = vadd.f32 %v6581_v1, %v481_v6  ;;  %v743_v11 = vadd.f32 %v6583_v25, %v483_v37  ;;  %v744_v55 = vadd.f32 %v6584_v43, %v484_v57  ;;  %v745_v9 = vadd.f32 %v6585_v0, %v485_v35  ;;  %v6586_v19 = vld [vmem:[#allocation25_spill] sm:$0xff]  ;;  %v6588_v18 = vld [vmem:[#allocation122_spill] sm:$0xff]  ;;  %v6591_v1 = vld [vmem:[#allocation27_spill] sm:$0xff] }
 0x29c   : > { %v2942_v22 = vadd.f32 %v2941_v63, %v2706_v29  ;;  %v746_v44 = vadd.f32 %v6586_v19, %v486_v30  ;;  %v747_v13 = vadd.f32 %v6587_v51, %v487_v17  ;;  %v6589_v29 = vld [vmem:[#allocation29_spill] sm:$0xff]  ;;  %v6590_v8 = vld [vmem:[#allocation30_spill] sm:$0xff]  ;;  %v748_v50 = vadd.f32 %v6591_v1, %v488_v56  ;;  %v6593_v37 = vld [vmem:[#allocation31_spill] sm:$0xff] }
 0x29d   : > { %v1061_v63 = vmul.f32 %v6589_v29, %v6588_v18  ;;  %v1062_v6 = vmul.f32 %v6590_v8, %v6588_v18  ;;  %v749_v27 = vadd.f32 %v6592_v41, %v489_v46  ;;  %v1063_v57 = vmul.f32 %v6593_v37, %v6588_v18  ;;  %v6594_v35 = vld [vmem:[#allocation32_spill] sm:$0xff]  ;;  %v6596_v17 = vld [vmem:[#allocation42_spill] sm:$0xff]  ;;  %v6597_v19 = vld [vmem:[#allocation43_spill] sm:$0xff] }
 0x29e   : > { %v2943_v4 = vadd.f32 %v2942_v22, %v2707_v5  ;;  %v1064_v0 = vmul.f32 %v6594_v35, %v6588_v18  ;;  %v6595_v5 = vld [vmem:[#allocation33_spill] sm:$0xff]  ;;  %v1593_v51 = vmul.f32 %v6596_v17, %v1362_v49  ;;  %v1594_v29 = vmul.f32 %v6597_v19, %v1362_v49  ;;  %v6598_v8 = vld [vmem:[#allocation34_spill] sm:$0xff]  ;;  %v6599_v56 = vld [vmem:[#allocation35_spill] sm:$0xff] }
 0x29f   : > { %v1065_v22 = vmul.f32 %v6595_v5, %v6588_v18  ;;  %v1066_v43 = vmul.f32 %v6598_v8, %v6588_v18  ;;  %v1067_v46 = vmul.f32 %v6599_v56, %v6588_v18  ;;  %v6600_v41 = vld [vmem:[#allocation36_spill] sm:$0xff]  ;;  %v6601_v1 = vld [vmem:[#allocation37_spill] sm:$0xff]  ;;  %v1269_v25 = vadd.f32 %v1061_v63, %v737_v48  ;;  %v6603_v19 = vld [vmem:[#allocation39_spill] sm:$0xff] }
 0x2a0   : > { %v2944_v30 = vadd.f32 %v2943_v4, %v2708_v47  ;;  %v1068_v37 = vmul.f32 %v6600_v41, %v6588_v18  ;;  %v1069_v35 = vmul.f32 %v6601_v1, %v6588_v18  ;;  %v6602_v4 = vld [vmem:[#allocation38_spill] sm:$0xff]  ;;  %v1270_v17 = vadd.f32 %v1062_v6, %v738_v34  ;;  %v6604_v8 = vld [vmem:[#allocation40_spill] sm:$0xff] }
 0x2a1   : > { %v1070_v5 = vmul.f32 %v6602_v4, %v6588_v18  ;;  %v1071_v3 = vmul.f32 %v6603_v19, %v6588_v18  ;;  %v1072_v33 = vmul.f32 %v6604_v8, %v6588_v18  ;;  %v1073_v56 = vmul.f32 %v6553_v23, %v6588_v18 }
 0x2a2   : > { %v2945_v47 = vadd.f32 %v2944_v30, %v2709_v62  ;;  %v1595_v41 = vmul.f32 %v5991_v26, %v1362_v49  ;;  %v1271_v28 = vadd.f32 %v1063_v57, %v739_v58  ;;  %v1801_v1 = vadd.f32 %v1593_v51, %v1269_v25 }
 0x2a3   : > { %v1802_v62 = vadd.f32 %v1594_v29, %v1270_v17  ;;  %v1272_v30 = vadd.f32 %v1064_v0, %v740_v38  ;;  %v1273_v24 = vadd.f32 %v1065_v22, %v741_v54  ;;  %v1274_v4 = vadd.f32 %v1066_v43, %v742_v21 }
 0x2a4   : > { %v2947_v12 = vadd.f32 %v2946_v45, %v2945_v47  ;;  %v1596_v34 = vmul.f32 %v5993_v52, %v1362_v49  ;;  %v1275_v48 = vadd.f32 %v1067_v46, %v743_v11  ;;  %v1276_v63 = vadd.f32 %v1068_v37, %v744_v55 }
 0x2a5   : > { %v1277_v6 = vadd.f32 %v1069_v35, %v745_v9  ;;  %v1278_v19 = vadd.f32 %v1070_v5, %v746_v44  ;;  %v1279_v8 = vadd.f32 %v1071_v3, %v747_v13  ;;  %v1597_v39 = vmul.f32 %v5994_v10, %v1362_v49 }
 0x2a6   : > { %2948 = vadd.xlane.f32.xlu1 %v2947_v12  ;;  %v1598_v18 = vmul.f32 %v5995_v20, %v1362_v49  ;;  %v1803_v23 = vadd.f32 %v1595_v41, %v1271_v28  ;;  %v1599_v58 = vmul.f32 %v5997_v53, %v1362_v49  ;;  %v1600_v25 = vmul.f32 %v5998_v7, %v1362_v49 }
 0x2a7   : > { %v2217_v0 = vmul.f32 0.01, %v1801_v1  ;;  %v2218_v45 = vmul.f32 0.01, %v1802_v62  ;;  %v1601_v21 = vmul.f32 %v6082_v16, %v1362_v49  ;;  %v1804_v43 = vadd.f32 %v1596_v34, %v1272_v30 }
 0x2a8   : > { %vm2009_vm2 = vcmp.ge.f32.partialorder %v1801_v1, 0.0  ;;  %vm2010_vm3 = vcmp.ge.f32.partialorder %v1802_v62, 0.0  ;;  %v1281_v12 = vadd.f32 %v1073_v56, %v749_v27  ;;  %v1602_v55 = vmul.f32 %v6141_v15, %v1362_v49 }
 0x2a9   : > { %v1603_v11 = vmul.f32 %v6142_v42, %v1362_v49  ;;  %v1605_v3 = vmul.f32 %v6144_v2, %v1362_v49  ;;  %v1604_v28 = vmul.f32 %v6194_v32, %v1362_v49  ;;  %v1805_v41 = vadd.f32 %v1597_v39, %v1273_v24 }
 0x2aa   : > { %v1806_v13 = vadd.f32 %v1598_v18, %v1274_v4  ;;  %v2219_v38 = vmul.f32 0.01, %v1803_v23  ;;  %v1807_v54 = vadd.f32 %v1599_v58, %v1275_v48  ;;  %vm2011_vm4 = vcmp.ge.f32.partialorder %v1803_v23, 0.0 }
 0x2ab   : > { %v2425_v9 = vsel %vm2009_vm2, %v1801_v1, %v2217_v0  ;;  %v2426_v44 = vsel %vm2010_vm3, %v1802_v62, %v2218_v45  ;;  %v1280_v51 = vadd.f32 %v1072_v33, %v748_v50  ;;  %v1808_v29 = vadd.f32 %v1600_v25, %v1276_v63 }
 0x2ac   : > { %v1809_v37 = vadd.f32 %v1601_v21, %v1277_v6  ;;  %v2220_v57 = vmul.f32 0.01, %v1804_v43  ;;  %v1810_v27 = vadd.f32 %v1602_v55, %v1278_v19  ;;  %v1811_v35 = vadd.f32 %v1603_v11, %v1279_v8 }
 0x2ad   : > { %v1813_v5 = vadd.f32 %v1605_v3, %v1281_v12  ;;  %vm2012_vm5 = vcmp.ge.f32.partialorder %v1804_v43, 0.0  ;;  %v2221_v22 = vmul.f32 0.01, %v1805_v41  ;;  %v2427_v17 = vsel %vm2011_vm4, %v1803_v23, %v2219_v38  ;;  %v6605_v3 = vld [vmem:[#allocation113_spill] sm:$0xff]  ;;  %v6607_v38 = vld [vmem:[#allocation67_spill] sm:$0xff] }
 0x2ae   : > { %v2685_v56 = vmul.f32 %v6029_v40, %v2425_v9  ;;  %v2686_v39 = vmul.f32 %v6245_v36, %v2426_v44  ;;  %v1812_v24 = vadd.f32 %v1604_v28, %v1280_v51  ;;  %vm2013_vm6 = vcmp.ge.f32.partialorder %v1805_v41, 0.0  ;;  %v6608_v44 = vld [vmem:[#allocation4_spill] sm:$0xff] }
 0x2af   : > { %vm2014_vm7 = vcmp.ge.f32.partialorder %v1806_v13, 0.0  ;;  %vm2015_vm8 = vcmp.ge.f32.partialorder %v1807_v54, 0.0  ;;  %vm2016_vm9 = vcmp.ge.f32.partialorder %v1808_v29, 0.0  ;;  %vm2017_vm10 = vcmp.ge.f32.partialorder %v1809_v37, 0.0 }
 0x2b0   : > { %v2222_v33 = vmul.f32 0.01, %v1806_v13  ;;  %v2428_v49 = vsel %vm2012_vm5, %v1804_v43, %v2220_v57  ;;  %vm2021_vm11 = vcmp.ge.f32.partialorder %v1813_v5, 0.0  ;;  %v2223_v1 = vmul.f32 0.01, %v1807_v54  ;;  %v6610_v57 = vld [vmem:[#allocation63_spill] sm:$0xff] }
 0x2b1   : > { %v2687_v19 = vmul.f32 %v6449_v31, %v2427_v17  ;;  %v2920_v8 = vadd.f32 %v2686_v39, %v2685_v56  ;;  %v2224_v50 = vmul.f32 0.01, %v1808_v29  ;;  %v2225_v46 = vmul.f32 0.01, %v1809_v37  ;;  %v6613_v56 = vld [vmem:[#allocation66_spill] sm:$0xff] }
 0x2b2   : > { %v2229_v23 = vmul.f32 0.01, %v1813_v5  ;;  %v2429_v47 = vsel %vm2013_vm6, %v1805_v41, %v2221_v22  ;;  %v2226_v4 = vmul.f32 0.01, %v1810_v27  ;;  %v2227_v62 = vmul.f32 0.01, %v1811_v35 }
 0x2b3   : > { %v2688_v30 = vmul.f32 %v6502_v59, %v2428_v49  ;;  %v2921_v34 = vadd.f32 %v2920_v8, %v2687_v19  ;;  %vm2018_vm12 = vcmp.ge.f32.partialorder %v1810_v27, 0.0  ;;  %vm2019_vm14 = vcmp.ge.f32.partialorder %v1811_v35, 0.0  ;;  %v6606_v41 = vld [vmem:[#allocation61_spill] sm:$0xff]  ;;  %v6615_v49 = vld [vmem:[#allocation6_spill] sm:$0xff]  ;;  %v5393_v19 = vpop.xlane.xlu0 %2738  ;;  %v5395_v8 = vpop.permute.xlu1 %1369 }
 0x2b4   : > { %v2228_v48 = vmul.f32 0.01, %v1812_v24  ;;  %v2430_v63 = vsel %vm2014_vm7, %v1806_v13, %v2222_v33  ;;  %vm2020_vm15 = vcmp.ge.f32.partialorder %v1812_v24, 0.0  ;;  %v2689_v6 = vmul.f32 %v6554_v14, %v2429_v47  ;;  %v6612_v22 = vld [vmem:[#allocation65_spill] sm:$0xff] }
 0x2b5   : > { %v2922_v18 = vadd.f32 %v2921_v34, %v2688_v30  ;;  %v2431_v58 = vsel %vm2015_vm8, %v1807_v54, %v2223_v1  ;;  %v2432_v25 = vsel %vm2016_vm9, %v1808_v29, %v2224_v50  ;;  %v2433_v0 = vsel %vm2017_vm10, %v1809_v37, %v2225_v46  ;;  %v6609_v29 = vld [vmem:[#allocation62_spill] sm:$0xff]  ;;  %v6616_v50 = vld [vmem:[#allocation7_spill] sm:$0xff] }
 0x2b6   : > { %v2437_v45 = vsel %vm2021_vm11, %v1813_v5, %v2229_v23  ;;  %v2434_v21 = vsel %vm2018_vm12, %v1810_v27, %v2226_v4  ;;  %v2435_v43 = vsel %vm2019_vm14, %v1811_v35, %v2227_v62  ;;  %v2690_v12 = vmul.f32 %v6555_v61, %v2430_v63  ;;  %v6611_v35 = vld [vmem:[#allocation64_spill] sm:$0xff]  ;;  %v6617_v23 = vld [vmem:[#allocation11_spill] sm:$0xff] }
 0x2b7   : > { %v2923_v55 = vadd.f32 %v2922_v18, %v2689_v6  ;;  %v2436_v11 = vsel %vm2020_vm15, %v1812_v24, %v2228_v48  ;;  %v503_v28 = vmul.f32 %v6559_v60, %v6605_v3  ;;  %v2691_v13 = vmul.f32 %v6606_v41, %v2431_v58  ;;  %v6614_v60 = vld [vmem:[#allocation5_spill] sm:$0xff]  ;;  %v6618_v4 = vld [vmem:[#allocation12_spill] sm:$0xff]  ;;  %v6619_v30 = vld [vmem:[#allocation15_spill] sm:$0xff] }
 0x2b8   : > { %v2697_v9 = vmul.f32 %v6607_v38, %v2437_v45  ;;  %v504_v51 = vmul.f32 %v6608_v44, %v6605_v3  ;;  %v2692_v37 = vmul.f32 %v6609_v29, %v2432_v25  ;;  %v2693_v27 = vmul.f32 %v6610_v57, %v2433_v0  ;;  %v6620_v6 = vld [vmem:[#allocation18_spill] sm:$0xff]  ;;  %v6621_v58 = vld [vmem:[#allocation19_spill] sm:$0xff]  ;;  %v6622_v0 = vld [vmem:[#allocation20_spill] sm:$0xff] }
 0x2b9   : > { %v2924_v54 = vadd.f32 %v2923_v55, %v2690_v12  ;;  %v2694_v5 = vmul.f32 %v6611_v35, %v2434_v21  ;;  %v2695_v17 = vmul.f32 %v6612_v22, %v2435_v43  ;;  %v2696_v39 = vmul.f32 %v6613_v56, %v2436_v11  ;;  %v6623_v21 = vld [vmem:[#allocation22_spill] sm:$0xff]  ;;  %v6624_v12 = vld [vmem:[#allocation23_spill] sm:$0xff]  ;;  %v6625_v11 = vld [vmem:[#allocation8_spill] sm:$0xff]  ;;  %v5424_v56 = vpop.xlane.xlu1 %2753 }
 0x2ba   : > { %v505_v33 = vmul.f32 %v6614_v60, %v6605_v3  ;;  %v506_v1 = vmul.f32 %v6615_v49, %v6605_v3  ;;  %v507_v46 = vmul.f32 %v6616_v50, %v6605_v3  ;;  %v508_v47 = vmul.f32 %v6617_v23, %v6605_v3  ;;  %v6626_v44 = vld [vmem:[#allocation9_spill] sm:$0xff]  ;;  %v6629_v50 = vld [vmem:[#allocation14_spill] sm:$0xff] }
 0x2bb   : > { %v2925_v24 = vadd.f32 %v2924_v54, %v2691_v13  ;;  %v509_v62 = vmul.f32 %v6618_v4, %v6605_v3  ;;  %v510_v34 = vmul.f32 %v6619_v30, %v6605_v3  ;;  %v2931_v63 = vsel %vm2735_vm13, %v2697_v9, 0.0  ;;  %v6628_v60 = vld [vmem:[#allocation13_spill] sm:$0xff]  ;;  %v6630_v4 = vld [vmem:[#allocation16_spill] sm:$0xff] }
 0x2bc   : > { %v511_v18 = vmul.f32 %v6620_v6, %v6605_v3  ;;  %v512_v25 = vmul.f32 %v6621_v58, %v6605_v3  ;;  %v513_v45 = vmul.f32 %v6622_v0, %v6605_v3  ;;  %v514_v43 = vmul.f32 %v6623_v21, %v6605_v3  ;;  %v6631_v6 = vld [vmem:[#allocation17_spill] sm:$0xff] }
 0x2bd   : > { %v2926_v48 = vadd.f32 %v2925_v24, %v2692_v37  ;;  %v515_v55 = vmul.f32 %v6624_v12, %v6605_v3  ;;  %v763_v13 = vadd.f32 %v6625_v11, %v503_v28  ;;  %v764_v9 = vadd.f32 %v6626_v44, %v504_v51  ;;  %v6627_v37 = vld [vmem:[#allocation10_spill] sm:$0xff]  ;;  %v6632_v0 = vld [vmem:[#allocation21_spill] sm:$0xff]  ;;  %v6633_v12 = vld [vmem:[#allocation24_spill] sm:$0xff]  ;;  %v5463_v35 = vpop.xlane.xlu1 %2798 }
 0x2be   : > { %v765_v24 = vadd.f32 %v6627_v37, %v505_v33  ;;  %v766_v49 = vadd.f32 %v6628_v60, %v506_v1  ;;  %v767_v23 = vadd.f32 %v6629_v50, %v507_v46  ;;  %v768_v30 = vadd.f32 %v6630_v4, %v508_v47  ;;  %v6636_v33 = vld [vmem:[#allocation30_spill] sm:$0xff]  ;;  %v5431_v1 = vpop.xlane.xlu0 %2768  ;;  %v6637_v46 = vld [vmem:[#allocation25_spill] sm:$0xff] }
 0x2bf   : > { %v2927_v54 = vadd.f32 %v2926_v48, %v2693_v27  ;;  %v769_v58 = vadd.f32 %v6631_v6, %v509_v62  ;;  %v770_v21 = vadd.f32 %v6632_v0, %v510_v34  ;;  %v771_v28 = vadd.f32 %v6633_v12, %v511_v18  ;;  %v6634_v27 = vld [vmem:[#allocation44_spill] sm:$0xff]  ;;  %v6635_v48 = vld [vmem:[#allocation29_spill] sm:$0xff]  ;;  %v6638_v47 = vld [vmem:[#allocation26_spill] sm:$0xff] }
 0x2c0   : > { %v1087_v51 = vmul.f32 %v6635_v48, %v6634_v27  ;;  %v1088_v11 = vmul.f32 %v6636_v33, %v6634_v27  ;;  %v772_v44 = vadd.f32 %v6637_v46, %v512_v25  ;;  %v773_v37 = vadd.f32 %v6638_v47, %v513_v45  ;;  %v6639_v62 = vld [vmem:[#allocation27_spill] sm:$0xff]  ;;  %v6640_v34 = vld [vmem:[#allocation28_spill] sm:$0xff]  ;;  %v6642_v4 = vld [vmem:[#allocation42_spill] sm:$0xff] }
 0x2c1   : > { %v2928_v3 = vadd.f32 %v2927_v54, %v2694_v5  ;;  %v774_v60 = vadd.f32 %v6639_v62, %v514_v43  ;;  %v5437_v50 = vadd.f32 %v6640_v34, %v515_v55  ;;  %v6641_v18 = vld [vmem:[#allocation31_spill] sm:$0xff]  ;;  %v1619_v6 = vmul.f32 %v6642_v4, %v5395_v8  ;;  %v6644_v48 = vld [vmem:[#allocation32_spill] sm:$0xff]  ;;  %v6645_v45 = vld [vmem:[#allocation33_spill] sm:$0xff] }
 0x2c2   : > { %v1089_v54 = vmul.f32 %v6641_v18, %v6634_v27  ;;  %v6643_v0 = vld [vmem:[#allocation43_spill] sm:$0xff]  ;;  %v1090_v25 = vmul.f32 %v6644_v48, %v6634_v27  ;;  %v1091_v33 = vmul.f32 %v6645_v45, %v6634_v27  ;;  %v6646_v43 = vld [vmem:[#allocation34_spill] sm:$0xff]  ;;  %v6648_v47 = vld [vmem:[#allocation36_spill] sm:$0xff]  ;;  %v1295_v34 = vadd.f32 %v1087_v51, %v763_v13  ;;  %v5467_v51 = vpop.xlane.xlu0 %2783 }
 0x2c3   : > { %v2929_v5 = vadd.f32 %v2928_v3, %v2695_v17  ;;  %v1620_v12 = vmul.f32 %v6643_v0, %v5395_v8  ;;  %v1092_v55 = vmul.f32 %v6646_v43, %v6634_v27  ;;  %v6647_v17 = vld [vmem:[#allocation35_spill] sm:$0xff]  ;;  %v1094_v62 = vmul.f32 %v6648_v47, %v6634_v27  ;;  %v6649_v4 = vld [vmem:[#allocation37_spill] sm:$0xff]  ;;  %v6650_v48 = vld [vmem:[#allocation38_spill] sm:$0xff] }
 0x2c4   : > { %v1093_v3 = vmul.f32 %v6647_v17, %v6634_v27  ;;  %v1296_v18 = vadd.f32 %v1088_v11, %v764_v9  ;;  %v1095_v0 = vmul.f32 %v6649_v4, %v6634_v27  ;;  %v1096_v38 = vmul.f32 %v6650_v48, %v6634_v27  ;;  %v6651_v45 = vld [vmem:[#allocation39_spill] sm:$0xff]  ;;  %v6653_v11 = vld [vmem:[#allocation41_spill] sm:$0xff] }
 0x2c5   : > { %v2930_v46 = vadd.f32 %v2929_v5, %v2696_v39  ;;  %v1097_v22 = vmul.f32 %v6651_v45, %v6634_v27  ;;  %v1621_v43 = vmul.f32 %v5991_v26, %v5395_v8  ;;  %v6652_v5 = vld [vmem:[#allocation40_spill] sm:$0xff]  ;;  %v1827_v13 = vadd.f32 %v1619_v6, %v1295_v34 }
 0x2c6   : > { %v1098_v17 = vmul.f32 %v6652_v5, %v6634_v27  ;;  %v1828_v9 = vadd.f32 %v1620_v12, %v1296_v18  ;;  %v1099_v47 = vmul.f32 %v6653_v11, %v6634_v27  ;;  %v1297_v4 = vadd.f32 %v1089_v54, %v765_v24 }
 0x2c7   : > { %v2932_v39 = vadd.f32 %v2931_v63, %v2930_v46  ;;  %v1622_v48 = vmul.f32 %v5993_v52, %v5395_v8  ;;  %v1623_v26 = vmul.f32 %v5994_v10, %v5395_v8  ;;  %v1298_v45 = vadd.f32 %v1090_v25, %v766_v49  ;;  %v2829_v49 = vpop.xlane.xlu1 %2828 }
 0x2c8   : > { %v1299_v63 = vadd.f32 %v1091_v33, %v767_v23  ;;  %v1300_v46 = vadd.f32 %v1092_v55, %v768_v30  ;;  %v1624_v6 = vmul.f32 %v5995_v20, %v5395_v8  ;;  %v1301_v12 = vadd.f32 %v1093_v3, %v769_v58 }
 0x2c9   : > { %2933 = vadd.xlane.f32.xlu0 %v2932_v39  ;;  %v1302_v34 = vadd.f32 %v1094_v62, %v770_v21  ;;  %v1303_v18 = vadd.f32 %v1095_v0, %v771_v28  ;;  %v1829_v5 = vadd.f32 %v1621_v43, %v1297_v4  ;;  %v1625_v24 = vmul.f32 %v5997_v53, %v5395_v8  ;;  %v5483_v21 = vpop.xlane.xlu0 %2813 }
 0x2ca   : > { %v1626_v52 = vmul.f32 %v5998_v7, %v5395_v8  ;;  %v2243_v27 = vmul.f32 0.01, %v1827_v13  ;;  %v2244_v54 = vmul.f32 0.01, %v1828_v9  ;;  %v1830_v10 = vadd.f32 %v1622_v48, %v1298_v45  ;;  %v6654_v45 = vld [vmem:[#allocation2_spill] sm:$0xff] }
 0x2cb   : > { %v1831_v39 = vadd.f32 %v1623_v26, %v1299_v63  ;;  %vm2035_vm0 = vcmp.ge.f32.partialorder %v1827_v13, 0.0  ;;  %vm2036_vm1 = vcmp.ge.f32.partialorder %v1828_v9, 0.0  ;;  %v1304_v23 = vadd.f32 %v1096_v38, %v772_v44  ;;  %v2859_v0 = vpop.xlane.xlu1 %2858 }
 0x2cc   : > { %v1305_v30 = vadd.f32 %v1097_v22, %v773_v37  ;;  %v1627_v20 = vmul.f32 %v6082_v16, %v5395_v8  ;;  %v1832_v58 = vadd.f32 %v1624_v6, %v1300_v46  ;;  %v5485_v28 = vadd.f32 %v1098_v17, %v774_v60  ;;  %v3086_v6 = vld [vmem:[%s5601_s1] sm:$0x3f] }
 0x2cd   : > { %v1628_v7 = vmul.f32 %v6141_v15, %v5395_v8  ;;  %v1629_v53 = vmul.f32 %v6142_v42, %v5395_v8  ;;  %v2245_v25 = vmul.f32 0.01, %v1829_v5  ;;  %v1631_v33 = vmul.f32 %v6144_v2, %v5395_v8 }
 0x2ce   : > { %vm2037_vm2 = vcmp.ge.f32.partialorder %v1829_v5, 0.0  ;;  %v2451_v38 = vsel %vm2035_vm0, %v1827_v13, %v2243_v27  ;;  %v2452_v22 = vsel %vm2036_vm1, %v1828_v9, %v2244_v54  ;;  %v1833_v44 = vadd.f32 %v1625_v24, %v1301_v12  ;;  %v2844_v9 = vpop.xlane.xlu0 %2843 }
 0x2cf   : > { %v1834_v16 = vadd.f32 %v1626_v52, %v1302_v34  ;;  %v2246_v37 = vmul.f32 0.01, %v1830_v10  ;;  %v2247_v55 = vmul.f32 0.01, %v1831_v39  ;;  %v5493_v3 = vadd.f32 %v1627_v20, %v1303_v18  ;;  %v2889_v18 = vpop.xlane.xlu1 %2888 }
 0x2d0   : > { %vm2038_vm3 = vcmp.ge.f32.partialorder %v1830_v10, 0.0  ;;  %vm2039_vm4 = vcmp.ge.f32.partialorder %v1831_v39, 0.0  ;;  %v2248_v60 = vmul.f32 0.01, %v1832_v58  ;;  %vm2040_vm5 = vcmp.ge.f32.partialorder %v1832_v58, 0.0 }
 0x2d1   : > { %v2453_v15 = vsel %vm2037_vm2, %v1829_v5, %v2245_v25  ;;  %v2711_v42 = vmul.f32 %v6029_v40, %v2451_v38  ;;  %v2712_v62 = vmul.f32 %v6245_v36, %v2452_v22  ;;  %v1307_v2 = vadd.f32 %v1099_v47, %v5437_v50 }
 0x2d2   : > { %v1630_v43 = vmul.f32 %v6194_v32, %v5395_v8  ;;  %v5500_v17 = vadd.f32 %v1628_v7, %v1304_v23  ;;  %v5502_v13 = vadd.f32 %v1629_v53, %v1305_v30  ;;  %vm2041_vm6 = vcmp.ge.f32.partialorder %v1833_v44, 0.0  ;;  %v2874_v54 = vpop.xlane.xlu0 %2873 }
 0x2d3   : > { %v2249_v11 = vmul.f32 0.01, %v1833_v44  ;;  %v2454_v4 = vsel %vm2038_vm3, %v1830_v10, %v2246_v37  ;;  %v2455_v48 = vsel %vm2039_vm4, %v1831_v39, %v2247_v55  ;;  %v2456_v26 = vsel %vm2040_vm5, %v1832_v58, %v2248_v60  ;;  %v6655_v37 = vld [vmem:[#allocation64_spill] sm:$0xff] }
 0x2d4   : > { %v2713_v40 = vmul.f32 %v6449_v31, %v2453_v15  ;;  %v2950_v36 = vadd.f32 %v2712_v62, %v2711_v42  ;;  %v2967_v63 = vsub.s32 5, %v6654_v45  ;;  %v1839_v50 = vadd.f32 %v1631_v33, %v1307_v2  ;;  %v6656_v15 = vld [vmem:[#allocation65_spill] sm:$0xff]  ;;  %v6657_v62 = vld [vmem:[#allocation67_spill] sm:$0xff]  ;;  %v6658_v2 = vld [vmem:[#allocation66_spill] sm:$0xff] }
 0x2d5   : > { %vm2042_vm7 = vcmp.ge.f32.partialorder %v1834_v16, 0.0  ;;  %vm2043_vm8 = vcmp.ge.f32.partialorder %v5493_v3, 0.0  ;;  %v2250_v32 = vmul.f32 0.01, %v1834_v16  ;;  %v2251_v8 = vmul.f32 0.01, %v5493_v3 }
 0x2d6   : > { %v2714_v47 = vmul.f32 %v6502_v59, %v2454_v4  ;;  %v2951_v46 = vadd.f32 %v2950_v36, %v2713_v40  ;;  %v5512_v12 = vrot.slane %v3086_v6, %v2967_v63  ;;  %v2457_v31 = vsel %vm2041_vm6, %v1833_v44, %v2249_v11 }
 0x2d7   : > { %v2715_v34 = vmul.f32 %v6554_v14, %v2455_v48  ;;  %v2716_v59 = vmul.f32 %v6555_v61, %v2456_v26  ;;  %vm2985_vm9 = vcmask 7168   ;;  %v2458_v23 = vsel %vm2042_vm7, %v1834_v16, %v2250_v32 }
 0x2d8   : > { %v2952_v5 = vadd.f32 %v2951_v46, %v2714_v47  ;;  %v2970_v24 = vadd.f32 %v5512_v12, %v5424_v56  ;;  %v2969_v52 = vadd.f32 %v5512_v12, %v5393_v19  ;;  %v2973_v27 = vadd.f32 %v5512_v12, %v5463_v35 }
 0x2d9   : > { %v2971_v14 = vadd.f32 %v5512_v12, %v5431_v1  ;;  %v2975_v61 = vadd.f32 %v5512_v12, %v2829_v49  ;;  %v2972_v10 = vadd.f32 %v5512_v12, %v5467_v51  ;;  %v2977_v56 = vadd.f32 %v5512_v12, %v2859_v0 }
 0x2da   : > { %v2953_v39 = vadd.f32 %v2952_v5, %v2715_v34  ;;  %2987 = vst.msk [vmem:[%s5519_s21 + $0x8] sm:$0xff] %vm2985_vm9, %v2970_v24  ;;  %2986 = vst.msk [vmem:[%s5519_s21] sm:$0xff] %vm2985_vm9, %v2969_v52  ;;  %v2974_v35 = vadd.f32 %v5512_v12, %v5483_v21  ;;  %v2979_v19 = vadd.f32 %v5512_v12, %v2889_v18  ;;  %v2252_v49 = vmul.f32 0.01, %v5500_v17 }
 0x2db   : > { %2990 = vst.msk [vmem:[%s5519_s21 + $0x20] sm:$0xff] %vm2985_vm9, %v2973_v27  ;;  %v2976_v1 = vadd.f32 %v5512_v12, %v2844_v9  ;;  %v1838_v51 = vadd.f32 %v1630_v43, %v5485_v28  ;;  %2988 = vst.msk [vmem:[%s5519_s21 + $0x10] sm:$0xff] %vm2985_vm9, %v2971_v14  ;;  %v2978_v30 = vadd.f32 %v5512_v12, %v2874_v54  ;;  %vm2044_vm10 = vcmp.ge.f32.partialorder %v5500_v17, 0.0 }
 0x2dc   : > { %2992 = vst.msk [vmem:[%s5519_s21 + $0x30] sm:$0xff] %vm2985_vm9, %v2975_v61  ;;  %2989 = vst.msk [vmem:[%s5519_s21 + $0x18] sm:$0xff] %vm2985_vm9, %v2972_v10  ;;  %v2717_v20 = vmul.f32 %v6606_v41, %v2457_v31  ;;  %v2954_v58 = vadd.f32 %v2953_v39, %v2716_v59  ;;  %v2253_v21 = vmul.f32 0.01, %v5502_v13  ;;  %v2459_v28 = vsel %vm2043_vm8, %v5493_v3, %v2251_v8 }
 0x2dd   : > { %2994 = vst.msk [vmem:[%s5519_s21 + $0x40] sm:$0xff] %vm2985_vm9, %v2977_v56  ;;  %2991 = vst.msk [vmem:[%s5519_s21 + $0x28] sm:$0xff] %vm2985_vm9, %v2974_v35  ;;  %vm2045_vm11 = vcmp.ge.f32.partialorder %v5502_v13, 0.0  ;;  %v2255_v7 = vmul.f32 0.01, %v1839_v50  ;;  %v2718_v41 = vmul.f32 %v6609_v29, %v2458_v23  ;;  %vm2047_vm12 = vcmp.ge.f32.partialorder %v1839_v50, 0.0 }
 0x2de   : > { %2996 = vst.msk [vmem:[%s5519_s21 + $0x50] sm:$0xff] %vm2985_vm9, %v2979_v19  ;;  %2993 = vst.msk [vmem:[%s5519_s21 + $0x38] sm:$0xff] %vm2985_vm9, %v2976_v1  ;;  %v2955_v53 = vadd.f32 %v2954_v58, %v2717_v20  ;;  %v2254_v25 = vmul.f32 0.01, %v1838_v51  ;;  %v2460_v33 = vsel %vm2044_vm10, %v5500_v17, %v2252_v49  ;;  %vm2046_vm14 = vcmp.ge.f32.partialorder %v1838_v51, 0.0 }
 0x2df   : > { %2995 = vst.msk [vmem:[%s5519_s21 + $0x48] sm:$0xff] %vm2985_vm9, %v2978_v30  ;;  %v2719_v38 = vmul.f32 %v6610_v57, %v2459_v28  ;;  %v2461_v44 = vsel %vm2045_vm11, %v5502_v13, %v2253_v21  ;;  %v2463_v16 = vsel %vm2047_vm12, %v1839_v50, %v2255_v7  ;;  %v2720_v55 = vmul.f32 %v6655_v37, %v2460_v33 }
 0x2e0   : > { %v2956_v22 = vadd.f32 %v2955_v53, %v2718_v41  ;;  %v2462_v60 = vsel %vm2046_vm14, %v1838_v51, %v2254_v25  ;;  %v2721_v29 = vmul.f32 %v6656_v15, %v2461_v44  ;;  %v2723_v0 = vmul.f32 %v6657_v62, %v2463_v16 }
 0x2e1   : > { %v2722_v43 = vmul.f32 %v6658_v2, %v2462_v60 }
 0x2e2   : > { %v2957_v3 = vadd.f32 %v2956_v22, %v2719_v38  ;;  %v2961_v13 = vsel %vm2735_vm13, %v2723_v0, 0.0 }
 0x2e4   : > { %v2958_v42 = vadd.f32 %v2957_v3, %v2720_v55 }
 0x2e6   : > { %v2959_v17 = vadd.f32 %v2958_v42, %v2721_v29 }
 0x2e8   : > { %v2960_v57 = vadd.f32 %v2959_v17, %v2722_v43 }
 0x2ea   : > { %v2962_v9 = vadd.f32 %v2961_v13, %v2960_v57 }
 0x2ec   : > { %v2919_v11 = vpop.xlane.xlu1 %2918  ;;  %2963 = vadd.xlane.f32.xlu0 %v2962_v9 }
 0x2ed   : > { %v2981_v4 = vadd.f32 %v5512_v12, %v2919_v11 }
 0x2ef   : > { %2998 = vst.msk [vmem:[%s5519_s21 + $0x60] sm:$0xff] %vm2985_vm9, %v2981_v4 }
 0x30f   : > { %v2904_v48 = vpop.xlane.xlu0 %2903 }
 0x310   : > { %v2980_v26 = vadd.f32 %v5512_v12, %v2904_v48 }
 0x312   : > { %2997 = vst.msk [vmem:[%s5519_s21 + $0x58] sm:$0xff] %vm2985_vm9, %v2980_v26 }
 0x333   : > { %v2949_v40 = vpop.xlane.xlu1 %2948 }
 0x334   : > { %v2983_v36 = vadd.f32 %v5512_v12, %v2949_v40 }
 0x336   : > { %3000 = vst.msk [vmem:[%s5519_s21 + $0x70] sm:$0xff] %vm2985_vm9, %v2983_v36 }
 0x356   : > { %v2934_v45 = vpop.xlane.xlu0 %2933 }
 0x357   : > { %v2982_v63 = vadd.f32 %v5512_v12, %v2934_v45 }
 0x359   : > { %2999 = vst.msk [vmem:[%s5519_s21 + $0x68] sm:$0xff] %vm2985_vm9, %v2982_v63 }
 0x379   : > { %v2964_v50 = vpop.xlane.xlu0 %2963 }
 0x37a   : > { %v2984_v32 = vadd.f32 %v5512_v12, %v2964_v50 }
 0x37c   : > { %3001 = vst.msk [vmem:[%s5519_s21 + $0x78] sm:$0xff] %vm2985_vm9, %v2984_v32 }
 0x37d PF: > { %s12_s9 = sadd.s32 1, %s3093_s9  }
 0x37e   : > { %p9_p4 = scmp.ge.s32.totalorder %s12_s9, 4  }
 0x380   :  { %11 = sbr.rel (!%p9_p4) target bundleno = 1 (0x1), region = 58 }

</bundles_post_ra>
